<compile_context>
chip_gen: v7x
topology: tpu7x:2x2x1
jax: 0.10.0
libtpu: 0.0.40
codegen_flags: <defaults>
</compile_context>

<pallas_src>
import functools

import jax
import jax.numpy as jnp
from jax.experimental import pallas as pl
from jax.experimental.pallas import tpu as pltpu

EPS = 1e-5                      # PyTorch InstanceNorm2d default eps
LANE = 128                      # TPU lane width: keep last dims 128-dense
MAX_P_TILE = 512                # spatial rows per grid step (P padded to it)
VMEM_LIMIT = 48 * 1024 * 1024   # explicit scoped-VMEM limit (v7x-safe)


# ----------------------------------------------------------------------------
# Small helpers
# ----------------------------------------------------------------------------
def _round_up(n, m):
    return n + (-n) % m


def _pad_axis(x, axis, target):
    pad = target - x.shape[axis]
    if pad <= 0:
        return x
    widths = [(0, 0)] * x.ndim
    widths[axis] = (0, pad)
    return jnp.pad(x, widths)


def _choose_tp(p):
    """Spatial tile: MAX_P_TILE rows, or the whole P (rounded to a sublane)."""
    return min(MAX_P_TILE, _round_up(p, 8))


# ----------------------------------------------------------------------------
# Pallas kernels
# ----------------------------------------------------------------------------
def _gemm_stats_kernel(p_ref, w_ref, raw_ref, sum_ref, ssq_ref):
    """bf16 GEMM (f32 accumulate) + per-tile per-channel sum / sum-of-squares.

    Stats are written as independent (batch, spatial-tile) blocks, so both
    grid axes are fully parallel (megacore-friendly).  The raw GEMM output is
    stored in bf16 to halve the HBM round trip to the norm epilogue; stats are
    taken from the f32 accumulator, so they stay f32-accurate.
    """
    y = jnp.dot(p_ref[0], w_ref[...], preferred_element_type=jnp.float32)
    raw_ref[0] = y.astype(raw_ref.dtype)
    sum_ref[...] = jnp.sum(y, axis=0, keepdims=True)[None]        # (1,1,Coutp)
    ssq_ref[...] = jnp.sum(y * y, axis=0, keepdims=True)[None]


def _make_gemm_act_kernel(act):
    """bf16 GEMM + activation, no normalization (used for the final layer)."""
    def kernel(p_ref, w_ref, o_ref):
        y = jnp.dot(p_ref[0], w_ref[...], preferred_element_type=jnp.float32)
        if act == "relu":
            y = jnp.maximum(y, 0.0)
        elif act == "tanh":
            y = jnp.tanh(y)
        o_ref[0] = y.astype(o_ref.dtype)
    return kernel


def _make_norm_act_kernel(act, has_res, inv_count):
    """Instance-norm (from precomputed sum/sumsq) + affine + act + residual."""
    def kernel(*refs):
        if has_res:
            raw_ref, sum_ref, ssq_ref, g_ref, b_ref, r_ref, o_ref = refs
        else:
            raw_ref, sum_ref, ssq_ref, g_ref, b_ref, o_ref = refs
        y = raw_ref[0].astype(jnp.float32)                # (TP, Coutp)
        mean = sum_ref[0] * inv_count                     # (1, Coutp) f32
        var = ssq_ref[0] * inv_count - mean * mean
        var = jnp.maximum(var, 0.0)                       # guard cancellation
        y = (y - mean) * jax.lax.rsqrt(var + EPS)
        y = y * g_ref[...] + b_ref[...]
        if act == "relu":
            y = jnp.maximum(y, 0.0)
        elif act == "tanh":
            y = jnp.tanh(y)
        if has_res:
            y = y + r_ref[0].astype(jnp.float32)
        o_ref[0] = y.astype(o_ref.dtype)
    return kernel


# ----------------------------------------------------------------------------
# pallas_call wrappers
# ----------------------------------------------------------------------------
def _gemm_stats_call(patches, wm, tp):
    n, pp, kcp = patches.shape
    coutp = wm.shape[1]
    nt = pp // tp
    return pl.pallas_call(
        _gemm_stats_kernel,
        grid=(n, nt),
        in_specs=[
            pl.BlockSpec((1, tp, kcp), lambda b, t: (b, t, 0)),
            pl.BlockSpec((kcp, coutp), lambda b, t: (0, 0)),
        ],
        out_specs=(
            pl.BlockSpec((1, tp, coutp), lambda b, t: (b, t, 0)),
            pl.BlockSpec((1, 1, coutp), lambda b, t: (b, t, 0)),
            pl.BlockSpec((1, 1, coutp), lambda b, t: (b, t, 0)),
        ),
        out_shape=(
            jax.ShapeDtypeStruct((n, pp, coutp), jnp.bfloat16),   # raw (bf16)
            jax.ShapeDtypeStruct((n, nt, coutp), jnp.float32),    # per-tile sum
            jax.ShapeDtypeStruct((n, nt, coutp), jnp.float32),    # per-tile ssq
        ),
        compiler_params=pltpu.CompilerParams(
            dimension_semantics=("parallel", "parallel"),
            vmem_limit_bytes=VMEM_LIMIT),
    )(patches, wm)


def _gemm_act_call(patches, wm, act, tp, out_dtype):
    n, pp, kcp = patches.shape
    coutp = wm.shape[1]
    return pl.pallas_call(
        _make_gemm_act_kernel(act),
        grid=(n, pp // tp),
        in_specs=[
            pl.BlockSpec((1, tp, kcp), lambda b, t: (b, t, 0)),
            pl.BlockSpec((kcp, coutp), lambda b, t: (0, 0)),
        ],
        out_specs=pl.BlockSpec((1, tp, coutp), lambda b, t: (b, t, 0)),
        out_shape=jax.ShapeDtypeStruct((n, pp, coutp), out_dtype),
        compiler_params=pltpu.CompilerParams(
            dimension_semantics=("parallel", "parallel"),
            vmem_limit_bytes=VMEM_LIMIT),
    )(patches, wm)


def _norm_act_call(raw, ssum, ssq, gamma_p, beta_p, inv_count, act,
                   residual, tp, out_dtype):
    n, pp, coutp = raw.shape
    has_res = residual is not None
    in_arrays = [raw, ssum, ssq, gamma_p, beta_p]
    in_specs = [
        pl.BlockSpec((1, tp, coutp), lambda b, t: (b, t, 0)),
        pl.BlockSpec((1, 1, coutp), lambda b, t: (b, 0, 0)),
        pl.BlockSpec((1, 1, coutp), lambda b, t: (b, 0, 0)),
        pl.BlockSpec((1, coutp), lambda b, t: (0, 0)),
        pl.BlockSpec((1, coutp), lambda b, t: (0, 0)),
    ]
    if has_res:
        in_arrays.append(residual)
        in_specs.append(pl.BlockSpec((1, tp, coutp), lambda b, t: (b, t, 0)))
    return pl.pallas_call(
        _make_norm_act_kernel(act, has_res, inv_count),
        grid=(n, pp // tp),
        in_specs=in_specs,
        out_specs=pl.BlockSpec((1, tp, coutp), lambda b, t: (b, t, 0)),
        out_shape=jax.ShapeDtypeStruct((n, pp, coutp), out_dtype),
        compiler_params=pltpu.CompilerParams(
            dimension_semantics=("parallel", "parallel"),
            vmem_limit_bytes=VMEM_LIMIT),
    )(*in_arrays)


# ----------------------------------------------------------------------------
# Glue: im2col + layer-level wrappers (plain JAX around the kernels)
# ----------------------------------------------------------------------------
def im2col(x, k, stride, pad):
    """x: (N, H, W, C) -> patches (N, Ho*Wo, k*k*C), Ho, Wo (dtype preserved)."""
    if pad > 0:
        x = jnp.pad(x, ((0, 0), (pad, pad), (pad, pad), (0, 0)))
    n, hp, wp, c = x.shape
    ho = (hp - k) // stride + 1
    wo = (wp - k) // stride + 1
    cols = []
    for di in range(k):
        for dj in range(k):
            cols.append(
                x[:, di:di + stride * ho:stride, dj:dj + stride * wo:stride, :])
    patches = jnp.stack(cols, axis=3)                 # (N, Ho, Wo, k*k, C)
    return patches.reshape(n, ho * wo, k * k * c), ho, wo


def _fused_gemm_layer(patches, wm, gamma, beta, act, residual, count):
    """patches (N,P,KC) bf16 @ wm (KC,Cout) [+IN over `count`][+act][+skip]."""
    n, p, kc = patches.shape
    cout = wm.shape[1]
    kcp = _round_up(kc, LANE)
    coutp = _round_up(cout, LANE)
    tp = _choose_tp(p)
    pp = _round_up(p, tp)          # pad P to a multiple of the tile (zeros)

    patches_p = _pad_axis(_pad_axis(patches, 2, kcp), 1, pp)
    wm_p = _pad_axis(_pad_axis(wm, 0, kcp), 1, coutp).astype(jnp.bfloat16)

    if gamma is None:
        assert residual is None
        out = _gemm_act_call(patches_p, wm_p, act, tp, jnp.float32)
    else:
        raw, ssum, ssq = _gemm_stats_call(patches_p, wm_p, tp)
        ssum = jnp.sum(ssum, axis=1, keepdims=True)       # (N, 1, Coutp) f32
        ssq = jnp.sum(ssq, axis=1, keepdims=True)
        g_p = _pad_axis(gamma.reshape(1, cout), 1, coutp)
        b_p = _pad_axis(beta.reshape(1, cout), 1, coutp)
        res_p = None
        if residual is not None:
            res_p = _pad_axis(_pad_axis(residual, 2, coutp), 1, pp)
        out = _norm_act_call(raw, ssum, ssq, g_p, b_p, 1.0 / count, act,
                             res_p, tp, jnp.bfloat16)
    return out[:, :p, :cout]


def apply_conv(h, w, gamma, beta, k, s, p, act, residual=None):
    """Conv2d(k, stride=s, pad=p, bias=False) [+IN][+act][+skip]. h: NHWC,
    w: torch layout (Cout, Cin, k, k)."""
    n = h.shape[0]
    cout, cin = w.shape[0], w.shape[1]
    patches, ho, wo = im2col(h.astype(jnp.bfloat16), k, s, p)   # bf16 patches
    wm = jnp.transpose(w, (2, 3, 1, 0)).reshape(k * k * cin, cout)
    res_flat = None
    if residual is not None:
        res_flat = residual.astype(jnp.bfloat16).reshape(n, ho * wo, cout)
    out = _fused_gemm_layer(patches, wm, gamma, beta, act, res_flat, ho * wo)
    return out.reshape(n, ho, wo, cout)


# Sub-pixel decomposition of ConvTranspose2d(k=4, s=2, p=1):
#   out[2a+ry, 2b+rx] only uses input rows {a-1+dy} with kernel tap
#   ky = _SUBPIXEL_TAP[ry][dy] (None -> unused); same along x.
_SUBPIXEL_TAP = ((3, 1, None), (None, 2, 0))


def _deconv_subpixel_weight(w):
    """torch ConvTranspose2d weight (Cin, Cout, 4, 4) -> (9*Cin, 4*Cout) matrix
    for an equivalent stride-1 3x3 conv whose 4*Cout output channels are the 4
    sub-pixel phases of ConvTranspose2d(kernel=4, stride=2, padding=1)."""
    cin, cout = w.shape[0], w.shape[1]
    w3 = jnp.zeros((3, 3, cin, 4 * cout), w.dtype)
    for ry in range(2):
        for rx in range(2):
            f = ry * 2 + rx
            for dy in range(3):
                ky = _SUBPIXEL_TAP[ry][dy]
                if ky is None:
                    continue
                for dx in range(3):
                    kx = _SUBPIXEL_TAP[rx][dx]
                    if kx is None:
                        continue
                    w3 = w3.at[dy, dx, :, f * cout:(f + 1) * cout].set(
                        w[:, :, ky, kx])
    return w3.reshape(9 * cin, 4 * cout)


def apply_deconv(h, w, gamma, beta, act):
    """ConvTranspose2d(k=4, s=2, p=1, bias=False) + InstanceNorm + act via the
    sub-pixel trick: one lane-dense stride-1 3x3 GEMM producing 4*Cout phase
    channels (no zero-dilated input), IN stats folded across phases, then
    depth-to-space. h: NHWC, w: torch layout (Cin, Cout, 4, 4)."""
    n, hh, ww, _ = h.shape
    cin, cout = w.shape[0], w.shape[1]
    c4 = 4 * cout

    patches, ho, wo = im2col(h.astype(jnp.bfloat16), 3, 1, 1)  # (N, H*W, 9*Cin)
    assert (ho, wo) == (hh, ww)
    w3 = _deconv_subpixel_weight(w)                            # (9*Cin, 4*Cout)

    p = hh * ww
    kcp = _round_up(9 * cin, LANE)
    c4p = _round_up(c4, LANE)
    tp = _choose_tp(p)
    pp = _round_up(p, tp)

    patches_p = _pad_axis(_pad_axis(patches, 2, kcp), 1, pp)
    w3_p = _pad_axis(_pad_axis(w3, 0, kcp), 1, c4p).astype(jnp.bfloat16)

    raw, ssum, ssq = _gemm_stats_call(patches_p, w3_p, tp)

    # Each logical output channel lives in all 4 phase blocks: reduce the
    # per-tile stats, fold across phases, then broadcast back so the normalize
    # kernel stays 128-lane dense on the pre-shuffle layout.
    def _fold(st):
        s = jnp.sum(st, axis=1)[:, :c4]                          # (N, 4*Cout)
        folded = s.reshape(n, 4, cout).sum(axis=1)               # (N, Cout)
        return _pad_axis(jnp.tile(folded, (1, 4)), 1, c4p)[:, None, :]
    ssum_f, ssq_f = _fold(ssum), _fold(ssq)

    g_p = _pad_axis(jnp.tile(gamma, 4).reshape(1, c4), 1, c4p)
    b_p = _pad_axis(jnp.tile(beta, 4).reshape(1, c4), 1, c4p)

    out = _norm_act_call(raw, ssum_f, ssq_f, g_p, b_p,
                         1.0 / (4 * hh * ww), act, None, tp, jnp.bfloat16)
    out = out[:, :p, :c4].reshape(n, hh, ww, 2, 2, cout)
    # depth-to-space: phase (ry, rx) -> output pixel (2a+ry, 2b+rx)
    out = jnp.transpose(out, (0, 1, 3, 2, 4, 5)).reshape(n, 2 * hh, 2 * ww, cout)
    return out


# ----------------------------------------------------------------------------
# Generator definition (config + deterministic params + forward)
# ----------------------------------------------------------------------------
def build_cfg(conv_dim, c_dim, repeat_num):
    cfg = []
    cfg.append(("conv", dict(k=7, s=1, p=3, cin=3 + c_dim, cout=conv_dim,
                             norm=True, act="relu")))
    cur = conv_dim
    for _ in range(2):
        cfg.append(("conv", dict(k=4, s=2, p=1, cin=cur, cout=cur * 2,
                                 norm=True, act="relu")))
        cur *= 2
    for _ in range(repeat_num):
        cfg.append(("res", dict(dim=cur)))
    for _ in range(2):
        cfg.append(("deconv", dict(k=4, s=2, p=1, cin=cur, cout=cur // 2,
                                   norm=True, act="relu")))
        cur //= 2
    cfg.append(("conv", dict(k=7, s=1, p=3, cin=cur, cout=3,
                             norm=False, act="tanh")))
    return cfg


def init_params(key, cfg):
    params = []
    for kind, c in cfg:
        key, k0, k1 = jax.random.split(key, 3)
        if kind == "conv":
            p = {"w": 0.05 * jax.random.normal(
                k0, (c["cout"], c["cin"], c["k"], c["k"]), jnp.float32)}
            if c["norm"]:
                p["g"] = jnp.ones((c["cout"],), jnp.float32)
                p["b"] = jnp.zeros((c["cout"],), jnp.float32)
        elif kind == "deconv":
            p = {"w": 0.05 * jax.random.normal(
                     k0, (c["cin"], c["cout"], c["k"], c["k"]), jnp.float32),
                 "g": jnp.ones((c["cout"],), jnp.float32),
                 "b": jnp.zeros((c["cout"],), jnp.float32)}
        else:  # residual block
            d = c["dim"]
            p = {"w1": 0.05 * jax.random.normal(k0, (d, d, 3, 3), jnp.float32),
                 "g1": jnp.ones((d,), jnp.float32),
                 "b1": jnp.zeros((d,), jnp.float32),
                 "w2": 0.05 * jax.random.normal(k1, (d, d, 3, 3), jnp.float32),
                 "g2": jnp.ones((d,), jnp.float32),
                 "b2": jnp.zeros((d,), jnp.float32)}
        params.append(p)
    return params


def generator_forward(cfg, params, x_nchw, c):
    """x_nchw: (N, 3, H, W), c: (N, c_dim) -> (N, 3, H, W)."""
    n, _, hh, ww = x_nchw.shape
    h = jnp.transpose(x_nchw, (0, 2, 3, 1))                       # -> NHWC
    c_map = jnp.broadcast_to(c[:, None, None, :], (n, hh, ww, c.shape[1]))
    h = jnp.concatenate([h, c_map], axis=-1)                      # cat on C

    for (kind, lc), p in zip(cfg, params):
        if kind == "conv":
            h = apply_conv(h, p["w"], p.get("g"), p.get("b"),
                           lc["k"], lc["s"], lc["p"], lc["act"])
        elif kind == "deconv":
            assert (lc["k"], lc["s"], lc["p"]) == (4, 2, 1)
            h = apply_deconv(h, p["w"], p["g"], p["b"], lc["act"])
        else:  # residual block: x + IN(conv(ReLU(IN(conv(x)))))
            skip = h
            h = apply_conv(h, p["w1"], p["g1"], p["b1"], 3, 1, 1, "relu")
            h = apply_conv(h, p["w2"], p["g2"], p["b2"], 3, 1, 1, "none",
                           residual=skip)

    return jnp.transpose(h, (0, 3, 1, 2))                         # -> NCHW


# ----------------------------------------------------------------------------
# Demo
# ----------------------------------------------------------------------------
if __name__ == "__main__":
    conv_dim, c_dim, repeat_num = 16, 5, 2   # small synthetic config
    N, H, W = 2, 16, 16

    key = jax.random.PRNGKey(0)
    kp, kx, kc = jax.random.split(key, 3)

    cfg = build_cfg(conv_dim, c_dim, repeat_num)
    params = init_params(kp, cfg)

    x = jax.random.normal(kx, (N, 3, H, W), jnp.float32)
    c = jax.random.normal(kc, (N, c_dim), jnp.float32)

    run = jax.jit(functools.partial(generator_forward, cfg))
    out = run(params, x, c)
    out = jax.block_until_ready(out)

    assert out.shape == (N, 3, H, W), out.shape
    assert bool(jnp.all(jnp.isfinite(out)))
    assert bool(jnp.all(jnp.abs(out) <= 1.0))   # tanh output range
    print("KERNEL_OK")
</pallas_src>

<mosaic_0001>
module attributes {stable_mosaic.version = 11 : i64} {
  func.func @kernel(%arg0: i32, %arg1: i32, %arg2: memref<1x256x128xbf16, #tpu.memory_space<vmem>>, %arg3: memref<1x1x128xf32, #tpu.memory_space<vmem>>, %arg4: memref<1x1x128xf32, #tpu.memory_space<vmem>>, %arg5: memref<1x128xf32, #tpu.memory_space<vmem>>, %arg6: memref<1x128xf32, #tpu.memory_space<vmem>>, %arg7: memref<1x256x128xbf16, #tpu.memory_space<vmem>>) attributes {dimension_semantics = [#tpu.dimension_semantics<parallel>, #tpu.dimension_semantics<parallel>], iteration_bounds = array<i64: 2, 1>, scalar_prefetch = 0 : i64, scratch_operands = 0 : i64, tpu.core_type = #tpu.core_type<tc>, window_params = [{transform_indices = @transform_0, window_bounds = array<i64: 1, 256, 128>}, {transform_indices = @transform_1, window_bounds = array<i64: 1, 1, 128>}, {transform_indices = @transform_2, window_bounds = array<i64: 1, 1, 128>}, {pipeline_mode = #tpu.pipeline_mode<synchronous>, transform_indices = @transform_3, window_bounds = array<i64: 1, 128>}, {pipeline_mode = #tpu.pipeline_mode<synchronous>, transform_indices = @transform_4, window_bounds = array<i64: 1, 128>}, {transform_indices = @transform_5, window_bounds = array<i64: 1, 256, 128>}]} {
    %c0 = arith.constant 0 : index
    %c0_0 = arith.constant 0 : index
    %c0_1 = arith.constant 0 : index
    %0 = vector.load %arg2[%c0, %c0_0, %c0_1] : memref<1x256x128xbf16, #tpu.memory_space<vmem>>, vector<1x256x128xbf16>
    %1 = vector.shape_cast %0 : vector<1x256x128xbf16> to vector<256x128xbf16>
    %2 = arith.extf %1 : vector<256x128xbf16> to vector<256x128xf32>
    %c0_2 = arith.constant 0 : index
    %c0_3 = arith.constant 0 : index
    %c0_4 = arith.constant 0 : index
    %3 = vector.load %arg3[%c0_2, %c0_3, %c0_4] : memref<1x1x128xf32, #tpu.memory_space<vmem>>, vector<1x1x128xf32>
    %4 = vector.shape_cast %3 : vector<1x1x128xf32> to vector<1x128xf32>
    %cst = arith.constant 3.906250e-03 : f32
    %5 = vector.broadcast %cst : f32 to vector<1x128xf32>
    %6 = arith.mulf %4, %5 : vector<1x128xf32>
    %c0_5 = arith.constant 0 : index
    %c0_6 = arith.constant 0 : index
    %c0_7 = arith.constant 0 : index
    %7 = vector.load %arg4[%c0_5, %c0_6, %c0_7] : memref<1x1x128xf32, #tpu.memory_space<vmem>>, vector<1x1x128xf32>
    %8 = vector.shape_cast %7 : vector<1x1x128xf32> to vector<1x128xf32>
    %cst_8 = arith.constant 3.906250e-03 : f32
    %9 = vector.broadcast %cst_8 : f32 to vector<1x128xf32>
    %10 = arith.mulf %8, %9 : vector<1x128xf32>
    %11 = arith.mulf %6, %6 : vector<1x128xf32>
    %12 = arith.subf %10, %11 : vector<1x128xf32>
    %cst_9 = arith.constant 0.000000e+00 : f32
    %13 = vector.broadcast %cst_9 : f32 to vector<1x128xf32>
    %14 = arith.maximumf %12, %13 : vector<1x128xf32>
    %15 = vector.broadcast %6 : vector<1x128xf32> to vector<256x128xf32>
    %16 = arith.subf %2, %15 : vector<256x128xf32>
    %cst_10 = arith.constant 9.99999974E-6 : f32
    %17 = vector.broadcast %cst_10 : f32 to vector<1x128xf32>
    %18 = arith.addf %14, %17 : vector<1x128xf32>
    %19 = math.rsqrt %18 : vector<1x128xf32>
    %20 = vector.broadcast %19 : vector<1x128xf32> to vector<256x128xf32>
    %21 = arith.mulf %16, %20 : vector<256x128xf32>
    %c0_11 = arith.constant 0 : index
    %c0_12 = arith.constant 0 : index
    %22 = vector.load %arg5[%c0_11, %c0_12] : memref<1x128xf32, #tpu.memory_space<vmem>>, vector<1x128xf32>
    %23 = vector.broadcast %22 : vector<1x128xf32> to vector<256x128xf32>
    %24 = arith.mulf %21, %23 : vector<256x128xf32>
    %c0_13 = arith.constant 0 : index
    %c0_14 = arith.constant 0 : index
    %25 = vector.load %arg6[%c0_13, %c0_14] : memref<1x128xf32, #tpu.memory_space<vmem>>, vector<1x128xf32>
    %26 = vector.broadcast %25 : vector<1x128xf32> to vector<256x128xf32>
    %27 = arith.addf %24, %26 : vector<256x128xf32>
    %cst_15 = arith.constant 0.000000e+00 : f32
    %28 = vector.broadcast %cst_15 : f32 to vector<256x128xf32>
    %29 = arith.maximumf %27, %28 : vector<256x128xf32>
    %30 = arith.truncf %29 : vector<256x128xf32> to vector<256x128xbf16>
    %c0_16 = arith.constant 0 : index
    %c0_17 = arith.constant 0 : index
    %c0_18 = arith.constant 0 : index
    %31 = vector.load %arg7[%c0_16, %c0_17, %c0_18] : memref<1x256x128xbf16, #tpu.memory_space<vmem>>, vector<1x256x128xbf16>
    %32 = vector.shape_cast %31 : vector<1x256x128xbf16> to vector<256x128xbf16>
    %33 = vector.shape_cast %30 : vector<256x128xbf16> to vector<1x256x128xbf16>
    tpu.vector_store %arg7[%c0_16, %c0_17, %c0_18], %33 {strides = array<i32>} : memref<1x256x128xbf16, #tpu.memory_space<vmem>>, vector<1x256x128xbf16>,
    return
  }
  func.func @transform_0(%arg0: i32, %arg1: i32) -> (i32, i32, i32) {
    %c0_i32 = arith.constant 0 : i32
    %c0_i32_0 = arith.constant 0 : i32
    return %arg0, %arg1, %c0_i32 : i32, i32, i32
  }
  func.func @transform_1(%arg0: i32, %arg1: i32) -> (i32, i32, i32) {
    %c0_i32 = arith.constant 0 : i32
    %c0_i32_0 = arith.constant 0 : i32
    %c0_i32_1 = arith.constant 0 : i32
    return %arg0, %c0_i32, %c0_i32_0 : i32, i32, i32
  }
  func.func @transform_2(%arg0: i32, %arg1: i32) -> (i32, i32, i32) {
    %c0_i32 = arith.constant 0 : i32
    %c0_i32_0 = arith.constant 0 : i32
    %c0_i32_1 = arith.constant 0 : i32
    return %arg0, %c0_i32, %c0_i32_0 : i32, i32, i32
  }
  func.func @transform_3(%arg0: i32, %arg1: i32) -> (i32, i32) {
    %c0_i32 = arith.constant 0 : i32
    %c0_i32_0 = arith.constant 0 : i32
    %c0_i32_1 = arith.constant 0 : i32
    return %c0_i32, %c0_i32_0 : i32, i32
  }
  func.func @transform_4(%arg0: i32, %arg1: i32) -> (i32, i32) {
    %c0_i32 = arith.constant 0 : i32
    %c0_i32_0 = arith.constant 0 : i32
    %c0_i32_1 = arith.constant 0 : i32
    return %c0_i32, %c0_i32_0 : i32, i32
  }
  func.func @transform_5(%arg0: i32, %arg1: i32) -> (i32, i32, i32) {
    %c0_i32 = arith.constant 0 : i32
    %c0_i32_0 = arith.constant 0 : i32
    return %arg0, %arg1, %c0_i32 : i32, i32, i32
  }
}

module attributes {stable_mosaic.version = 11 : i64} {
  func.func @_gemm_stats_kernel(%arg0: i32, %arg1: i32, %arg2: memref<1x256x512xbf16, #tpu.memory_space<vmem>>, %arg3: memref<512x128xbf16, #tpu.memory_space<vmem>>, %arg4: memref<1x256x128xbf16, #tpu.memory_space<vmem>>, %arg5: memref<1x1x128xf32, #tpu.memory_space<vmem>>, %arg6: memref<1x1x128xf32, #tpu.memory_space<vmem>>) attributes {dimension_semantics = [#tpu.dimension_semantics<parallel>, #tpu.dimension_semantics<parallel>], iteration_bounds = array<i64: 2, 1>, scalar_prefetch = 0 : i64, scratch_operands = 0 : i64, tpu.core_type = #tpu.core_type<tc>, window_params = [{transform_indices = @transform_0, window_bounds = array<i64: 1, 256, 512>}, {pipeline_mode = #tpu.pipeline_mode<synchronous>, transform_indices = @transform_1, window_bounds = array<i64: 512, 128>}, {transform_indices = @transform_2, window_bounds = array<i64: 1, 256, 128>}, {transform_indices = @transform_3, window_bounds = array<i64: 1, 1, 128>}, {transform_indices = @transform_4, window_bounds = array<i64: 1, 1, 128>}]} {
    %c0 = arith.constant 0 : index
    %c0_0 = arith.constant 0 : index
    %c0_1 = arith.constant 0 : index
    %0 = vector.load %arg2[%c0, %c0_0, %c0_1] : memref<1x256x512xbf16, #tpu.memory_space<vmem>>, vector<1x256x512xbf16>
    %1 = vector.shape_cast %0 : vector<1x256x512xbf16> to vector<256x512xbf16>
    %c0_2 = arith.constant 0 : index
    %c0_3 = arith.constant 0 : index
    %2 = vector.load %arg3[%c0_2, %c0_3] : memref<512x128xbf16, #tpu.memory_space<vmem>>, vector<512x128xbf16>
    %cst = arith.constant dense<0.000000e+00> : vector<256x128xf32>
    %3 = tpu.matmul %1, %2, %cst {dimension_numbers = #tpu.dot_dimension_numbers<[1], [0], [0], [1], [0, 0, 1, 1], [], []>} : vector<256x512xbf16>, vector<512x128xbf16>, vector<256x128xf32> -> vector<256x128xf32>
    %4 = arith.truncf %3 : vector<256x128xf32> to vector<256x128xbf16>
    %c0_4 = arith.constant 0 : index
    %c0_5 = arith.constant 0 : index
    %c0_6 = arith.constant 0 : index
    %5 = vector.load %arg4[%c0_4, %c0_5, %c0_6] : memref<1x256x128xbf16, #tpu.memory_space<vmem>>, vector<1x256x128xbf16>
    %6 = vector.shape_cast %5 : vector<1x256x128xbf16> to vector<256x128xbf16>
    %7 = vector.shape_cast %4 : vector<256x128xbf16> to vector<1x256x128xbf16>
    tpu.vector_store %arg4[%c0_4, %c0_5, %c0_6], %7 {strides = array<i32>} : memref<1x256x128xbf16, #tpu.memory_space<vmem>>, vector<1x256x128xbf16>,
    %cst_7 = arith.constant dense<0.000000e+00> : vector<128xf32>
    %8 = vector.multi_reduction <add>, %3, %cst_7 [0] : vector<256x128xf32> to vector<128xf32>
    %9 = vector.shape_cast %8 : vector<128xf32> to vector<1x128xf32>
    %10 = vector.shape_cast %9 : vector<1x128xf32> to vector<1x1x128xf32>
    %c0_8 = arith.constant 0 : index
    %c0_9 = arith.constant 0 : index
    %c0_10 = arith.constant 0 : index
    %11 = vector.load %arg5[%c0_8, %c0_9, %c0_10] : memref<1x1x128xf32, #tpu.memory_space<vmem>>, vector<1x1x128xf32>
    tpu.vector_store %arg5[%c0_8, %c0_9, %c0_10], %10 {strides = array<i32>} : memref<1x1x128xf32, #tpu.memory_space<vmem>>, vector<1x1x128xf32>,
    %12 = arith.mulf %3, %3 : vector<256x128xf32>
    %cst_11 = arith.constant dense<0.000000e+00> : vector<128xf32>
    %13 = vector.multi_reduction <add>, %12, %cst_11 [0] : vector<256x128xf32> to vector<128xf32>
    %14 = vector.shape_cast %13 : vector<128xf32> to vector<1x128xf32>
    %15 = vector.shape_cast %14 : vector<1x128xf32> to vector<1x1x128xf32>
    %c0_12 = arith.constant 0 : index
    %c0_13 = arith.constant 0 : index
    %c0_14 = arith.constant 0 : index
    %16 = vector.load %arg6[%c0_12, %c0_13, %c0_14] : memref<1x1x128xf32, #tpu.memory_space<vmem>>, vector<1x1x128xf32>
    tpu.vector_store %arg6[%c0_12, %c0_13, %c0_14], %15 {strides = array<i32>} : memref<1x1x128xf32, #tpu.memory_space<vmem>>, vector<1x1x128xf32>,
    return
  }
  func.func @transform_0(%arg0: i32, %arg1: i32) -> (i32, i32, i32) {
    %c0_i32 = arith.constant 0 : i32
    %c0_i32_0 = arith.constant 0 : i32
    return %arg0, %arg1, %c0_i32 : i32, i32, i32
  }
  func.func @transform_1(%arg0: i32, %arg1: i32) -> (i32, i32) {
    %c0_i32 = arith.constant 0 : i32
    %c0_i32_0 = arith.constant 0 : i32
    %c0_i32_1 = arith.constant 0 : i32
    return %c0_i32, %c0_i32_0 : i32, i32
  }
  func.func @transform_2(%arg0: i32, %arg1: i32) -> (i32, i32, i32) {
    %c0_i32 = arith.constant 0 : i32
    %c0_i32_0 = arith.constant 0 : i32
    return %arg0, %arg1, %c0_i32 : i32, i32, i32
  }
  func.func @transform_3(%arg0: i32, %arg1: i32) -> (i32, i32, i32) {
    %c0_i32 = arith.constant 0 : i32
    %c0_i32_0 = arith.constant 0 : i32
    return %arg0, %arg1, %c0_i32 : i32, i32, i32
  }
  func.func @transform_4(%arg0: i32, %arg1: i32) -> (i32, i32, i32) {
    %c0_i32 = arith.constant 0 : i32
    %c0_i32_0 = arith.constant 0 : i32
    return %arg0, %arg1, %c0_i32 : i32, i32, i32
  }
}

module attributes {stable_mosaic.version = 11 : i64} {
  func.func @_gemm_stats_kernel(%arg0: i32, %arg1: i32, %arg2: memref<1x64x256xbf16, #tpu.memory_space<vmem>>, %arg3: memref<256x128xbf16, #tpu.memory_space<vmem>>, %arg4: memref<1x64x128xbf16, #tpu.memory_space<vmem>>, %arg5: memref<1x1x128xf32, #tpu.memory_space<vmem>>, %arg6: memref<1x1x128xf32, #tpu.memory_space<vmem>>) attributes {dimension_semantics = [#tpu.dimension_semantics<parallel>, #tpu.dimension_semantics<parallel>], iteration_bounds = array<i64: 2, 1>, scalar_prefetch = 0 : i64, scratch_operands = 0 : i64, tpu.core_type = #tpu.core_type<tc>, window_params = [{transform_indices = @transform_0, window_bounds = array<i64: 1, 64, 256>}, {pipeline_mode = #tpu.pipeline_mode<synchronous>, transform_indices = @transform_1, window_bounds = array<i64: 256, 128>}, {transform_indices = @transform_2, window_bounds = array<i64: 1, 64, 128>}, {transform_indices = @transform_3, window_bounds = array<i64: 1, 1, 128>}, {transform_indices = @transform_4, window_bounds = array<i64: 1, 1, 128>}]} {
    %c0 = arith.constant 0 : index
    %c0_0 = arith.constant 0 : index
    %c0_1 = arith.constant 0 : index
    %0 = vector.load %arg2[%c0, %c0_0, %c0_1] : memref<1x64x256xbf16, #tpu.memory_space<vmem>>, vector<1x64x256xbf16>
    %1 = vector.shape_cast %0 : vector<1x64x256xbf16> to vector<64x256xbf16>
    %c0_2 = arith.constant 0 : index
    %c0_3 = arith.constant 0 : index
    %2 = vector.load %arg3[%c0_2, %c0_3] : memref<256x128xbf16, #tpu.memory_space<vmem>>, vector<256x128xbf16>
    %cst = arith.constant dense<0.000000e+00> : vector<64x128xf32>
    %3 = tpu.matmul %1, %2, %cst {dimension_numbers = #tpu.dot_dimension_numbers<[1], [0], [0], [1], [0, 0, 1, 1], [], []>} : vector<64x256xbf16>, vector<256x128xbf16>, vector<64x128xf32> -> vector<64x128xf32>
    %4 = arith.truncf %3 : vector<64x128xf32> to vector<64x128xbf16>
    %c0_4 = arith.constant 0 : index
    %c0_5 = arith.constant 0 : index
    %c0_6 = arith.constant 0 : index
    %5 = vector.load %arg4[%c0_4, %c0_5, %c0_6] : memref<1x64x128xbf16, #tpu.memory_space<vmem>>, vector<1x64x128xbf16>
    %6 = vector.shape_cast %5 : vector<1x64x128xbf16> to vector<64x128xbf16>
    %7 = vector.shape_cast %4 : vector<64x128xbf16> to vector<1x64x128xbf16>
    tpu.vector_store %arg4[%c0_4, %c0_5, %c0_6], %7 {strides = array<i32>} : memref<1x64x128xbf16, #tpu.memory_space<vmem>>, vector<1x64x128xbf16>,
    %cst_7 = arith.constant dense<0.000000e+00> : vector<128xf32>
    %8 = vector.multi_reduction <add>, %3, %cst_7 [0] : vector<64x128xf32> to vector<128xf32>
    %9 = vector.shape_cast %8 : vector<128xf32> to vector<1x128xf32>
    %10 = vector.shape_cast %9 : vector<1x128xf32> to vector<1x1x128xf32>
    %c0_8 = arith.constant 0 : index
    %c0_9 = arith.constant 0 : index
    %c0_10 = arith.constant 0 : index
    %11 = vector.load %arg5[%c0_8, %c0_9, %c0_10] : memref<1x1x128xf32, #tpu.memory_space<vmem>>, vector<1x1x128xf32>
    tpu.vector_store %arg5[%c0_8, %c0_9, %c0_10], %10 {strides = array<i32>} : memref<1x1x128xf32, #tpu.memory_space<vmem>>, vector<1x1x128xf32>,
    %12 = arith.mulf %3, %3 : vector<64x128xf32>
    %cst_11 = arith.constant dense<0.000000e+00> : vector<128xf32>
    %13 = vector.multi_reduction <add>, %12, %cst_11 [0] : vector<64x128xf32> to vector<128xf32>
    %14 = vector.shape_cast %13 : vector<128xf32> to vector<1x128xf32>
    %15 = vector.shape_cast %14 : vector<1x128xf32> to vector<1x1x128xf32>
    %c0_12 = arith.constant 0 : index
    %c0_13 = arith.constant 0 : index
    %c0_14 = arith.constant 0 : index
    %16 = vector.load %arg6[%c0_12, %c0_13, %c0_14] : memref<1x1x128xf32, #tpu.memory_space<vmem>>, vector<1x1x128xf32>
    tpu.vector_store %arg6[%c0_12, %c0_13, %c0_14], %15 {strides = array<i32>} : memref<1x1x128xf32, #tpu.memory_space<vmem>>, vector<1x1x128xf32>,
    return
  }
  func.func @transform_0(%arg0: i32, %arg1: i32) -> (i32, i32, i32) {
    %c0_i32 = arith.constant 0 : i32
    %c0_i32_0 = arith.constant 0 : i32
    return %arg0, %arg1, %c0_i32 : i32, i32, i32
  }
  func.func @transform_1(%arg0: i32, %arg1: i32) -> (i32, i32) {
    %c0_i32 = arith.constant 0 : i32
    %c0_i32_0 = arith.constant 0 : i32
    %c0_i32_1 = arith.constant 0 : i32
    return %c0_i32, %c0_i32_0 : i32, i32
  }
  func.func @transform_2(%arg0: i32, %arg1: i32) -> (i32, i32, i32) {
    %c0_i32 = arith.constant 0 : i32
    %c0_i32_0 = arith.constant 0 : i32
    return %arg0, %arg1, %c0_i32 : i32, i32, i32
  }
  func.func @transform_3(%arg0: i32, %arg1: i32) -> (i32, i32, i32) {
    %c0_i32 = arith.constant 0 : i32
    %c0_i32_0 = arith.constant 0 : i32
    return %arg0, %arg1, %c0_i32 : i32, i32, i32
  }
  func.func @transform_4(%arg0: i32, %arg1: i32) -> (i32, i32, i32) {
    %c0_i32 = arith.constant 0 : i32
    %c0_i32_0 = arith.constant 0 : i32
    return %arg0, %arg1, %c0_i32 : i32, i32, i32
  }
}

module attributes {stable_mosaic.version = 11 : i64} {
  func.func @kernel(%arg0: i32, %arg1: i32, %arg2: memref<1x64x128xbf16, #tpu.memory_space<vmem>>, %arg3: memref<1x1x128xf32, #tpu.memory_space<vmem>>, %arg4: memref<1x1x128xf32, #tpu.memory_space<vmem>>, %arg5: memref<1x128xf32, #tpu.memory_space<vmem>>, %arg6: memref<1x128xf32, #tpu.memory_space<vmem>>, %arg7: memref<1x64x128xbf16, #tpu.memory_space<vmem>>) attributes {dimension_semantics = [#tpu.dimension_semantics<parallel>, #tpu.dimension_semantics<parallel>], iteration_bounds = array<i64: 2, 1>, scalar_prefetch = 0 : i64, scratch_operands = 0 : i64, tpu.core_type = #tpu.core_type<tc>, window_params = [{transform_indices = @transform_0, window_bounds = array<i64: 1, 64, 128>}, {transform_indices = @transform_1, window_bounds = array<i64: 1, 1, 128>}, {transform_indices = @transform_2, window_bounds = array<i64: 1, 1, 128>}, {pipeline_mode = #tpu.pipeline_mode<synchronous>, transform_indices = @transform_3, window_bounds = array<i64: 1, 128>}, {pipeline_mode = #tpu.pipeline_mode<synchronous>, transform_indices = @transform_4, window_bounds = array<i64: 1, 128>}, {transform_indices = @transform_5, window_bounds = array<i64: 1, 64, 128>}]} {
    %c0 = arith.constant 0 : index
    %c0_0 = arith.constant 0 : index
    %c0_1 = arith.constant 0 : index
    %0 = vector.load %arg2[%c0, %c0_0, %c0_1] : memref<1x64x128xbf16, #tpu.memory_space<vmem>>, vector<1x64x128xbf16>
    %1 = vector.shape_cast %0 : vector<1x64x128xbf16> to vector<64x128xbf16>
    %2 = arith.extf %1 : vector<64x128xbf16> to vector<64x128xf32>
    %c0_2 = arith.constant 0 : index
    %c0_3 = arith.constant 0 : index
    %c0_4 = arith.constant 0 : index
    %3 = vector.load %arg3[%c0_2, %c0_3, %c0_4] : memref<1x1x128xf32, #tpu.memory_space<vmem>>, vector<1x1x128xf32>
    %4 = vector.shape_cast %3 : vector<1x1x128xf32> to vector<1x128xf32>
    %cst = arith.constant 1.562500e-02 : f32
    %5 = vector.broadcast %cst : f32 to vector<1x128xf32>
    %6 = arith.mulf %4, %5 : vector<1x128xf32>
    %c0_5 = arith.constant 0 : index
    %c0_6 = arith.constant 0 : index
    %c0_7 = arith.constant 0 : index
    %7 = vector.load %arg4[%c0_5, %c0_6, %c0_7] : memref<1x1x128xf32, #tpu.memory_space<vmem>>, vector<1x1x128xf32>
    %8 = vector.shape_cast %7 : vector<1x1x128xf32> to vector<1x128xf32>
    %cst_8 = arith.constant 1.562500e-02 : f32
    %9 = vector.broadcast %cst_8 : f32 to vector<1x128xf32>
    %10 = arith.mulf %8, %9 : vector<1x128xf32>
    %11 = arith.mulf %6, %6 : vector<1x128xf32>
    %12 = arith.subf %10, %11 : vector<1x128xf32>
    %cst_9 = arith.constant 0.000000e+00 : f32
    %13 = vector.broadcast %cst_9 : f32 to vector<1x128xf32>
    %14 = arith.maximumf %12, %13 : vector<1x128xf32>
    %15 = vector.broadcast %6 : vector<1x128xf32> to vector<64x128xf32>
    %16 = arith.subf %2, %15 : vector<64x128xf32>
    %cst_10 = arith.constant 9.99999974E-6 : f32
    %17 = vector.broadcast %cst_10 : f32 to vector<1x128xf32>
    %18 = arith.addf %14, %17 : vector<1x128xf32>
    %19 = math.rsqrt %18 : vector<1x128xf32>
    %20 = vector.broadcast %19 : vector<1x128xf32> to vector<64x128xf32>
    %21 = arith.mulf %16, %20 : vector<64x128xf32>
    %c0_11 = arith.constant 0 : index
    %c0_12 = arith.constant 0 : index
    %22 = vector.load %arg5[%c0_11, %c0_12] : memref<1x128xf32, #tpu.memory_space<vmem>>, vector<1x128xf32>
    %23 = vector.broadcast %22 : vector<1x128xf32> to vector<64x128xf32>
    %24 = arith.mulf %21, %23 : vector<64x128xf32>
    %c0_13 = arith.constant 0 : index
    %c0_14 = arith.constant 0 : index
    %25 = vector.load %arg6[%c0_13, %c0_14] : memref<1x128xf32, #tpu.memory_space<vmem>>, vector<1x128xf32>
    %26 = vector.broadcast %25 : vector<1x128xf32> to vector<64x128xf32>
    %27 = arith.addf %24, %26 : vector<64x128xf32>
    %cst_15 = arith.constant 0.000000e+00 : f32
    %28 = vector.broadcast %cst_15 : f32 to vector<64x128xf32>
    %29 = arith.maximumf %27, %28 : vector<64x128xf32>
    %30 = arith.truncf %29 : vector<64x128xf32> to vector<64x128xbf16>
    %c0_16 = arith.constant 0 : index
    %c0_17 = arith.constant 0 : index
    %c0_18 = arith.constant 0 : index
    %31 = vector.load %arg7[%c0_16, %c0_17, %c0_18] : memref<1x64x128xbf16, #tpu.memory_space<vmem>>, vector<1x64x128xbf16>
    %32 = vector.shape_cast %31 : vector<1x64x128xbf16> to vector<64x128xbf16>
    %33 = vector.shape_cast %30 : vector<64x128xbf16> to vector<1x64x128xbf16>
    tpu.vector_store %arg7[%c0_16, %c0_17, %c0_18], %33 {strides = array<i32>} : memref<1x64x128xbf16, #tpu.memory_space<vmem>>, vector<1x64x128xbf16>,
    return
  }
  func.func @transform_0(%arg0: i32, %arg1: i32) -> (i32, i32, i32) {
    %c0_i32 = arith.constant 0 : i32
    %c0_i32_0 = arith.constant 0 : i32
    return %arg0, %arg1, %c0_i32 : i32, i32, i32
  }
  func.func @transform_1(%arg0: i32, %arg1: i32) -> (i32, i32, i32) {
    %c0_i32 = arith.constant 0 : i32
    %c0_i32_0 = arith.constant 0 : i32
    %c0_i32_1 = arith.constant 0 : i32
    return %arg0, %c0_i32, %c0_i32_0 : i32, i32, i32
  }
  func.func @transform_2(%arg0: i32, %arg1: i32) -> (i32, i32, i32) {
    %c0_i32 = arith.constant 0 : i32
    %c0_i32_0 = arith.constant 0 : i32
    %c0_i32_1 = arith.constant 0 : i32
    return %arg0, %c0_i32, %c0_i32_0 : i32, i32, i32
  }
  func.func @transform_3(%arg0: i32, %arg1: i32) -> (i32, i32) {
    %c0_i32 = arith.constant 0 : i32
    %c0_i32_0 = arith.constant 0 : i32
    %c0_i32_1 = arith.constant 0 : i32
    return %c0_i32, %c0_i32_0 : i32, i32
  }
  func.func @transform_4(%arg0: i32, %arg1: i32) -> (i32, i32) {
    %c0_i32 = arith.constant 0 : i32
    %c0_i32_0 = arith.constant 0 : i32
    %c0_i32_1 = arith.constant 0 : i32
    return %c0_i32, %c0_i32_0 : i32, i32
  }
  func.func @transform_5(%arg0: i32, %arg1: i32) -> (i32, i32, i32) {
    %c0_i32 = arith.constant 0 : i32
    %c0_i32_0 = arith.constant 0 : i32
    return %arg0, %arg1, %c0_i32 : i32, i32, i32
  }
}

module attributes {stable_mosaic.version = 11 : i64} {
  func.func @kernel(%arg0: i32, %arg1: i32, %arg2: memref<1x16x128xbf16, #tpu.memory_space<vmem>>, %arg3: memref<1x1x128xf32, #tpu.memory_space<vmem>>, %arg4: memref<1x1x128xf32, #tpu.memory_space<vmem>>, %arg5: memref<1x128xf32, #tpu.memory_space<vmem>>, %arg6: memref<1x128xf32, #tpu.memory_space<vmem>>, %arg7: memref<1x16x128xbf16, #tpu.memory_space<vmem>>) attributes {dimension_semantics = [#tpu.dimension_semantics<parallel>, #tpu.dimension_semantics<parallel>], iteration_bounds = array<i64: 2, 1>, scalar_prefetch = 0 : i64, scratch_operands = 0 : i64, tpu.core_type = #tpu.core_type<tc>, window_params = [{transform_indices = @transform_0, window_bounds = array<i64: 1, 16, 128>}, {transform_indices = @transform_1, window_bounds = array<i64: 1, 1, 128>}, {transform_indices = @transform_2, window_bounds = array<i64: 1, 1, 128>}, {pipeline_mode = #tpu.pipeline_mode<synchronous>, transform_indices = @transform_3, window_bounds = array<i64: 1, 128>}, {pipeline_mode = #tpu.pipeline_mode<synchronous>, transform_indices = @transform_4, window_bounds = array<i64: 1, 128>}, {transform_indices = @transform_5, window_bounds = array<i64: 1, 16, 128>}]} {
    %c0 = arith.constant 0 : index
    %c0_0 = arith.constant 0 : index
    %c0_1 = arith.constant 0 : index
    %0 = vector.load %arg2[%c0, %c0_0, %c0_1] : memref<1x16x128xbf16, #tpu.memory_space<vmem>>, vector<1x16x128xbf16>
    %1 = vector.shape_cast %0 : vector<1x16x128xbf16> to vector<16x128xbf16>
    %2 = arith.extf %1 : vector<16x128xbf16> to vector<16x128xf32>
    %c0_2 = arith.constant 0 : index
    %c0_3 = arith.constant 0 : index
    %c0_4 = arith.constant 0 : index
    %3 = vector.load %arg3[%c0_2, %c0_3, %c0_4] : memref<1x1x128xf32, #tpu.memory_space<vmem>>, vector<1x1x128xf32>
    %4 = vector.shape_cast %3 : vector<1x1x128xf32> to vector<1x128xf32>
    %cst = arith.constant 6.250000e-02 : f32
    %5 = vector.broadcast %cst : f32 to vector<1x128xf32>
    %6 = arith.mulf %4, %5 : vector<1x128xf32>
    %c0_5 = arith.constant 0 : index
    %c0_6 = arith.constant 0 : index
    %c0_7 = arith.constant 0 : index
    %7 = vector.load %arg4[%c0_5, %c0_6, %c0_7] : memref<1x1x128xf32, #tpu.memory_space<vmem>>, vector<1x1x128xf32>
    %8 = vector.shape_cast %7 : vector<1x1x128xf32> to vector<1x128xf32>
    %cst_8 = arith.constant 6.250000e-02 : f32
    %9 = vector.broadcast %cst_8 : f32 to vector<1x128xf32>
    %10 = arith.mulf %8, %9 : vector<1x128xf32>
    %11 = arith.mulf %6, %6 : vector<1x128xf32>
    %12 = arith.subf %10, %11 : vector<1x128xf32>
    %cst_9 = arith.constant 0.000000e+00 : f32
    %13 = vector.broadcast %cst_9 : f32 to vector<1x128xf32>
    %14 = arith.maximumf %12, %13 : vector<1x128xf32>
    %15 = vector.broadcast %6 : vector<1x128xf32> to vector<16x128xf32>
    %16 = arith.subf %2, %15 : vector<16x128xf32>
    %cst_10 = arith.constant 9.99999974E-6 : f32
    %17 = vector.broadcast %cst_10 : f32 to vector<1x128xf32>
    %18 = arith.addf %14, %17 : vector<1x128xf32>
    %19 = math.rsqrt %18 : vector<1x128xf32>
    %20 = vector.broadcast %19 : vector<1x128xf32> to vector<16x128xf32>
    %21 = arith.mulf %16, %20 : vector<16x128xf32>
    %c0_11 = arith.constant 0 : index
    %c0_12 = arith.constant 0 : index
    %22 = vector.load %arg5[%c0_11, %c0_12] : memref<1x128xf32, #tpu.memory_space<vmem>>, vector<1x128xf32>
    %23 = vector.broadcast %22 : vector<1x128xf32> to vector<16x128xf32>
    %24 = arith.mulf %21, %23 : vector<16x128xf32>
    %c0_13 = arith.constant 0 : index
    %c0_14 = arith.constant 0 : index
    %25 = vector.load %arg6[%c0_13, %c0_14] : memref<1x128xf32, #tpu.memory_space<vmem>>, vector<1x128xf32>
    %26 = vector.broadcast %25 : vector<1x128xf32> to vector<16x128xf32>
    %27 = arith.addf %24, %26 : vector<16x128xf32>
    %cst_15 = arith.constant 0.000000e+00 : f32
    %28 = vector.broadcast %cst_15 : f32 to vector<16x128xf32>
    %29 = arith.maximumf %27, %28 : vector<16x128xf32>
    %30 = arith.truncf %29 : vector<16x128xf32> to vector<16x128xbf16>
    %c0_16 = arith.constant 0 : index
    %c0_17 = arith.constant 0 : index
    %c0_18 = arith.constant 0 : index
    %31 = vector.load %arg7[%c0_16, %c0_17, %c0_18] : memref<1x16x128xbf16, #tpu.memory_space<vmem>>, vector<1x16x128xbf16>
    %32 = vector.shape_cast %31 : vector<1x16x128xbf16> to vector<16x128xbf16>
    %33 = vector.shape_cast %30 : vector<16x128xbf16> to vector<1x16x128xbf16>
    tpu.vector_store %arg7[%c0_16, %c0_17, %c0_18], %33 {strides = array<i32>} : memref<1x16x128xbf16, #tpu.memory_space<vmem>>, vector<1x16x128xbf16>,
    return
  }
  func.func @transform_0(%arg0: i32, %arg1: i32) -> (i32, i32, i32) {
    %c0_i32 = arith.constant 0 : i32
    %c0_i32_0 = arith.constant 0 : i32
    return %arg0, %arg1, %c0_i32 : i32, i32, i32
  }
  func.func @transform_1(%arg0: i32, %arg1: i32) -> (i32, i32, i32) {
    %c0_i32 = arith.constant 0 : i32
    %c0_i32_0 = arith.constant 0 : i32
    %c0_i32_1 = arith.constant 0 : i32
    return %arg0, %c0_i32, %c0_i32_0 : i32, i32, i32
  }
  func.func @transform_2(%arg0: i32, %arg1: i32) -> (i32, i32, i32) {
    %c0_i32 = arith.constant 0 : i32
    %c0_i32_0 = arith.constant 0 : i32
    %c0_i32_1 = arith.constant 0 : i32
    return %arg0, %c0_i32, %c0_i32_0 : i32, i32, i32
  }
  func.func @transform_3(%arg0: i32, %arg1: i32) -> (i32, i32) {
    %c0_i32 = arith.constant 0 : i32
    %c0_i32_0 = arith.constant 0 : i32
    %c0_i32_1 = arith.constant 0 : i32
    return %c0_i32, %c0_i32_0 : i32, i32
  }
  func.func @transform_4(%arg0: i32, %arg1: i32) -> (i32, i32) {
    %c0_i32 = arith.constant 0 : i32
    %c0_i32_0 = arith.constant 0 : i32
    %c0_i32_1 = arith.constant 0 : i32
    return %c0_i32, %c0_i32_0 : i32, i32
  }
  func.func @transform_5(%arg0: i32, %arg1: i32) -> (i32, i32, i32) {
    %c0_i32 = arith.constant 0 : i32
    %c0_i32_0 = arith.constant 0 : i32
    return %arg0, %arg1, %c0_i32 : i32, i32, i32
  }
}

module attributes {stable_mosaic.version = 11 : i64} {
  func.func @_gemm_stats_kernel(%arg0: i32, %arg1: i32, %arg2: memref<1x16x512xbf16, #tpu.memory_space<vmem>>, %arg3: memref<512x128xbf16, #tpu.memory_space<vmem>>, %arg4: memref<1x16x128xbf16, #tpu.memory_space<vmem>>, %arg5: memref<1x1x128xf32, #tpu.memory_space<vmem>>, %arg6: memref<1x1x128xf32, #tpu.memory_space<vmem>>) attributes {dimension_semantics = [#tpu.dimension_semantics<parallel>, #tpu.dimension_semantics<parallel>], iteration_bounds = array<i64: 2, 1>, scalar_prefetch = 0 : i64, scratch_operands = 0 : i64, tpu.core_type = #tpu.core_type<tc>, window_params = [{transform_indices = @transform_0, window_bounds = array<i64: 1, 16, 512>}, {pipeline_mode = #tpu.pipeline_mode<synchronous>, transform_indices = @transform_1, window_bounds = array<i64: 512, 128>}, {transform_indices = @transform_2, window_bounds = array<i64: 1, 16, 128>}, {transform_indices = @transform_3, window_bounds = array<i64: 1, 1, 128>}, {transform_indices = @transform_4, window_bounds = array<i64: 1, 1, 128>}]} {
    %c0 = arith.constant 0 : index
    %c0_0 = arith.constant 0 : index
    %c0_1 = arith.constant 0 : index
    %0 = vector.load %arg2[%c0, %c0_0, %c0_1] : memref<1x16x512xbf16, #tpu.memory_space<vmem>>, vector<1x16x512xbf16>
    %1 = vector.shape_cast %0 : vector<1x16x512xbf16> to vector<16x512xbf16>
    %c0_2 = arith.constant 0 : index
    %c0_3 = arith.constant 0 : index
    %2 = vector.load %arg3[%c0_2, %c0_3] : memref<512x128xbf16, #tpu.memory_space<vmem>>, vector<512x128xbf16>
    %cst = arith.constant dense<0.000000e+00> : vector<16x128xf32>
    %3 = tpu.matmul %1, %2, %cst {dimension_numbers = #tpu.dot_dimension_numbers<[1], [0], [0], [1], [0, 0, 1, 1], [], []>} : vector<16x512xbf16>, vector<512x128xbf16>, vector<16x128xf32> -> vector<16x128xf32>
    %4 = arith.truncf %3 : vector<16x128xf32> to vector<16x128xbf16>
    %c0_4 = arith.constant 0 : index
    %c0_5 = arith.constant 0 : index
    %c0_6 = arith.constant 0 : index
    %5 = vector.load %arg4[%c0_4, %c0_5, %c0_6] : memref<1x16x128xbf16, #tpu.memory_space<vmem>>, vector<1x16x128xbf16>
    %6 = vector.shape_cast %5 : vector<1x16x128xbf16> to vector<16x128xbf16>
    %7 = vector.shape_cast %4 : vector<16x128xbf16> to vector<1x16x128xbf16>
    tpu.vector_store %arg4[%c0_4, %c0_5, %c0_6], %7 {strides = array<i32>} : memref<1x16x128xbf16, #tpu.memory_space<vmem>>, vector<1x16x128xbf16>,
    %cst_7 = arith.constant dense<0.000000e+00> : vector<128xf32>
    %8 = vector.multi_reduction <add>, %3, %cst_7 [0] : vector<16x128xf32> to vector<128xf32>
    %9 = vector.shape_cast %8 : vector<128xf32> to vector<1x128xf32>
    %10 = vector.shape_cast %9 : vector<1x128xf32> to vector<1x1x128xf32>
    %c0_8 = arith.constant 0 : index
    %c0_9 = arith.constant 0 : index
    %c0_10 = arith.constant 0 : index
    %11 = vector.load %arg5[%c0_8, %c0_9, %c0_10] : memref<1x1x128xf32, #tpu.memory_space<vmem>>, vector<1x1x128xf32>
    tpu.vector_store %arg5[%c0_8, %c0_9, %c0_10], %10 {strides = array<i32>} : memref<1x1x128xf32, #tpu.memory_space<vmem>>, vector<1x1x128xf32>,
    %12 = arith.mulf %3, %3 : vector<16x128xf32>
    %cst_11 = arith.constant dense<0.000000e+00> : vector<128xf32>
    %13 = vector.multi_reduction <add>, %12, %cst_11 [0] : vector<16x128xf32> to vector<128xf32>
    %14 = vector.shape_cast %13 : vector<128xf32> to vector<1x128xf32>
    %15 = vector.shape_cast %14 : vector<1x128xf32> to vector<1x1x128xf32>
    %c0_12 = arith.constant 0 : index
    %c0_13 = arith.constant 0 : index
    %c0_14 = arith.constant 0 : index
    %16 = vector.load %arg6[%c0_12, %c0_13, %c0_14] : memref<1x1x128xf32, #tpu.memory_space<vmem>>, vector<1x1x128xf32>
    tpu.vector_store %arg6[%c0_12, %c0_13, %c0_14], %15 {strides = array<i32>} : memref<1x1x128xf32, #tpu.memory_space<vmem>>, vector<1x1x128xf32>,
    return
  }
  func.func @transform_0(%arg0: i32, %arg1: i32) -> (i32, i32, i32) {
    %c0_i32 = arith.constant 0 : i32
    %c0_i32_0 = arith.constant 0 : i32
    return %arg0, %arg1, %c0_i32 : i32, i32, i32
  }
  func.func @transform_1(%arg0: i32, %arg1: i32) -> (i32, i32) {
    %c0_i32 = arith.constant 0 : i32
    %c0_i32_0 = arith.constant 0 : i32
    %c0_i32_1 = arith.constant 0 : i32
    return %c0_i32, %c0_i32_0 : i32, i32
  }
  func.func @transform_2(%arg0: i32, %arg1: i32) -> (i32, i32, i32) {
    %c0_i32 = arith.constant 0 : i32
    %c0_i32_0 = arith.constant 0 : i32
    return %arg0, %arg1, %c0_i32 : i32, i32, i32
  }
  func.func @transform_3(%arg0: i32, %arg1: i32) -> (i32, i32, i32) {
    %c0_i32 = arith.constant 0 : i32
    %c0_i32_0 = arith.constant 0 : i32
    return %arg0, %arg1, %c0_i32 : i32, i32, i32
  }
  func.func @transform_4(%arg0: i32, %arg1: i32) -> (i32, i32, i32) {
    %c0_i32 = arith.constant 0 : i32
    %c0_i32_0 = arith.constant 0 : i32
    return %arg0, %arg1, %c0_i32 : i32, i32, i32
  }
}

module attributes {stable_mosaic.version = 11 : i64} {
  func.func @_gemm_stats_kernel(%arg0: i32, %arg1: i32, %arg2: memref<1x16x640xbf16, #tpu.memory_space<vmem>>, %arg3: memref<640x128xbf16, #tpu.memory_space<vmem>>, %arg4: memref<1x16x128xbf16, #tpu.memory_space<vmem>>, %arg5: memref<1x1x128xf32, #tpu.memory_space<vmem>>, %arg6: memref<1x1x128xf32, #tpu.memory_space<vmem>>) attributes {dimension_semantics = [#tpu.dimension_semantics<parallel>, #tpu.dimension_semantics<parallel>], iteration_bounds = array<i64: 2, 1>, scalar_prefetch = 0 : i64, scratch_operands = 0 : i64, tpu.core_type = #tpu.core_type<tc>, window_params = [{transform_indices = @transform_0, window_bounds = array<i64: 1, 16, 640>}, {pipeline_mode = #tpu.pipeline_mode<synchronous>, transform_indices = @transform_1, window_bounds = array<i64: 640, 128>}, {transform_indices = @transform_2, window_bounds = array<i64: 1, 16, 128>}, {transform_indices = @transform_3, window_bounds = array<i64: 1, 1, 128>}, {transform_indices = @transform_4, window_bounds = array<i64: 1, 1, 128>}]} {
    %c0 = arith.constant 0 : index
    %c0_0 = arith.constant 0 : index
    %c0_1 = arith.constant 0 : index
    %0 = vector.load %arg2[%c0, %c0_0, %c0_1] : memref<1x16x640xbf16, #tpu.memory_space<vmem>>, vector<1x16x640xbf16>
    %1 = vector.shape_cast %0 : vector<1x16x640xbf16> to vector<16x640xbf16>
    %c0_2 = arith.constant 0 : index
    %c0_3 = arith.constant 0 : index
    %2 = vector.load %arg3[%c0_2, %c0_3] : memref<640x128xbf16, #tpu.memory_space<vmem>>, vector<640x128xbf16>
    %cst = arith.constant dense<0.000000e+00> : vector<16x128xf32>
    %3 = tpu.matmul %1, %2, %cst {dimension_numbers = #tpu.dot_dimension_numbers<[1], [0], [0], [1], [0, 0, 1, 1], [], []>} : vector<16x640xbf16>, vector<640x128xbf16>, vector<16x128xf32> -> vector<16x128xf32>
    %4 = arith.truncf %3 : vector<16x128xf32> to vector<16x128xbf16>
    %c0_4 = arith.constant 0 : index
    %c0_5 = arith.constant 0 : index
    %c0_6 = arith.constant 0 : index
    %5 = vector.load %arg4[%c0_4, %c0_5, %c0_6] : memref<1x16x128xbf16, #tpu.memory_space<vmem>>, vector<1x16x128xbf16>
    %6 = vector.shape_cast %5 : vector<1x16x128xbf16> to vector<16x128xbf16>
    %7 = vector.shape_cast %4 : vector<16x128xbf16> to vector<1x16x128xbf16>
    tpu.vector_store %arg4[%c0_4, %c0_5, %c0_6], %7 {strides = array<i32>} : memref<1x16x128xbf16, #tpu.memory_space<vmem>>, vector<1x16x128xbf16>,
    %cst_7 = arith.constant dense<0.000000e+00> : vector<128xf32>
    %8 = vector.multi_reduction <add>, %3, %cst_7 [0] : vector<16x128xf32> to vector<128xf32>
    %9 = vector.shape_cast %8 : vector<128xf32> to vector<1x128xf32>
    %10 = vector.shape_cast %9 : vector<1x128xf32> to vector<1x1x128xf32>
    %c0_8 = arith.constant 0 : index
    %c0_9 = arith.constant 0 : index
    %c0_10 = arith.constant 0 : index
    %11 = vector.load %arg5[%c0_8, %c0_9, %c0_10] : memref<1x1x128xf32, #tpu.memory_space<vmem>>, vector<1x1x128xf32>
    tpu.vector_store %arg5[%c0_8, %c0_9, %c0_10], %10 {strides = array<i32>} : memref<1x1x128xf32, #tpu.memory_space<vmem>>, vector<1x1x128xf32>,
    %12 = arith.mulf %3, %3 : vector<16x128xf32>
    %cst_11 = arith.constant dense<0.000000e+00> : vector<128xf32>
    %13 = vector.multi_reduction <add>, %12, %cst_11 [0] : vector<16x128xf32> to vector<128xf32>
    %14 = vector.shape_cast %13 : vector<128xf32> to vector<1x128xf32>
    %15 = vector.shape_cast %14 : vector<1x128xf32> to vector<1x1x128xf32>
    %c0_12 = arith.constant 0 : index
    %c0_13 = arith.constant 0 : index
    %c0_14 = arith.constant 0 : index
    %16 = vector.load %arg6[%c0_12, %c0_13, %c0_14] : memref<1x1x128xf32, #tpu.memory_space<vmem>>, vector<1x1x128xf32>
    tpu.vector_store %arg6[%c0_12, %c0_13, %c0_14], %15 {strides = array<i32>} : memref<1x1x128xf32, #tpu.memory_space<vmem>>, vector<1x1x128xf32>,
    return
  }
  func.func @transform_0(%arg0: i32, %arg1: i32) -> (i32, i32, i32) {
    %c0_i32 = arith.constant 0 : i32
    %c0_i32_0 = arith.constant 0 : i32
    return %arg0, %arg1, %c0_i32 : i32, i32, i32
  }
  func.func @transform_1(%arg0: i32, %arg1: i32) -> (i32, i32) {
    %c0_i32 = arith.constant 0 : i32
    %c0_i32_0 = arith.constant 0 : i32
    %c0_i32_1 = arith.constant 0 : i32
    return %c0_i32, %c0_i32_0 : i32, i32
  }
  func.func @transform_2(%arg0: i32, %arg1: i32) -> (i32, i32, i32) {
    %c0_i32 = arith.constant 0 : i32
    %c0_i32_0 = arith.constant 0 : i32
    return %arg0, %arg1, %c0_i32 : i32, i32, i32
  }
  func.func @transform_3(%arg0: i32, %arg1: i32) -> (i32, i32, i32) {
    %c0_i32 = arith.constant 0 : i32
    %c0_i32_0 = arith.constant 0 : i32
    return %arg0, %arg1, %c0_i32 : i32, i32, i32
  }
  func.func @transform_4(%arg0: i32, %arg1: i32) -> (i32, i32, i32) {
    %c0_i32 = arith.constant 0 : i32
    %c0_i32_0 = arith.constant 0 : i32
    return %arg0, %arg1, %c0_i32 : i32, i32, i32
  }
}

module attributes {stable_mosaic.version = 11 : i64} {
  func.func @kernel(%arg0: i32, %arg1: i32, %arg2: memref<1x16x128xbf16, #tpu.memory_space<vmem>>, %arg3: memref<1x1x128xf32, #tpu.memory_space<vmem>>, %arg4: memref<1x1x128xf32, #tpu.memory_space<vmem>>, %arg5: memref<1x128xf32, #tpu.memory_space<vmem>>, %arg6: memref<1x128xf32, #tpu.memory_space<vmem>>, %arg7: memref<1x16x128xbf16, #tpu.memory_space<vmem>>, %arg8: memref<1x16x128xbf16, #tpu.memory_space<vmem>>) attributes {dimension_semantics = [#tpu.dimension_semantics<parallel>, #tpu.dimension_semantics<parallel>], iteration_bounds = array<i64: 2, 1>, scalar_prefetch = 0 : i64, scratch_operands = 0 : i64, tpu.core_type = #tpu.core_type<tc>, window_params = [{transform_indices = @transform_0, window_bounds = array<i64: 1, 16, 128>}, {transform_indices = @transform_1, window_bounds = array<i64: 1, 1, 128>}, {transform_indices = @transform_2, window_bounds = array<i64: 1, 1, 128>}, {pipeline_mode = #tpu.pipeline_mode<synchronous>, transform_indices = @transform_3, window_bounds = array<i64: 1, 128>}, {pipeline_mode = #tpu.pipeline_mode<synchronous>, transform_indices = @transform_4, window_bounds = array<i64: 1, 128>}, {transform_indices = @transform_5, window_bounds = array<i64: 1, 16, 128>}, {transform_indices = @transform_6, window_bounds = array<i64: 1, 16, 128>}]} {
    %c0 = arith.constant 0 : index
    %c0_0 = arith.constant 0 : index
    %c0_1 = arith.constant 0 : index
    %0 = vector.load %arg2[%c0, %c0_0, %c0_1] : memref<1x16x128xbf16, #tpu.memory_space<vmem>>, vector<1x16x128xbf16>
    %1 = vector.shape_cast %0 : vector<1x16x128xbf16> to vector<16x128xbf16>
    %2 = arith.extf %1 : vector<16x128xbf16> to vector<16x128xf32>
    %c0_2 = arith.constant 0 : index
    %c0_3 = arith.constant 0 : index
    %c0_4 = arith.constant 0 : index
    %3 = vector.load %arg3[%c0_2, %c0_3, %c0_4] : memref<1x1x128xf32, #tpu.memory_space<vmem>>, vector<1x1x128xf32>
    %4 = vector.shape_cast %3 : vector<1x1x128xf32> to vector<1x128xf32>
    %cst = arith.constant 6.250000e-02 : f32
    %5 = vector.broadcast %cst : f32 to vector<1x128xf32>
    %6 = arith.mulf %4, %5 : vector<1x128xf32>
    %c0_5 = arith.constant 0 : index
    %c0_6 = arith.constant 0 : index
    %c0_7 = arith.constant 0 : index
    %7 = vector.load %arg4[%c0_5, %c0_6, %c0_7] : memref<1x1x128xf32, #tpu.memory_space<vmem>>, vector<1x1x128xf32>
    %8 = vector.shape_cast %7 : vector<1x1x128xf32> to vector<1x128xf32>
    %cst_8 = arith.constant 6.250000e-02 : f32
    %9 = vector.broadcast %cst_8 : f32 to vector<1x128xf32>
    %10 = arith.mulf %8, %9 : vector<1x128xf32>
    %11 = arith.mulf %6, %6 : vector<1x128xf32>
    %12 = arith.subf %10, %11 : vector<1x128xf32>
    %cst_9 = arith.constant 0.000000e+00 : f32
    %13 = vector.broadcast %cst_9 : f32 to vector<1x128xf32>
    %14 = arith.maximumf %12, %13 : vector<1x128xf32>
    %15 = vector.broadcast %6 : vector<1x128xf32> to vector<16x128xf32>
    %16 = arith.subf %2, %15 : vector<16x128xf32>
    %cst_10 = arith.constant 9.99999974E-6 : f32
    %17 = vector.broadcast %cst_10 : f32 to vector<1x128xf32>
    %18 = arith.addf %14, %17 : vector<1x128xf32>
    %19 = math.rsqrt %18 : vector<1x128xf32>
    %20 = vector.broadcast %19 : vector<1x128xf32> to vector<16x128xf32>
    %21 = arith.mulf %16, %20 : vector<16x128xf32>
    %c0_11 = arith.constant 0 : index
    %c0_12 = arith.constant 0 : index
    %22 = vector.load %arg5[%c0_11, %c0_12] : memref<1x128xf32, #tpu.memory_space<vmem>>, vector<1x128xf32>
    %23 = vector.broadcast %22 : vector<1x128xf32> to vector<16x128xf32>
    %24 = arith.mulf %21, %23 : vector<16x128xf32>
    %c0_13 = arith.constant 0 : index
    %c0_14 = arith.constant 0 : index
    %25 = vector.load %arg6[%c0_13, %c0_14] : memref<1x128xf32, #tpu.memory_space<vmem>>, vector<1x128xf32>
    %26 = vector.broadcast %25 : vector<1x128xf32> to vector<16x128xf32>
    %27 = arith.addf %24, %26 : vector<16x128xf32>
    %c0_15 = arith.constant 0 : index
    %c0_16 = arith.constant 0 : index
    %c0_17 = arith.constant 0 : index
    %28 = vector.load %arg7[%c0_15, %c0_16, %c0_17] : memref<1x16x128xbf16, #tpu.memory_space<vmem>>, vector<1x16x128xbf16>
    %29 = vector.shape_cast %28 : vector<1x16x128xbf16> to vector<16x128xbf16>
    %30 = arith.extf %29 : vector<16x128xbf16> to vector<16x128xf32>
    %31 = arith.addf %27, %30 : vector<16x128xf32>
    %32 = arith.truncf %31 : vector<16x128xf32> to vector<16x128xbf16>
    %c0_18 = arith.constant 0 : index
    %c0_19 = arith.constant 0 : index
    %c0_20 = arith.constant 0 : index
    %33 = vector.load %arg8[%c0_18, %c0_19, %c0_20] : memref<1x16x128xbf16, #tpu.memory_space<vmem>>, vector<1x16x128xbf16>
    %34 = vector.shape_cast %33 : vector<1x16x128xbf16> to vector<16x128xbf16>
    %35 = vector.shape_cast %32 : vector<16x128xbf16> to vector<1x16x128xbf16>
    tpu.vector_store %arg8[%c0_18, %c0_19, %c0_20], %35 {strides = array<i32>} : memref<1x16x128xbf16, #tpu.memory_space<vmem>>, vector<1x16x128xbf16>,
    return
  }
  func.func @transform_0(%arg0: i32, %arg1: i32) -> (i32, i32, i32) {
    %c0_i32 = arith.constant 0 : i32
    %c0_i32_0 = arith.constant 0 : i32
    return %arg0, %arg1, %c0_i32 : i32, i32, i32
  }
  func.func @transform_1(%arg0: i32, %arg1: i32) -> (i32, i32, i32) {
    %c0_i32 = arith.constant 0 : i32
    %c0_i32_0 = arith.constant 0 : i32
    %c0_i32_1 = arith.constant 0 : i32
    return %arg0, %c0_i32, %c0_i32_0 : i32, i32, i32
  }
  func.func @transform_2(%arg0: i32, %arg1: i32) -> (i32, i32, i32) {
    %c0_i32 = arith.constant 0 : i32
    %c0_i32_0 = arith.constant 0 : i32
    %c0_i32_1 = arith.constant 0 : i32
    return %arg0, %c0_i32, %c0_i32_0 : i32, i32, i32
  }
  func.func @transform_3(%arg0: i32, %arg1: i32) -> (i32, i32) {
    %c0_i32 = arith.constant 0 : i32
    %c0_i32_0 = arith.constant 0 : i32
    %c0_i32_1 = arith.constant 0 : i32
    return %c0_i32, %c0_i32_0 : i32, i32
  }
  func.func @transform_4(%arg0: i32, %arg1: i32) -> (i32, i32) {
    %c0_i32 = arith.constant 0 : i32
    %c0_i32_0 = arith.constant 0 : i32
    %c0_i32_1 = arith.constant 0 : i32
    return %c0_i32, %c0_i32_0 : i32, i32
  }
  func.func @transform_5(%arg0: i32, %arg1: i32) -> (i32, i32, i32) {
    %c0_i32 = arith.constant 0 : i32
    %c0_i32_0 = arith.constant 0 : i32
    return %arg0, %arg1, %c0_i32 : i32, i32, i32
  }
  func.func @transform_6(%arg0: i32, %arg1: i32) -> (i32, i32, i32) {
    %c0_i32 = arith.constant 0 : i32
    %c0_i32_0 = arith.constant 0 : i32
    return %arg0, %arg1, %c0_i32 : i32, i32, i32
  }
}

module attributes {stable_mosaic.version = 11 : i64} {
  func.func @kernel(%arg0: i32, %arg1: i32, %arg2: memref<1x16x128xbf16, #tpu.memory_space<vmem>>, %arg3: memref<1x1x128xf32, #tpu.memory_space<vmem>>, %arg4: memref<1x1x128xf32, #tpu.memory_space<vmem>>, %arg5: memref<1x128xf32, #tpu.memory_space<vmem>>, %arg6: memref<1x128xf32, #tpu.memory_space<vmem>>, %arg7: memref<1x16x128xbf16, #tpu.memory_space<vmem>>) attributes {dimension_semantics = [#tpu.dimension_semantics<parallel>, #tpu.dimension_semantics<parallel>], iteration_bounds = array<i64: 2, 1>, scalar_prefetch = 0 : i64, scratch_operands = 0 : i64, tpu.core_type = #tpu.core_type<tc>, window_params = [{transform_indices = @transform_0, window_bounds = array<i64: 1, 16, 128>}, {transform_indices = @transform_1, window_bounds = array<i64: 1, 1, 128>}, {transform_indices = @transform_2, window_bounds = array<i64: 1, 1, 128>}, {pipeline_mode = #tpu.pipeline_mode<synchronous>, transform_indices = @transform_3, window_bounds = array<i64: 1, 128>}, {pipeline_mode = #tpu.pipeline_mode<synchronous>, transform_indices = @transform_4, window_bounds = array<i64: 1, 128>}, {transform_indices = @transform_5, window_bounds = array<i64: 1, 16, 128>}]} {
    %c0 = arith.constant 0 : index
    %c0_0 = arith.constant 0 : index
    %c0_1 = arith.constant 0 : index
    %0 = vector.load %arg2[%c0, %c0_0, %c0_1] : memref<1x16x128xbf16, #tpu.memory_space<vmem>>, vector<1x16x128xbf16>
    %1 = vector.shape_cast %0 : vector<1x16x128xbf16> to vector<16x128xbf16>
    %2 = arith.extf %1 : vector<16x128xbf16> to vector<16x128xf32>
    %c0_2 = arith.constant 0 : index
    %c0_3 = arith.constant 0 : index
    %c0_4 = arith.constant 0 : index
    %3 = vector.load %arg3[%c0_2, %c0_3, %c0_4] : memref<1x1x128xf32, #tpu.memory_space<vmem>>, vector<1x1x128xf32>
    %4 = vector.shape_cast %3 : vector<1x1x128xf32> to vector<1x128xf32>
    %cst = arith.constant 1.562500e-02 : f32
    %5 = vector.broadcast %cst : f32 to vector<1x128xf32>
    %6 = arith.mulf %4, %5 : vector<1x128xf32>
    %c0_5 = arith.constant 0 : index
    %c0_6 = arith.constant 0 : index
    %c0_7 = arith.constant 0 : index
    %7 = vector.load %arg4[%c0_5, %c0_6, %c0_7] : memref<1x1x128xf32, #tpu.memory_space<vmem>>, vector<1x1x128xf32>
    %8 = vector.shape_cast %7 : vector<1x1x128xf32> to vector<1x128xf32>
    %cst_8 = arith.constant 1.562500e-02 : f32
    %9 = vector.broadcast %cst_8 : f32 to vector<1x128xf32>
    %10 = arith.mulf %8, %9 : vector<1x128xf32>
    %11 = arith.mulf %6, %6 : vector<1x128xf32>
    %12 = arith.subf %10, %11 : vector<1x128xf32>
    %cst_9 = arith.constant 0.000000e+00 : f32
    %13 = vector.broadcast %cst_9 : f32 to vector<1x128xf32>
    %14 = arith.maximumf %12, %13 : vector<1x128xf32>
    %15 = vector.broadcast %6 : vector<1x128xf32> to vector<16x128xf32>
    %16 = arith.subf %2, %15 : vector<16x128xf32>
    %cst_10 = arith.constant 9.99999974E-6 : f32
    %17 = vector.broadcast %cst_10 : f32 to vector<1x128xf32>
    %18 = arith.addf %14, %17 : vector<1x128xf32>
    %19 = math.rsqrt %18 : vector<1x128xf32>
    %20 = vector.broadcast %19 : vector<1x128xf32> to vector<16x128xf32>
    %21 = arith.mulf %16, %20 : vector<16x128xf32>
    %c0_11 = arith.constant 0 : index
    %c0_12 = arith.constant 0 : index
    %22 = vector.load %arg5[%c0_11, %c0_12] : memref<1x128xf32, #tpu.memory_space<vmem>>, vector<1x128xf32>
    %23 = vector.broadcast %22 : vector<1x128xf32> to vector<16x128xf32>
    %24 = arith.mulf %21, %23 : vector<16x128xf32>
    %c0_13 = arith.constant 0 : index
    %c0_14 = arith.constant 0 : index
    %25 = vector.load %arg6[%c0_13, %c0_14] : memref<1x128xf32, #tpu.memory_space<vmem>>, vector<1x128xf32>
    %26 = vector.broadcast %25 : vector<1x128xf32> to vector<16x128xf32>
    %27 = arith.addf %24, %26 : vector<16x128xf32>
    %cst_15 = arith.constant 0.000000e+00 : f32
    %28 = vector.broadcast %cst_15 : f32 to vector<16x128xf32>
    %29 = arith.maximumf %27, %28 : vector<16x128xf32>
    %30 = arith.truncf %29 : vector<16x128xf32> to vector<16x128xbf16>
    %c0_16 = arith.constant 0 : index
    %c0_17 = arith.constant 0 : index
    %c0_18 = arith.constant 0 : index
    %31 = vector.load %arg7[%c0_16, %c0_17, %c0_18] : memref<1x16x128xbf16, #tpu.memory_space<vmem>>, vector<1x16x128xbf16>
    %32 = vector.shape_cast %31 : vector<1x16x128xbf16> to vector<16x128xbf16>
    %33 = vector.shape_cast %30 : vector<16x128xbf16> to vector<1x16x128xbf16>
    tpu.vector_store %arg7[%c0_16, %c0_17, %c0_18], %33 {strides = array<i32>} : memref<1x16x128xbf16, #tpu.memory_space<vmem>>, vector<1x16x128xbf16>,
    return
  }
  func.func @transform_0(%arg0: i32, %arg1: i32) -> (i32, i32, i32) {
    %c0_i32 = arith.constant 0 : i32
    %c0_i32_0 = arith.constant 0 : i32
    return %arg0, %arg1, %c0_i32 : i32, i32, i32
  }
  func.func @transform_1(%arg0: i32, %arg1: i32) -> (i32, i32, i32) {
    %c0_i32 = arith.constant 0 : i32
    %c0_i32_0 = arith.constant 0 : i32
    %c0_i32_1 = arith.constant 0 : i32
    return %arg0, %c0_i32, %c0_i32_0 : i32, i32, i32
  }
  func.func @transform_2(%arg0: i32, %arg1: i32) -> (i32, i32, i32) {
    %c0_i32 = arith.constant 0 : i32
    %c0_i32_0 = arith.constant 0 : i32
    %c0_i32_1 = arith.constant 0 : i32
    return %arg0, %c0_i32, %c0_i32_0 : i32, i32, i32
  }
  func.func @transform_3(%arg0: i32, %arg1: i32) -> (i32, i32) {
    %c0_i32 = arith.constant 0 : i32
    %c0_i32_0 = arith.constant 0 : i32
    %c0_i32_1 = arith.constant 0 : i32
    return %c0_i32, %c0_i32_0 : i32, i32
  }
  func.func @transform_4(%arg0: i32, %arg1: i32) -> (i32, i32) {
    %c0_i32 = arith.constant 0 : i32
    %c0_i32_0 = arith.constant 0 : i32
    %c0_i32_1 = arith.constant 0 : i32
    return %c0_i32, %c0_i32_0 : i32, i32
  }
  func.func @transform_5(%arg0: i32, %arg1: i32) -> (i32, i32, i32) {
    %c0_i32 = arith.constant 0 : i32
    %c0_i32_0 = arith.constant 0 : i32
    return %arg0, %arg1, %c0_i32 : i32, i32, i32
  }
}

module attributes {stable_mosaic.version = 11 : i64} {
  func.func @_gemm_stats_kernel(%arg0: i32, %arg1: i32, %arg2: memref<1x64x384xbf16, #tpu.memory_space<vmem>>, %arg3: memref<384x128xbf16, #tpu.memory_space<vmem>>, %arg4: memref<1x64x128xbf16, #tpu.memory_space<vmem>>, %arg5: memref<1x1x128xf32, #tpu.memory_space<vmem>>, %arg6: memref<1x1x128xf32, #tpu.memory_space<vmem>>) attributes {dimension_semantics = [#tpu.dimension_semantics<parallel>, #tpu.dimension_semantics<parallel>], iteration_bounds = array<i64: 2, 1>, scalar_prefetch = 0 : i64, scratch_operands = 0 : i64, tpu.core_type = #tpu.core_type<tc>, window_params = [{transform_indices = @transform_0, window_bounds = array<i64: 1, 64, 384>}, {pipeline_mode = #tpu.pipeline_mode<synchronous>, transform_indices = @transform_1, window_bounds = array<i64: 384, 128>}, {transform_indices = @transform_2, window_bounds = array<i64: 1, 64, 128>}, {transform_indices = @transform_3, window_bounds = array<i64: 1, 1, 128>}, {transform_indices = @transform_4, window_bounds = array<i64: 1, 1, 128>}]} {
    %c0 = arith.constant 0 : index
    %c0_0 = arith.constant 0 : index
    %c0_1 = arith.constant 0 : index
    %0 = vector.load %arg2[%c0, %c0_0, %c0_1] : memref<1x64x384xbf16, #tpu.memory_space<vmem>>, vector<1x64x384xbf16>
    %1 = vector.shape_cast %0 : vector<1x64x384xbf16> to vector<64x384xbf16>
    %c0_2 = arith.constant 0 : index
    %c0_3 = arith.constant 0 : index
    %2 = vector.load %arg3[%c0_2, %c0_3] : memref<384x128xbf16, #tpu.memory_space<vmem>>, vector<384x128xbf16>
    %cst = arith.constant dense<0.000000e+00> : vector<64x128xf32>
    %3 = tpu.matmul %1, %2, %cst {dimension_numbers = #tpu.dot_dimension_numbers<[1], [0], [0], [1], [0, 0, 1, 1], [], []>} : vector<64x384xbf16>, vector<384x128xbf16>, vector<64x128xf32> -> vector<64x128xf32>
    %4 = arith.truncf %3 : vector<64x128xf32> to vector<64x128xbf16>
    %c0_4 = arith.constant 0 : index
    %c0_5 = arith.constant 0 : index
    %c0_6 = arith.constant 0 : index
    %5 = vector.load %arg4[%c0_4, %c0_5, %c0_6] : memref<1x64x128xbf16, #tpu.memory_space<vmem>>, vector<1x64x128xbf16>
    %6 = vector.shape_cast %5 : vector<1x64x128xbf16> to vector<64x128xbf16>
    %7 = vector.shape_cast %4 : vector<64x128xbf16> to vector<1x64x128xbf16>
    tpu.vector_store %arg4[%c0_4, %c0_5, %c0_6], %7 {strides = array<i32>} : memref<1x64x128xbf16, #tpu.memory_space<vmem>>, vector<1x64x128xbf16>,
    %cst_7 = arith.constant dense<0.000000e+00> : vector<128xf32>
    %8 = vector.multi_reduction <add>, %3, %cst_7 [0] : vector<64x128xf32> to vector<128xf32>
    %9 = vector.shape_cast %8 : vector<128xf32> to vector<1x128xf32>
    %10 = vector.shape_cast %9 : vector<1x128xf32> to vector<1x1x128xf32>
    %c0_8 = arith.constant 0 : index
    %c0_9 = arith.constant 0 : index
    %c0_10 = arith.constant 0 : index
    %11 = vector.load %arg5[%c0_8, %c0_9, %c0_10] : memref<1x1x128xf32, #tpu.memory_space<vmem>>, vector<1x1x128xf32>
    tpu.vector_store %arg5[%c0_8, %c0_9, %c0_10], %10 {strides = array<i32>} : memref<1x1x128xf32, #tpu.memory_space<vmem>>, vector<1x1x128xf32>,
    %12 = arith.mulf %3, %3 : vector<64x128xf32>
    %cst_11 = arith.constant dense<0.000000e+00> : vector<128xf32>
    %13 = vector.multi_reduction <add>, %12, %cst_11 [0] : vector<64x128xf32> to vector<128xf32>
    %14 = vector.shape_cast %13 : vector<128xf32> to vector<1x128xf32>
    %15 = vector.shape_cast %14 : vector<1x128xf32> to vector<1x1x128xf32>
    %c0_12 = arith.constant 0 : index
    %c0_13 = arith.constant 0 : index
    %c0_14 = arith.constant 0 : index
    %16 = vector.load %arg6[%c0_12, %c0_13, %c0_14] : memref<1x1x128xf32, #tpu.memory_space<vmem>>, vector<1x1x128xf32>
    tpu.vector_store %arg6[%c0_12, %c0_13, %c0_14], %15 {strides = array<i32>} : memref<1x1x128xf32, #tpu.memory_space<vmem>>, vector<1x1x128xf32>,
    return
  }
  func.func @transform_0(%arg0: i32, %arg1: i32) -> (i32, i32, i32) {
    %c0_i32 = arith.constant 0 : i32
    %c0_i32_0 = arith.constant 0 : i32
    return %arg0, %arg1, %c0_i32 : i32, i32, i32
  }
  func.func @transform_1(%arg0: i32, %arg1: i32) -> (i32, i32) {
    %c0_i32 = arith.constant 0 : i32
    %c0_i32_0 = arith.constant 0 : i32
    %c0_i32_1 = arith.constant 0 : i32
    return %c0_i32, %c0_i32_0 : i32, i32
  }
  func.func @transform_2(%arg0: i32, %arg1: i32) -> (i32, i32, i32) {
    %c0_i32 = arith.constant 0 : i32
    %c0_i32_0 = arith.constant 0 : i32
    return %arg0, %arg1, %c0_i32 : i32, i32, i32
  }
  func.func @transform_3(%arg0: i32, %arg1: i32) -> (i32, i32, i32) {
    %c0_i32 = arith.constant 0 : i32
    %c0_i32_0 = arith.constant 0 : i32
    return %arg0, %arg1, %c0_i32 : i32, i32, i32
  }
  func.func @transform_4(%arg0: i32, %arg1: i32) -> (i32, i32, i32) {
    %c0_i32 = arith.constant 0 : i32
    %c0_i32_0 = arith.constant 0 : i32
    return %arg0, %arg1, %c0_i32 : i32, i32, i32
  }
}

module attributes {stable_mosaic.version = 11 : i64} {
  func.func @kernel(%arg0: i32, %arg1: i32, %arg2: memref<1x64x128xbf16, #tpu.memory_space<vmem>>, %arg3: memref<1x1x128xf32, #tpu.memory_space<vmem>>, %arg4: memref<1x1x128xf32, #tpu.memory_space<vmem>>, %arg5: memref<1x128xf32, #tpu.memory_space<vmem>>, %arg6: memref<1x128xf32, #tpu.memory_space<vmem>>, %arg7: memref<1x64x128xbf16, #tpu.memory_space<vmem>>) attributes {dimension_semantics = [#tpu.dimension_semantics<parallel>, #tpu.dimension_semantics<parallel>], iteration_bounds = array<i64: 2, 1>, scalar_prefetch = 0 : i64, scratch_operands = 0 : i64, tpu.core_type = #tpu.core_type<tc>, window_params = [{transform_indices = @transform_0, window_bounds = array<i64: 1, 64, 128>}, {transform_indices = @transform_1, window_bounds = array<i64: 1, 1, 128>}, {transform_indices = @transform_2, window_bounds = array<i64: 1, 1, 128>}, {pipeline_mode = #tpu.pipeline_mode<synchronous>, transform_indices = @transform_3, window_bounds = array<i64: 1, 128>}, {pipeline_mode = #tpu.pipeline_mode<synchronous>, transform_indices = @transform_4, window_bounds = array<i64: 1, 128>}, {transform_indices = @transform_5, window_bounds = array<i64: 1, 64, 128>}]} {
    %c0 = arith.constant 0 : index
    %c0_0 = arith.constant 0 : index
    %c0_1 = arith.constant 0 : index
    %0 = vector.load %arg2[%c0, %c0_0, %c0_1] : memref<1x64x128xbf16, #tpu.memory_space<vmem>>, vector<1x64x128xbf16>
    %1 = vector.shape_cast %0 : vector<1x64x128xbf16> to vector<64x128xbf16>
    %2 = arith.extf %1 : vector<64x128xbf16> to vector<64x128xf32>
    %c0_2 = arith.constant 0 : index
    %c0_3 = arith.constant 0 : index
    %c0_4 = arith.constant 0 : index
    %3 = vector.load %arg3[%c0_2, %c0_3, %c0_4] : memref<1x1x128xf32, #tpu.memory_space<vmem>>, vector<1x1x128xf32>
    %4 = vector.shape_cast %3 : vector<1x1x128xf32> to vector<1x128xf32>
    %cst = arith.constant 3.906250e-03 : f32
    %5 = vector.broadcast %cst : f32 to vector<1x128xf32>
    %6 = arith.mulf %4, %5 : vector<1x128xf32>
    %c0_5 = arith.constant 0 : index
    %c0_6 = arith.constant 0 : index
    %c0_7 = arith.constant 0 : index
    %7 = vector.load %arg4[%c0_5, %c0_6, %c0_7] : memref<1x1x128xf32, #tpu.memory_space<vmem>>, vector<1x1x128xf32>
    %8 = vector.shape_cast %7 : vector<1x1x128xf32> to vector<1x128xf32>
    %cst_8 = arith.constant 3.906250e-03 : f32
    %9 = vector.broadcast %cst_8 : f32 to vector<1x128xf32>
    %10 = arith.mulf %8, %9 : vector<1x128xf32>
    %11 = arith.mulf %6, %6 : vector<1x128xf32>
    %12 = arith.subf %10, %11 : vector<1x128xf32>
    %cst_9 = arith.constant 0.000000e+00 : f32
    %13 = vector.broadcast %cst_9 : f32 to vector<1x128xf32>
    %14 = arith.maximumf %12, %13 : vector<1x128xf32>
    %15 = vector.broadcast %6 : vector<1x128xf32> to vector<64x128xf32>
    %16 = arith.subf %2, %15 : vector<64x128xf32>
    %cst_10 = arith.constant 9.99999974E-6 : f32
    %17 = vector.broadcast %cst_10 : f32 to vector<1x128xf32>
    %18 = arith.addf %14, %17 : vector<1x128xf32>
    %19 = math.rsqrt %18 : vector<1x128xf32>
    %20 = vector.broadcast %19 : vector<1x128xf32> to vector<64x128xf32>
    %21 = arith.mulf %16, %20 : vector<64x128xf32>
    %c0_11 = arith.constant 0 : index
    %c0_12 = arith.constant 0 : index
    %22 = vector.load %arg5[%c0_11, %c0_12] : memref<1x128xf32, #tpu.memory_space<vmem>>, vector<1x128xf32>
    %23 = vector.broadcast %22 : vector<1x128xf32> to vector<64x128xf32>
    %24 = arith.mulf %21, %23 : vector<64x128xf32>
    %c0_13 = arith.constant 0 : index
    %c0_14 = arith.constant 0 : index
    %25 = vector.load %arg6[%c0_13, %c0_14] : memref<1x128xf32, #tpu.memory_space<vmem>>, vector<1x128xf32>
    %26 = vector.broadcast %25 : vector<1x128xf32> to vector<64x128xf32>
    %27 = arith.addf %24, %26 : vector<64x128xf32>
    %cst_15 = arith.constant 0.000000e+00 : f32
    %28 = vector.broadcast %cst_15 : f32 to vector<64x128xf32>
    %29 = arith.maximumf %27, %28 : vector<64x128xf32>
    %30 = arith.truncf %29 : vector<64x128xf32> to vector<64x128xbf16>
    %c0_16 = arith.constant 0 : index
    %c0_17 = arith.constant 0 : index
    %c0_18 = arith.constant 0 : index
    %31 = vector.load %arg7[%c0_16, %c0_17, %c0_18] : memref<1x64x128xbf16, #tpu.memory_space<vmem>>, vector<1x64x128xbf16>
    %32 = vector.shape_cast %31 : vector<1x64x128xbf16> to vector<64x128xbf16>
    %33 = vector.shape_cast %30 : vector<64x128xbf16> to vector<1x64x128xbf16>
    tpu.vector_store %arg7[%c0_16, %c0_17, %c0_18], %33 {strides = array<i32>} : memref<1x64x128xbf16, #tpu.memory_space<vmem>>, vector<1x64x128xbf16>,
    return
  }
  func.func @transform_0(%arg0: i32, %arg1: i32) -> (i32, i32, i32) {
    %c0_i32 = arith.constant 0 : i32
    %c0_i32_0 = arith.constant 0 : i32
    return %arg0, %arg1, %c0_i32 : i32, i32, i32
  }
  func.func @transform_1(%arg0: i32, %arg1: i32) -> (i32, i32, i32) {
    %c0_i32 = arith.constant 0 : i32
    %c0_i32_0 = arith.constant 0 : i32
    %c0_i32_1 = arith.constant 0 : i32
    return %arg0, %c0_i32, %c0_i32_0 : i32, i32, i32
  }
  func.func @transform_2(%arg0: i32, %arg1: i32) -> (i32, i32, i32) {
    %c0_i32 = arith.constant 0 : i32
    %c0_i32_0 = arith.constant 0 : i32
    %c0_i32_1 = arith.constant 0 : i32
    return %arg0, %c0_i32, %c0_i32_0 : i32, i32, i32
  }
  func.func @transform_3(%arg0: i32, %arg1: i32) -> (i32, i32) {
    %c0_i32 = arith.constant 0 : i32
    %c0_i32_0 = arith.constant 0 : i32
    %c0_i32_1 = arith.constant 0 : i32
    return %c0_i32, %c0_i32_0 : i32, i32
  }
  func.func @transform_4(%arg0: i32, %arg1: i32) -> (i32, i32) {
    %c0_i32 = arith.constant 0 : i32
    %c0_i32_0 = arith.constant 0 : i32
    %c0_i32_1 = arith.constant 0 : i32
    return %c0_i32, %c0_i32_0 : i32, i32
  }
  func.func @transform_5(%arg0: i32, %arg1: i32) -> (i32, i32, i32) {
    %c0_i32 = arith.constant 0 : i32
    %c0_i32_0 = arith.constant 0 : i32
    return %arg0, %arg1, %c0_i32 : i32, i32, i32
  }
}

module attributes {stable_mosaic.version = 11 : i64} {
  func.func @kernel(%arg0: i32, %arg1: i32, %arg2: memref<1x256x896xbf16, #tpu.memory_space<vmem>>, %arg3: memref<896x128xbf16, #tpu.memory_space<vmem>>, %arg4: memref<1x256x128xf32, #tpu.memory_space<vmem>>) attributes {dimension_semantics = [#tpu.dimension_semantics<parallel>, #tpu.dimension_semantics<parallel>], iteration_bounds = array<i64: 2, 1>, scalar_prefetch = 0 : i64, scratch_operands = 0 : i64, tpu.core_type = #tpu.core_type<tc>, window_params = [{transform_indices = @transform_0, window_bounds = array<i64: 1, 256, 896>}, {pipeline_mode = #tpu.pipeline_mode<synchronous>, transform_indices = @transform_1, window_bounds = array<i64: 896, 128>}, {transform_indices = @transform_2, window_bounds = array<i64: 1, 256, 128>}]} {
    %c0 = arith.constant 0 : index
    %c0_0 = arith.constant 0 : index
    %c0_1 = arith.constant 0 : index
    %0 = vector.load %arg2[%c0, %c0_0, %c0_1] : memref<1x256x896xbf16, #tpu.memory_space<vmem>>, vector<1x256x896xbf16>
    %1 = vector.shape_cast %0 : vector<1x256x896xbf16> to vector<256x896xbf16>
    %c0_2 = arith.constant 0 : index
    %c0_3 = arith.constant 0 : index
    %2 = vector.load %arg3[%c0_2, %c0_3] : memref<896x128xbf16, #tpu.memory_space<vmem>>, vector<896x128xbf16>
    %cst = arith.constant dense<0.000000e+00> : vector<256x128xf32>
    %3 = tpu.matmul %1, %2, %cst {dimension_numbers = #tpu.dot_dimension_numbers<[1], [0], [0], [1], [0, 0, 1, 1], [], []>} : vector<256x896xbf16>, vector<896x128xbf16>, vector<256x128xf32> -> vector<256x128xf32>
    %4 = math.tanh %3 : vector<256x128xf32>
    %c0_4 = arith.constant 0 : index
    %c0_5 = arith.constant 0 : index
    %c0_6 = arith.constant 0 : index
    %5 = vector.load %arg4[%c0_4, %c0_5, %c0_6] : memref<1x256x128xf32, #tpu.memory_space<vmem>>, vector<1x256x128xf32>
    %6 = vector.shape_cast %5 : vector<1x256x128xf32> to vector<256x128xf32>
    %7 = vector.shape_cast %4 : vector<256x128xf32> to vector<1x256x128xf32>
    tpu.vector_store %arg4[%c0_4, %c0_5, %c0_6], %7 {strides = array<i32>} : memref<1x256x128xf32, #tpu.memory_space<vmem>>, vector<1x256x128xf32>,
    return
  }
  func.func @transform_0(%arg0: i32, %arg1: i32) -> (i32, i32, i32) {
    %c0_i32 = arith.constant 0 : i32
    %c0_i32_0 = arith.constant 0 : i32
    return %arg0, %arg1, %c0_i32 : i32, i32, i32
  }
  func.func @transform_1(%arg0: i32, %arg1: i32) -> (i32, i32) {
    %c0_i32 = arith.constant 0 : i32
    %c0_i32_0 = arith.constant 0 : i32
    %c0_i32_1 = arith.constant 0 : i32
    return %c0_i32, %c0_i32_0 : i32, i32
  }
  func.func @transform_2(%arg0: i32, %arg1: i32) -> (i32, i32, i32) {
    %c0_i32 = arith.constant 0 : i32
    %c0_i32_0 = arith.constant 0 : i32
    return %arg0, %arg1, %c0_i32 : i32, i32, i32
  }
}

</mosaic_0001>

<bundles_post_ra>
// kernel: generator_forward.20
= control target key start
LH: loop header
LB: loop body
LE: loop exit
PB: predicated region body
PF: predicated region fallthrough
CT: control target
= control target key end

     0   :  { %s1149_s18 = smov 0   ;;  %s1151_s19 = smov 0   ;;  %s1457_s0 = inlined_call_operand.vmem [shape: bf16[2,256,128], index: 0, kind: input, shape index: {}]   ;;  %s1458_s1 = inlined_call_operand.vmem [shape: f32[2,1,128], index: 1, kind: input, shape index: {}]   ;;  %s1459_s2 = inlined_call_operand.vmem [shape: f32[2,1,128], index: 2, kind: input, shape index: {}]   ;;  %s1460_s3 = inlined_call_operand.vmem [shape: f32[1,128], index: 3, kind: input, shape index: {}]   ;;  %s1461_s4 = inlined_call_operand.vmem [shape: f32[1,128], index: 4, kind: input, shape index: {}]   ;;  %s1462_s5 = inlined_call_operand.vmem [shape: bf16[2,256,128], index: 5, kind: output, shape index: {}]  }
   0x1   :  { %s1153_s20 = smov 0  }
   0x2 LB: > { %s27_s21 = sadd.s32 1, %s1113_s19  ;;  %p820_p0 = scmp.ge.s32.totalorder %s1117_s20, 1  ;;  %s1117_s20 = sphi %s1153_s20, %s15_s20   ;;  %s1113_s19 = sphi %s1151_s19, %s1464_s19   ;;  %s1109_s18 = sphi %s1149_s18, %s1463_s18  }
   0x3   : > { %p29_p1 = scmp.ge.s32.totalorder %s27_s21, 2  ;;  %p224_p2 = scmp.lt.s32.totalorder %s1117_s20, 3 }
   0x5   : > { %s1466_s21 = smov (%p29_p1, %s27_s21), 0  ;;  %p225_p3 = pnand %p820_p0, %p224_p2 }
   0x6   : > { %p267_p4 = scmp.lt.s32.totalorder (!%p225_p3), %s1109_s18, 1  ;;  %v364_v0 = vlaneseq (!%p225_p3) }
   0x7   : > { %228 = sbr.rel (%p225_p3) target bundleno = 83 (0x53), region = 40 }
   0x8   : > { %v1169_v1 = vshrl.u32 (!%p225_p3), %v364_v0, 7 }
   0xa   : > { %v366_v5 = vsub.s32 (!%p225_p3), 0, %v1169_v1 }
   0xe   : > { %s1468_s18 = smov (!%p267_p4, %s1109_s18), 1 }
   0xf   : > { %s861_s22 = sshll.u32 %s1468_s18, 7  ;;  %s278_s25 = scalar_lea.vmem %s1458_s1, %s1468_s18 }
  0x10   : > { %s1181_s28 = scalar_lea.vmem %s1457_s0, %s861_s22  ;;  %s281_s6 = scalar_lea.vmem %s1459_s2, %s1468_s18  ;;  %v356_v2 = vld [vmem:[%s278_s25] sm:$0x1] }
  0x11   : > { %v357_v3 = vmul.f32 0.00390625, %v356_v2  ;;  %v358_v4 = vld [vmem:[%s281_s6] sm:$0x1]  ;;  %v1039_v9 = vld [vmem:[%s1181_s28 + $0x8] sm:$0xff]   ;;  %v1040_v13 = vld [vmem:[%s1181_s28 + $0x10] sm:$0xff]   ;;  %s1334_s13 = scalar_lea.vmem %s1462_s5, %s861_s22 }
  0x12   : > { %v896_v6 = vld [vmem:[%s1181_s28] sm:$0xff]   ;;  %v359_v7 = vmul.f32 0.00390625, %v358_v4  ;;  %v1041_v14 = vld [vmem:[%s1181_s28 + $0x18] sm:$0xff]   ;;  %v901_v18 = vunpack.c.l.bf16 %v1039_v9  ;;  %v1043_v19 = vld [vmem:[%s1181_s28 + $0x28] sm:$0xff]   ;;  %v902_v21 = vunpack.c.h.bf16 %v1039_v9  ;;  %v905_v22 = vunpack.c.l.bf16 %v1040_v13 }
  0x13   : > { %v360_v8 = vmul.f32 %v357_v3, %v357_v3  ;;  %v897_v10 = vunpack.c.l.bf16 %v896_v6  ;;  %v1192_v12 = vrot.slane %v357_v3, %v366_v5  ;;  %v1042_v15 = vld [vmem:[%s1181_s28 + $0x20] sm:$0xff]   ;;  %v898_v16 = vunpack.c.h.bf16 %v896_v6  ;;  %v1044_v20 = vld [vmem:[%s1181_s28 + $0x30] sm:$0xff]   ;;  %v1045_v25 = vld [vmem:[%s1181_s28 + $0x38] sm:$0xff]  }
  0x14   : > { %v906_v23 = vunpack.c.h.bf16 %v1040_v13  ;;  %v909_v24 = vunpack.c.l.bf16 %v1041_v14  ;;  %v910_v28 = vunpack.c.h.bf16 %v1041_v14  ;;  %v913_v29 = vunpack.c.l.bf16 %v1042_v15  ;;  %v1046_v37 = vld [vmem:[%s1181_s28 + $0x40] sm:$0xff]   ;;  %v1047_v46 = vld [vmem:[%s1181_s28 + $0x48] sm:$0xff]   ;;  %v1048_v47 = vld [vmem:[%s1181_s28 + $0x50] sm:$0xff]  }
  0x15   : > { %v361_v11 = vsub.f32 %v359_v7, %v360_v8  ;;  %v1201_v26 = vsub.f32 %v897_v10, %v1192_v12  ;;  %v914_v30 = vunpack.c.h.bf16 %v1042_v15  ;;  %v917_v31 = vunpack.c.l.bf16 %v1043_v19  ;;  %v1049_v52 = vld [vmem:[%s1181_s28 + $0x58] sm:$0xff]   ;;  %v1050_v53 = vld [vmem:[%s1181_s28 + $0x60] sm:$0xff]   ;;  %v1051_v58 = vld [vmem:[%s1181_s28 + $0x68] sm:$0xff]  }
  0x16   : > { %v918_v32 = vunpack.c.h.bf16 %v1043_v19  ;;  %v921_v33 = vunpack.c.l.bf16 %v1044_v20  ;;  %v922_v34 = vunpack.c.h.bf16 %v1044_v20  ;;  %v925_v35 = vunpack.c.l.bf16 %v1045_v25  ;;  %v1052_v63 = vld [vmem:[%s1181_s28 + $0x70] sm:$0xff]   ;;  %v1053_v0 = vld [vmem:[%s1181_s28 + $0x78] sm:$0xff]  }
  0x17   : > { %v362_v17 = vmax.f32 %v361_v11, 0.0  ;;  %v926_v36 = vunpack.c.h.bf16 %v1045_v25  ;;  %v370_v38 = vsub.f32 %v898_v16, %v1192_v12  ;;  %v371_v39 = vsub.f32 %v901_v18, %v1192_v12 }
  0x18   : > { %v372_v40 = vsub.f32 %v902_v21, %v1192_v12  ;;  %v373_v41 = vsub.f32 %v905_v22, %v1192_v12  ;;  %v374_v42 = vsub.f32 %v906_v23, %v1192_v12  ;;  %v375_v43 = vsub.f32 %v909_v24, %v1192_v12 }
  0x19   : > { %v401_v27 = vadd.f32 1e-05, %v362_v17  ;;  %v376_v44 = vsub.f32 %v910_v28, %v1192_v12  ;;  %v1212_v45 = vsub.f32 %v913_v29, %v1192_v12  ;;  %v1217_v48 = vsub.f32 %v914_v30, %v1192_v12  ;;  %v1285_v30 = vld [vmem:[%s1460_s3] ss:$0 sm:$0xff] }
  0x1a   : > { %v1220_v49 = vsub.f32 %v917_v31, %v1192_v12  ;;  %v1223_v50 = vsub.f32 %v918_v32, %v1192_v12  ;;  %v929_v51 = vunpack.c.l.bf16 %v1046_v37  ;;  %v1228_v54 = vsub.f32 %v921_v33, %v1192_v12 }
  0x1b   : > { %1093 = vrsqrt.f32 %v401_v27  ;;  %v1231_v55 = vsub.f32 %v922_v34, %v1192_v12  ;;  %v1234_v56 = vsub.f32 %v925_v35, %v1192_v12  ;;  %v1237_v57 = vsub.f32 %v926_v36, %v1192_v12 }
  0x1c   : > { %v930_v59 = vunpack.c.h.bf16 %v1046_v37  ;;  %v933_v60 = vunpack.c.l.bf16 %v1047_v46  ;;  %v934_v61 = vunpack.c.h.bf16 %v1047_v46  ;;  %v937_v62 = vunpack.c.l.bf16 %v1048_v47  ;;  %v1307_v37 = vld [vmem:[%s1461_s4] ss:$0 sm:$0xff] }
  0x1d   : > { %v938_v2 = vunpack.c.h.bf16 %v1048_v47  ;;  %v941_v3 = vunpack.c.l.bf16 %v1049_v52  ;;  %v942_v4 = vunpack.c.h.bf16 %v1049_v52  ;;  %v945_v6 = vunpack.c.l.bf16 %v1050_v53 }
  0x1e   : > { %v1243_v7 = vsub.f32 %v929_v51, %v1192_v12  ;;  %v946_v8 = vunpack.c.h.bf16 %v1050_v53  ;;  %v949_v9 = vunpack.c.l.bf16 %v1051_v58  ;;  %v950_v10 = vunpack.c.h.bf16 %v1051_v58 }
  0x1f   : > { %v953_v11 = vunpack.c.l.bf16 %v1052_v63  ;;  %v954_v13 = vunpack.c.h.bf16 %v1052_v63  ;;  %v957_v14 = vunpack.c.l.bf16 %v1053_v0  ;;  %v958_v15 = vunpack.c.h.bf16 %v1053_v0 }
  0x20   : > { %v1246_v16 = vsub.f32 %v930_v59, %v1192_v12  ;;  %v1249_v17 = vsub.f32 %v933_v60, %v1192_v12  ;;  %v1252_v18 = vsub.f32 %v934_v61, %v1192_v12  ;;  %v1255_v19 = vsub.f32 %v937_v62, %v1192_v12 }
  0x21   : > { %v1258_v21 = vsub.f32 %v938_v2, %v1192_v12  ;;  %v1261_v22 = vsub.f32 %v941_v3, %v1192_v12  ;;  %v1264_v23 = vsub.f32 %v942_v4, %v1192_v12  ;;  %v1267_v24 = vsub.f32 %v945_v6, %v1192_v12 }
  0x22   : > { %v1274_v27 = vsub.f32 %v946_v8, %v1192_v12  ;;  %v1277_v28 = vsub.f32 %v949_v9, %v1192_v12  ;;  %v1280_v29 = vsub.f32 %v950_v10, %v1192_v12  ;;  %v1288_v31 = vsub.f32 %v953_v11, %v1192_v12 }
  0x23   : > { %v1291_v1 = vsub.f32 %v954_v13, %v1192_v12  ;;  %v1297_v32 = vsub.f32 %v958_v15, %v1192_v12 }
  0x25   : > { %v1094_v20 = vpop.eup %1093 }
  0x26   : > { %v1271_v25 = vrot.slane %v1094_v20, %v366_v5  ;;  %v1294_v5 = vsub.f32 %v957_v14, %v1192_v12 }
  0x28   : > { %v409_v33 = vmul.f32 %v1271_v25, %v1201_v26  ;;  %v410_v34 = vmul.f32 %v1271_v25, %v370_v38  ;;  %v411_v35 = vmul.f32 %v1271_v25, %v371_v39  ;;  %v412_v36 = vmul.f32 %v1271_v25, %v372_v40 }
  0x29   : > { %v413_v46 = vmul.f32 %v1271_v25, %v373_v41  ;;  %v414_v47 = vmul.f32 %v1271_v25, %v374_v42  ;;  %v415_v12 = vmul.f32 %v1271_v25, %v375_v43  ;;  %v416_v51 = vmul.f32 %v1271_v25, %v376_v44 }
  0x2a   : > { %v448_v26 = vmul.f32 %v1285_v30, %v409_v33  ;;  %v449_v38 = vmul.f32 %v1285_v30, %v410_v34  ;;  %v450_v39 = vmul.f32 %v1285_v30, %v411_v35  ;;  %v451_v40 = vmul.f32 %v1285_v30, %v412_v36 }
  0x2b   : > { %v452_v52 = vmul.f32 %v1285_v30, %v413_v46  ;;  %v453_v53 = vmul.f32 %v1285_v30, %v414_v47  ;;  %v454_v41 = vmul.f32 %v1285_v30, %v415_v12  ;;  %v455_v42 = vmul.f32 %v1285_v30, %v416_v51 }
  0x2c   : > { %v487_v43 = vadd.f32 %v1307_v37, %v448_v26  ;;  %v488_v44 = vadd.f32 %v1307_v37, %v449_v38  ;;  %v489_v58 = vadd.f32 %v1307_v37, %v450_v39  ;;  %v490_v59 = vadd.f32 %v1307_v37, %v451_v40 }
  0x2d   : > { %v491_v60 = vadd.f32 %v1307_v37, %v452_v52  ;;  %v492_v61 = vadd.f32 %v1307_v37, %v453_v53  ;;  %v493_v62 = vadd.f32 %v1307_v37, %v454_v41  ;;  %v494_v63 = vadd.f32 %v1307_v37, %v455_v42 }
  0x2e   : > { %v519_v0 = vmax.f32 %v487_v43, 0.0  ;;  %v520_v2 = vmax.f32 %v488_v44, 0.0  ;;  %v521_v3 = vmax.f32 %v489_v58, 0.0  ;;  %v522_v4 = vmax.f32 %v490_v59, 0.0 }
  0x2f   : > { %v523_v6 = vmax.f32 %v491_v60, 0.0  ;;  %v524_v8 = vmax.f32 %v492_v61, 0.0  ;;  %v525_v9 = vmax.f32 %v493_v62, 0.0  ;;  %v526_v10 = vmax.f32 %v494_v63, 0.0 }
  0x30   : > { %v962_v11 = vpack.c.bf16 %v520_v2, %v519_v0  ;;  %v967_v13 = vpack.c.bf16 %v522_v4, %v521_v3  ;;  %v417_v14 = vmul.f32 %v1271_v25, %v1212_v45  ;;  %v418_v15 = vmul.f32 %v1271_v25, %v1217_v48 }
  0x31   : > { %v972_v20 = vpack.c.bf16 %v524_v8, %v523_v6  ;;  %v977_v33 = vpack.c.bf16 %v526_v10, %v525_v9  ;;  %v419_v34 = vmul.f32 %v1271_v25, %v1220_v49  ;;  %v420_v35 = vmul.f32 %v1271_v25, %v1223_v50 }
  0x32   : > { %963 = vst [vmem:[%s1334_s13] sm:$0xff] %v962_v11   ;;  %1054 = vst [vmem:[%s1334_s13 + $0x8] sm:$0xff] %v967_v13   ;;  %v456_v36 = vmul.f32 %v1285_v30, %v417_v14  ;;  %v457_v46 = vmul.f32 %v1285_v30, %v418_v15  ;;  %v421_v45 = vmul.f32 %v1271_v25, %v1228_v54 }
  0x33   : > { %v422_v48 = vmul.f32 %v1271_v25, %v1231_v55  ;;  %1055 = vst [vmem:[%s1334_s13 + $0x10] sm:$0xff] %v972_v20   ;;  %1056 = vst [vmem:[%s1334_s13 + $0x18] sm:$0xff] %v977_v33   ;;  %v458_v47 = vmul.f32 %v1285_v30, %v419_v34  ;;  %v459_v49 = vmul.f32 %v1285_v30, %v420_v35 }
  0x34   : > { %v423_v50 = vmul.f32 %v1271_v25, %v1234_v56  ;;  %v424_v12 = vmul.f32 %v1271_v25, %v1237_v57  ;;  %v495_v51 = vadd.f32 %v1307_v37, %v456_v36  ;;  %v496_v26 = vadd.f32 %v1307_v37, %v457_v46 }
  0x35   : > { %v460_v54 = vmul.f32 %v1285_v30, %v421_v45  ;;  %v461_v55 = vmul.f32 %v1285_v30, %v422_v48  ;;  %v497_v38 = vadd.f32 %v1307_v37, %v458_v47  ;;  %v498_v39 = vadd.f32 %v1307_v37, %v459_v49 }
  0x36   : > { %v462_v40 = vmul.f32 %v1285_v30, %v423_v50  ;;  %v463_v52 = vmul.f32 %v1285_v30, %v424_v12  ;;  %v527_v56 = vmax.f32 %v495_v51, 0.0  ;;  %v528_v53 = vmax.f32 %v496_v26, 0.0 }
  0x37   : > { %v499_v57 = vadd.f32 %v1307_v37, %v460_v54  ;;  %v500_v41 = vadd.f32 %v1307_v37, %v461_v55  ;;  %v529_v42 = vmax.f32 %v497_v38, 0.0  ;;  %v530_v43 = vmax.f32 %v498_v39, 0.0 }
  0x38   : > { %v501_v44 = vadd.f32 %v1307_v37, %v462_v40  ;;  %v502_v58 = vadd.f32 %v1307_v37, %v463_v52  ;;  %v982_v59 = vpack.c.bf16 %v528_v53, %v527_v56  ;;  %v425_v62 = vmul.f32 %v1271_v25, %v1243_v7 }
  0x39   : > { %v531_v60 = vmax.f32 %v499_v57, 0.0  ;;  %v532_v61 = vmax.f32 %v500_v41, 0.0  ;;  %v987_v63 = vpack.c.bf16 %v530_v43, %v529_v42  ;;  %v426_v3 = vmul.f32 %v1271_v25, %v1246_v16 }
  0x3a   : > { %v533_v0 = vmax.f32 %v501_v44, 0.0  ;;  %v534_v2 = vmax.f32 %v502_v58, 0.0  ;;  %1057 = vst [vmem:[%s1334_s13 + $0x20] sm:$0xff] %v982_v59   ;;  %v464_v6 = vmul.f32 %v1285_v30, %v425_v62  ;;  %v427_v8 = vmul.f32 %v1271_v25, %v1249_v17 }
  0x3b   : > { %v992_v4 = vpack.c.bf16 %v532_v61, %v531_v60  ;;  %v428_v9 = vmul.f32 %v1271_v25, %v1252_v18  ;;  %1058 = vst [vmem:[%s1334_s13 + $0x28] sm:$0xff] %v987_v63   ;;  %v465_v7 = vmul.f32 %v1285_v30, %v426_v3  ;;  %v429_v11 = vmul.f32 %v1271_v25, %v1255_v19 }
  0x3c   : > { %v997_v10 = vpack.c.bf16 %v534_v2, %v533_v0  ;;  %v430_v16 = vmul.f32 %v1271_v25, %v1258_v21  ;;  %v503_v13 = vadd.f32 %v1307_v37, %v464_v6  ;;  %v466_v14 = vmul.f32 %v1285_v30, %v427_v8 }
  0x3d   : > { %1059 = vst [vmem:[%s1334_s13 + $0x30] sm:$0xff] %v992_v4   ;;  %v467_v17 = vmul.f32 %v1285_v30, %v428_v9  ;;  %v431_v18 = vmul.f32 %v1271_v25, %v1261_v22  ;;  %v504_v15 = vadd.f32 %v1307_v37, %v465_v7  ;;  %v468_v20 = vmul.f32 %v1285_v30, %v429_v11 }
  0x3e   : > { %1060 = vst [vmem:[%s1334_s13 + $0x38] sm:$0xff] %v997_v10   ;;  %v469_v19 = vmul.f32 %v1285_v30, %v430_v16  ;;  %v432_v21 = vmul.f32 %v1271_v25, %v1264_v23  ;;  %v535_v33 = vmax.f32 %v503_v13, 0.0  ;;  %v505_v34 = vadd.f32 %v1307_v37, %v466_v14 }
  0x3f   : > { %v506_v35 = vadd.f32 %v1307_v37, %v467_v17  ;;  %v470_v36 = vmul.f32 %v1285_v30, %v431_v18  ;;  %v536_v46 = vmax.f32 %v504_v15, 0.0  ;;  %v507_v22 = vadd.f32 %v1307_v37, %v468_v20 }
  0x40   : > { %v508_v45 = vadd.f32 %v1307_v37, %v469_v19  ;;  %v471_v48 = vmul.f32 %v1285_v30, %v432_v21  ;;  %v537_v47 = vmax.f32 %v505_v34, 0.0  ;;  %v433_v50 = vmul.f32 %v1271_v25, %v1267_v24 }
  0x41   : > { %v538_v49 = vmax.f32 %v506_v35, 0.0  ;;  %v509_v23 = vadd.f32 %v1307_v37, %v470_v36  ;;  %v1002_v12 = vpack.c.bf16 %v536_v46, %v535_v33  ;;  %v539_v51 = vmax.f32 %v507_v22, 0.0 }
  0x42   : > { %v540_v26 = vmax.f32 %v508_v45, 0.0  ;;  %v510_v54 = vadd.f32 %v1307_v37, %v471_v48  ;;  %v434_v39 = vmul.f32 %v1271_v25, %v1274_v27  ;;  %v472_v40 = vmul.f32 %v1285_v30, %v433_v50 }
  0x43   : > { %v1007_v55 = vpack.c.bf16 %v538_v49, %v537_v47  ;;  %v541_v38 = vmax.f32 %v509_v23, 0.0  ;;  %1061 = vst [vmem:[%s1334_s13 + $0x40] sm:$0xff] %v1002_v12   ;;  %v435_v53 = vmul.f32 %v1271_v25, %v1277_v28  ;;  %v436_v24 = vmul.f32 %v1271_v25, %v1280_v29 }
  0x44   : > { %v1012_v52 = vpack.c.bf16 %v540_v26, %v539_v51  ;;  %v542_v56 = vmax.f32 %v510_v54, 0.0  ;;  %v473_v57 = vmul.f32 %v1285_v30, %v434_v39  ;;  %v511_v41 = vadd.f32 %v1307_v37, %v472_v40 }
  0x45   : > { %1062 = vst [vmem:[%s1334_s13 + $0x48] sm:$0xff] %v1007_v55   ;;  %v437_v27 = vmul.f32 %v1271_v25, %v1288_v31  ;;  %v438_v42 = vmul.f32 %v1271_v25, %v1291_v1  ;;  %v474_v44 = vmul.f32 %v1285_v30, %v435_v53  ;;  %v475_v28 = vmul.f32 %v1285_v30, %v436_v24 }
  0x46   : > { %1063 = vst [vmem:[%s1334_s13 + $0x50] sm:$0xff] %v1012_v52   ;;  %v1017_v43 = vpack.c.bf16 %v542_v56, %v541_v38  ;;  %v439_v29 = vmul.f32 %v1271_v25, %v1294_v5  ;;  %v512_v58 = vadd.f32 %v1307_v37, %v473_v57  ;;  %v543_v59 = vmax.f32 %v511_v41, 0.0 }
  0x47   : > { %v476_v60 = vmul.f32 %v1285_v30, %v437_v27  ;;  %v477_v61 = vmul.f32 %v1285_v30, %v438_v42  ;;  %v513_v31 = vadd.f32 %v1307_v37, %v474_v44  ;;  %v514_v1 = vadd.f32 %v1307_v37, %v475_v28 }
  0x48   : > { %1064 = vst [vmem:[%s1334_s13 + $0x58] sm:$0xff] %v1017_v43   ;;  %v440_v62 = vmul.f32 %v1271_v25, %v1297_v32  ;;  %v478_v63 = vmul.f32 %v1285_v30, %v439_v29  ;;  %v544_v5 = vmax.f32 %v512_v58, 0.0 }
  0x49   : > { %v515_v0 = vadd.f32 %v1307_v37, %v476_v60  ;;  %v516_v2 = vadd.f32 %v1307_v37, %v477_v61  ;;  %v545_v3 = vmax.f32 %v513_v31, 0.0  ;;  %v546_v4 = vmax.f32 %v514_v1, 0.0 }
  0x4a   : > { %v479_v6 = vmul.f32 %v1285_v30, %v440_v62  ;;  %v517_v8 = vadd.f32 %v1307_v37, %v478_v63  ;;  %v1022_v9 = vpack.c.bf16 %v544_v5, %v543_v59 }
  0x4b   : > { %v547_v10 = vmax.f32 %v515_v0, 0.0  ;;  %v548_v7 = vmax.f32 %v516_v2, 0.0  ;;  %v1027_v25 = vpack.c.bf16 %v546_v4, %v545_v3 }
  0x4c   : > { %v518_v32 = vadd.f32 %v1307_v37, %v479_v6  ;;  %v549_v11 = vmax.f32 %v517_v8, 0.0  ;;  %1065 = vst [vmem:[%s1334_s13 + $0x60] sm:$0xff] %v1022_v9  }
  0x4d   : > { %v1032_v16 = vpack.c.bf16 %v548_v7, %v547_v10  ;;  %1066 = vst [vmem:[%s1334_s13 + $0x68] sm:$0xff] %v1027_v25  }
  0x4e   : > { %v550_v13 = vmax.f32 %v518_v32, 0.0 }
  0x4f   : > { %1067 = vst [vmem:[%s1334_s13 + $0x70] sm:$0xff] %v1032_v16  }
  0x50   : > { %v1037_v14 = vpack.c.bf16 %v550_v13, %v549_v11 }
  0x52   : > { %1068 = vst [vmem:[%s1334_s13 + $0x78] sm:$0xff] %v1037_v14  }
  0x53 PF: > { %s15_s20 = sadd.s32 1, %s1117_s20   ;;  %s1463_s18 = smov %s1113_s19 }
  0x54   : > { %p12_p5 = scmp.ge.s32.totalorder %s15_s20, 4   ;;  %s1464_s19 = smov %s1466_s21 }
  0x56   :  { %14 = sbr.rel (!%p12_p5) target bundleno = 2 (0x2), region = 76 }

// kernel: generator_forward.19
= control target key start
LH: loop header
LB: loop body
LE: loop exit
PB: predicated region body
PF: predicated region fallthrough
CT: control target
= control target key end

     0   :  { %s2357_s15 = smov 0   ;;  %s2359_s16 = smov 0   ;;  %s2586_s0 = inlined_call_operand.vmem [shape: bf16[2,256,512], index: 0, kind: input, shape index: {}]   ;;  %s2587_s1 = inlined_call_operand.vmem [shape: bf16[512,128], index: 1, kind: input, shape index: {}]   ;;  %s2588_s2 = inlined_call_operand.vmem [shape: bf16[2,256,128], index: 2, kind: output, shape index: {0}]   ;;  %s2589_s3 = inlined_call_operand.vmem [shape: f32[2,1,128], index: 3, kind: output, shape index: {1}]   ;;  %s2590_s4 = inlined_call_operand.vmem [shape: f32[2,1,128], index: 4, kind: output, shape index: {2}]  }
   0x1   :  { %s2361_s17 = smov 0  }
   0x2 LB: > { %s27_s18 = sadd.s32 1, %s2326_s16  ;;  %p1668_p0 = scmp.ge.s32.totalorder %s2330_s17, 1  ;;  %s2330_s17 = sphi %s2361_s17, %s15_s17   ;;  %s2326_s16 = sphi %s2359_s16, %s2592_s16   ;;  %s2322_s15 = sphi %s2357_s15, %s2591_s15  }
   0x3   : > { %p29_p1 = scmp.ge.s32.totalorder %s27_s18, 2  ;;  %p193_p2 = scmp.lt.s32.totalorder %s2330_s17, 3 }
   0x5   : > { %s2594_s18 = smov (%p29_p1, %s27_s18), 0  ;;  %p194_p3 = pnand %p1668_p0, %p193_p2 }
   0x6   : > { %v2180_v0 = vld [vmem:[%s2587_s1 + $0x40] sm:$0xff] (!%p194_p3)   ;;  %v2184_v4 = vld [vmem:[%s2587_s1 + $0x48] sm:$0xff] (!%p194_p3)   ;;  %v2188_v8 = vld [vmem:[%s2587_s1 + $0x50] sm:$0xff] (!%p194_p3)   ;;  %p241_p4 = scmp.lt.s32.totalorder (!%p194_p3), %s2322_s15, 1 }
   0x7   : > { %197 = sbr.rel (%p194_p3) target bundleno = 397 (0x18d), region = 28  ;;  %v2181_v1 = vld [vmem:[%s2587_s1 + $0xc0] sm:$0xff] (!%p194_p3)   ;;  %1932 = vmatprep.subr.bf16.mxu0 (!%p194_p3), %v2180_v0  ;;  %v2185_v5 = vld [vmem:[%s2587_s1 + $0xc8] sm:$0xff] (!%p194_p3)   ;;  %v2189_v9 = vld [vmem:[%s2587_s1 + $0xd0] sm:$0xff] (!%p194_p3)  }
   0x8   : > { %v2182_v2 = vld [vmem:[%s2587_s1] sm:$0xff] (!%p194_p3)   ;;  %2044 = vmatprep.subr.bf16.mxu1 (!%p194_p3), %v2181_v1  ;;  %v2186_v6 = vld [vmem:[%s2587_s1 + $0x8] sm:$0xff] (!%p194_p3)   ;;  %v2190_v10 = vld [vmem:[%s2587_s1 + $0x10] sm:$0xff] (!%p194_p3)  }
   0x9   : > { %v2183_v3 = vld [vmem:[%s2587_s1 + $0x80] sm:$0xff] (!%p194_p3)   ;;  %1933 = vmatpush3.bf16.msra.mxu0 (!%p194_p3), %v2182_v2  ;;  %v2187_v7 = vld [vmem:[%s2587_s1 + $0x88] sm:$0xff] (!%p194_p3)   ;;  %v2191_v11 = vld [vmem:[%s2587_s1 + $0x90] sm:$0xff] (!%p194_p3)  }
   0xa   : > { %2045 = vmatpush3.bf16.msra.mxu1 (!%p194_p3), %v2183_v3  ;;  %1934 = vmatprep.subr.bf16.mxu0 (!%p194_p3), %v2184_v4  ;;  %v2192_v12 = vld [vmem:[%s2587_s1 + $0x58] sm:$0xff] (!%p194_p3)   ;;  %v2196_v16 = vld [vmem:[%s2587_s1 + $0x60] sm:$0xff] (!%p194_p3)   ;;  %v2200_v20 = vld [vmem:[%s2587_s1 + $0x68] sm:$0xff] (!%p194_p3)  }
   0xb   : > { %2046 = vmatprep.subr.bf16.mxu1 (!%p194_p3), %v2185_v5  ;;  %v2193_v13 = vld [vmem:[%s2587_s1 + $0xd8] sm:$0xff] (!%p194_p3)   ;;  %v2197_v17 = vld [vmem:[%s2587_s1 + $0xe0] sm:$0xff] (!%p194_p3)   ;;  %v2201_v21 = vld [vmem:[%s2587_s1 + $0xe8] sm:$0xff] (!%p194_p3)  }
   0xc   : > { %v2194_v14 = vld [vmem:[%s2587_s1 + $0x18] sm:$0xff] (!%p194_p3)   ;;  %v2198_v18 = vld [vmem:[%s2587_s1 + $0x20] sm:$0xff] (!%p194_p3)   ;;  %v2202_v22 = vld [vmem:[%s2587_s1 + $0x28] sm:$0xff] (!%p194_p3)  }
   0xd   : > { %1935 = vmatpush3.bf16.msra.mxu0 (!%p194_p3), %v2186_v6  ;;  %v2195_v15 = vld [vmem:[%s2587_s1 + $0x98] sm:$0xff] (!%p194_p3)   ;;  %v2199_v19 = vld [vmem:[%s2587_s1 + $0xa0] sm:$0xff] (!%p194_p3)   ;;  %v2203_v23 = vld [vmem:[%s2587_s1 + $0xa8] sm:$0xff] (!%p194_p3)  }
   0xe   : > { %2047 = vmatpush3.bf16.msra.mxu1 %v2187_v7  ;;  %1936 = vmatprep.subr.bf16.mxu0 %v2188_v8  ;;  %s2596_s15 = smov (!%p241_p4, %s2322_s15), 1  ;;  %v2204_v24 = vld [vmem:[%s2587_s1 + $0x70] sm:$0xff]   ;;  %v2208_v28 = vld [vmem:[%s2587_s1 + $0x78] sm:$0xff]  }
   0xf   : > { %2048 = vmatprep.subr.bf16.mxu1 %v2189_v9  ;;  %v2205_v25 = vld [vmem:[%s2587_s1 + $0xf0] sm:$0xff]   ;;  %s1803_s29 = sshll.u32 %s2596_s15, 9  ;;  %v2209_v29 = vld [vmem:[%s2587_s1 + $0xf8] sm:$0xff]   ;;  %s1804_s21 = sshll.u32 %s2596_s15, 7 }
  0x10   : > { %v2206_v26 = vld [vmem:[%s2587_s1 + $0x30] sm:$0xff]   ;;  %s2475_s12 = scalar_lea.vmem %s2586_s0, %s1803_s29  ;;  %v2210_v30 = vld [vmem:[%s2587_s1 + $0x38] sm:$0xff]   ;;  %s2551_s24 = scalar_lea.vmem %s2588_s2, %s1804_s21 }
  0x11   : > { %1937 = vmatpush3.bf16.msra.mxu0 %v2190_v10  ;;  %v2207_v27 = vld [vmem:[%s2587_s1 + $0xb0] sm:$0xff]   ;;  %v2211_v31 = vld [vmem:[%s2587_s1 + $0xb8] sm:$0xff]   ;;  %s266_s27 = scalar_lea.vmem %s2589_s3, %s2596_s15  ;;  %s272_s30 = scalar_lea.vmem %s2590_s4, %s2596_s15 }
  0x12   : > { %2049 = vmatpush3.bf16.msra.mxu1 %v2191_v11  ;;  %1938 = vmatprep.subr.bf16.mxu0 %v2192_v12  ;;  %v2212_v32 = vld [vmem:[%s2475_s12] ss:$16 sps:$4 sm:$0xff]   ;;  %v2214_v33 = vld [vmem:[%s2475_s12 + $0x4] ss:$16 sps:$4 sm:$0xff]   ;;  %v2215_v34 = vld [vmem:[%s2475_s12 + $0x8] ss:$16 sps:$4 sm:$0xff]  }
  0x13   : > { %2050 = vmatprep.subr.bf16.mxu1 %v2193_v13  ;;  %v2217_v35 = vld [vmem:[%s2475_s12 + $0xc] ss:$16 sps:$4 sm:$0xff]   ;;  %946 = vmatprep.mubr.bf16.mxu0 %v2214_v33  ;;  %v2218_v36 = vld [vmem:[%s2475_s12 + $0x24] ss:$16 sps:$4 sm:$0xff]   ;;  %v2222_v38 = vld [vmem:[%s2475_s12 + $0x20] ss:$16 sps:$4 sm:$0xff]  }
  0x14   : > { %1107 = vmatprep.mubr.bf16.mxu1 %v2217_v35  ;;  %v2220_v37 = vld [vmem:[%s2475_s12 + $0x2c] ss:$16 sps:$4 sm:$0xff]   ;;  %v2223_v39 = vld [vmem:[%s2475_s12 + $0x28] ss:$16 sps:$4 sm:$0xff]   ;;  %v2224_v40 = vld [vmem:[%s2475_s12 + $0x44] ss:$16 sps:$4 sm:$0xff]  }
  0x15   : > { %1939 = vmatpush3.bf16.msra.mxu0 %v2194_v14  ;;  %v2226_v41 = vld [vmem:[%s2475_s12 + $0x4c] ss:$16 sps:$4 sm:$0xff]   ;;  %v2228_v42 = vld [vmem:[%s2475_s12 + $0x40] ss:$16 sps:$4 sm:$0xff]   ;;  %v2229_v43 = vld [vmem:[%s2475_s12 + $0x48] ss:$16 sps:$4 sm:$0xff]  }
  0x16   : > { %2051 = vmatpush3.bf16.msra.mxu1 %v2195_v15  ;;  %1940 = vmatprep.subr.bf16.mxu0 %v2196_v16  ;;  %v2230_v44 = vld [vmem:[%s2475_s12 + $0x64] ss:$16 sps:$4 sm:$0xff]   ;;  %v2232_v45 = vld [vmem:[%s2475_s12 + $0x6c] ss:$16 sps:$4 sm:$0xff]   ;;  %v2234_v46 = vld [vmem:[%s2475_s12 + $0x60] ss:$16 sps:$4 sm:$0xff]  }
  0x17   : > { %2052 = vmatprep.subr.bf16.mxu1 %v2197_v17  ;;  %v2235_v47 = vld [vmem:[%s2475_s12 + $0x68] ss:$16 sps:$4 sm:$0xff]   ;;  %v2236_v48 = vld [vmem:[%s2475_s12 + $0x84] ss:$16 sps:$4 sm:$0xff]   ;;  %v2238_v49 = vld [vmem:[%s2475_s12 + $0x8c] ss:$16 sps:$4 sm:$0xff]  }
  0x18   : > { %v2240_v50 = vld [vmem:[%s2475_s12 + $0x80] ss:$16 sps:$4 sm:$0xff]   ;;  %v2241_v51 = vld [vmem:[%s2475_s12 + $0x88] ss:$16 sps:$4 sm:$0xff]   ;;  %v2242_v52 = vld [vmem:[%s2475_s12 + $0xa4] ss:$16 sps:$4 sm:$0xff]  }
  0x19   : > { %1941 = vmatpush3.bf16.msra.mxu0 %v2198_v18  ;;  %v2244_v53 = vld [vmem:[%s2475_s12 + $0xac] ss:$16 sps:$4 sm:$0xff]   ;;  %v2246_v54 = vld [vmem:[%s2475_s12 + $0xa0] ss:$16 sps:$4 sm:$0xff]   ;;  %v2247_v55 = vld [vmem:[%s2475_s12 + $0xa8] ss:$16 sps:$4 sm:$0xff]  }
  0x1a   : > { %2053 = vmatpush3.bf16.msra.mxu1 %v2199_v19  ;;  %1942 = vmatprep.subr.bf16.mxu0 %v2200_v20  ;;  %v2248_v56 = vld [vmem:[%s2475_s12 + $0xc4] ss:$16 sps:$4 sm:$0xff]   ;;  %v2250_v57 = vld [vmem:[%s2475_s12 + $0xcc] ss:$16 sps:$4 sm:$0xff]   ;;  %v2252_v58 = vld [vmem:[%s2475_s12 + $0xc0] ss:$16 sps:$4 sm:$0xff]  }
  0x1b   : > { %2054 = vmatprep.subr.bf16.mxu1 %v2201_v21  ;;  %v2253_v59 = vld [vmem:[%s2475_s12 + $0xc8] ss:$16 sps:$4 sm:$0xff]   ;;  %v2254_v60 = vld [vmem:[%s2475_s12 + $0xe4] ss:$16 sps:$4 sm:$0xff]   ;;  %v2256_v61 = vld [vmem:[%s2475_s12 + $0xec] ss:$16 sps:$4 sm:$0xff]  }
  0x1c   : > { %v2258_v62 = vld [vmem:[%s2475_s12 + $0xe0] ss:$16 sps:$4 sm:$0xff]   ;;  %v2259_v63 = vld [vmem:[%s2475_s12 + $0xe8] ss:$16 sps:$4 sm:$0xff]   ;;  %v2260_v0 = vld [vmem:[%s2475_s12 + $0x104] ss:$16 sps:$4 sm:$0xff]  }
  0x1d   : > { %1943 = vmatpush3.bf16.msra.mxu0 %v2202_v22  ;;  %v2262_v1 = vld [vmem:[%s2475_s12 + $0x10c] ss:$16 sps:$4 sm:$0xff]   ;;  %v2264_v2 = vld [vmem:[%s2475_s12 + $0x100] ss:$16 sps:$4 sm:$0xff]   ;;  %v2265_v3 = vld [vmem:[%s2475_s12 + $0x108] ss:$16 sps:$4 sm:$0xff]  }
  0x1e   : > { %2055 = vmatpush3.bf16.msra.mxu1 %v2203_v23  ;;  %1944 = vmatprep.subr.bf16.mxu0 %v2204_v24  ;;  %v2266_v4 = vld [vmem:[%s2475_s12 + $0x124] ss:$16 sps:$4 sm:$0xff]   ;;  %v2268_v5 = vld [vmem:[%s2475_s12 + $0x12c] ss:$16 sps:$4 sm:$0xff]   ;;  %v2270_v6 = vld [vmem:[%s2475_s12 + $0x120] ss:$16 sps:$4 sm:$0xff]  }
  0x1f   : > { %2056 = vmatprep.subr.bf16.mxu1 %v2205_v25  ;;  %v2271_v7 = vld [vmem:[%s2475_s12 + $0x128] ss:$16 sps:$4 sm:$0xff]   ;;  %v2272_v8 = vld [vmem:[%s2475_s12 + $0x144] ss:$16 sps:$4 sm:$0xff]   ;;  %v2274_v9 = vld [vmem:[%s2475_s12 + $0x14c] ss:$16 sps:$4 sm:$0xff]  }
  0x20   : > { %v2276_v10 = vld [vmem:[%s2475_s12 + $0x140] ss:$16 sps:$4 sm:$0xff]   ;;  %v2277_v11 = vld [vmem:[%s2475_s12 + $0x148] ss:$16 sps:$4 sm:$0xff]   ;;  %v2278_v12 = vld [vmem:[%s2475_s12 + $0x164] ss:$16 sps:$4 sm:$0xff]  }
  0x21   : > { %1945 = vmatpush3.bf16.msra.mxu0 %v2206_v26  ;;  %v2280_v13 = vld [vmem:[%s2475_s12 + $0x16c] ss:$16 sps:$4 sm:$0xff]   ;;  %v2282_v14 = vld [vmem:[%s2475_s12 + $0x160] ss:$16 sps:$4 sm:$0xff]   ;;  %v2283_v15 = vld [vmem:[%s2475_s12 + $0x168] ss:$16 sps:$4 sm:$0xff]  }
  0x22   : > { %2057 = vmatpush3.bf16.msra.mxu1 %v2207_v27  ;;  %1946 = vmatprep.subr.bf16.mxu0 %v2208_v28  ;;  %v2284_v16 = vld [vmem:[%s2475_s12 + $0x184] ss:$16 sps:$4 sm:$0xff]   ;;  %v2286_v17 = vld [vmem:[%s2475_s12 + $0x18c] ss:$16 sps:$4 sm:$0xff]   ;;  %v2288_v18 = vld [vmem:[%s2475_s12 + $0x180] ss:$16 sps:$4 sm:$0xff]  }
  0x23   : > { %2058 = vmatprep.subr.bf16.mxu1 %v2209_v29  ;;  %v2289_v19 = vld [vmem:[%s2475_s12 + $0x188] ss:$16 sps:$4 sm:$0xff]   ;;  %v2290_v20 = vld [vmem:[%s2475_s12 + $0x1a4] ss:$16 sps:$4 sm:$0xff]   ;;  %v2292_v21 = vld [vmem:[%s2475_s12 + $0x1ac] ss:$16 sps:$4 sm:$0xff]  }
  0x24   : > { %v2294_v22 = vld [vmem:[%s2475_s12 + $0x1a0] ss:$16 sps:$4 sm:$0xff]   ;;  %v2295_v23 = vld [vmem:[%s2475_s12 + $0x1a8] ss:$16 sps:$4 sm:$0xff]   ;;  %v2296_v24 = vld [vmem:[%s2475_s12 + $0x1c4] ss:$16 sps:$4 sm:$0xff]  }
  0x25   : > { %1947 = vmatpush3.bf16.msra.mxu0 %v2210_v30  ;;  %v2298_v25 = vld [vmem:[%s2475_s12 + $0x1cc] ss:$16 sps:$4 sm:$0xff]   ;;  %v2300_v26 = vld [vmem:[%s2475_s12 + $0x1c0] ss:$16 sps:$4 sm:$0xff]   ;;  %v2301_v27 = vld [vmem:[%s2475_s12 + $0x1c8] ss:$16 sps:$4 sm:$0xff]  }
  0x26   : > { %2059 = vmatpush3.bf16.msra.mxu1 %v2211_v31  ;;  %v2302_v28 = vld [vmem:[%s2475_s12 + $0x1e4] ss:$16 sps:$4 sm:$0xff]   ;;  %v2304_v29 = vld [vmem:[%s2475_s12 + $0x1ec] ss:$16 sps:$4 sm:$0xff]   ;;  %v2306_v30 = vld [vmem:[%s2475_s12 + $0x1e0] ss:$16 sps:$4 sm:$0xff]  }
  0x27   : > { %v2307_v31 = vld [vmem:[%s2475_s12 + $0x1e8] ss:$16 sps:$4 sm:$0xff]  }
  0x28   : > { %947 = vmatmul.mubr.bf16.vlgmr.msra.gmra.mrb[0].mxu0 %v2212_v32 }
  0x29   : > { %1108 = vmatmul.mubr.bf16.vlgmr.msra.gmra.mrb[0].mxu1 %v2215_v34  ;;  %954 = vmatprep.mubr.bf16.mxu0 %v2218_v36 }
  0x2a   : > { %1115 = vmatprep.mubr.bf16.mxu1 %v2220_v37 }
  0x30   : > { %955 = vmatmul.mubr.bf16.gmra.mrb[4].mxu0 %v2222_v38 }
  0x31   : > { %1116 = vmatmul.mubr.bf16.gmra.mrb[4].mxu1 %v2223_v39  ;;  %962 = vmatprep.mubr.bf16.mxu0 %v2224_v40 }
  0x32   : > { %1123 = vmatprep.mubr.bf16.mxu1 %v2226_v41 }
  0x38   : > { %963 = vmatmul.mubr.bf16.gmra.mrb[8].mxu0 %v2228_v42 }
  0x39   : > { %1124 = vmatmul.mubr.bf16.gmra.mrb[8].mxu1 %v2229_v43  ;;  %970 = vmatprep.mubr.bf16.mxu0 %v2230_v44 }
  0x3a   : > { %1131 = vmatprep.mubr.bf16.mxu1 %v2232_v45 }
  0x40   : > { %971 = vmatmul.mubr.bf16.gmra.mrb[12].mxu0 %v2234_v46 }
  0x41   : > { %1132 = vmatmul.mubr.bf16.gmra.mrb[12].mxu1 %v2235_v47  ;;  %978 = vmatprep.mubr.bf16.mxu0 %v2236_v48 }
  0x42   : > { %1139 = vmatprep.mubr.bf16.mxu1 %v2238_v49 }
  0x48   : > { %979 = vmatmul.mubr.bf16.gmra.mrb[16].mxu0 %v2240_v50 }
  0x49   : > { %1140 = vmatmul.mubr.bf16.gmra.mrb[16].mxu1 %v2241_v51  ;;  %986 = vmatprep.mubr.bf16.mxu0 %v2242_v52 }
  0x4a   : > { %1147 = vmatprep.mubr.bf16.mxu1 %v2244_v53 }
  0x50   : > { %987 = vmatmul.mubr.bf16.gmra.mrb[20].mxu0 %v2246_v54 }
  0x51   : > { %1148 = vmatmul.mubr.bf16.gmra.mrb[20].mxu1 %v2247_v55  ;;  %994 = vmatprep.mubr.bf16.mxu0 %v2248_v56 }
  0x52   : > { %1155 = vmatprep.mubr.bf16.mxu1 %v2250_v57 }
  0x58   : > { %995 = vmatmul.mubr.bf16.gmra.mrb[24].mxu0 %v2252_v58 }
  0x59   : > { %1156 = vmatmul.mubr.bf16.gmra.mrb[24].mxu1 %v2253_v59  ;;  %1002 = vmatprep.mubr.bf16.mxu0 %v2254_v60 }
  0x5a   : > { %1163 = vmatprep.mubr.bf16.mxu1 %v2256_v61 }
  0x60   : > { %1003 = vmatmul.mubr.bf16.gmra.mrb[28].mxu0 %v2258_v62 }
  0x61   : > { %1164 = vmatmul.mubr.bf16.gmra.mrb[28].mxu1 %v2259_v63  ;;  %1010 = vmatprep.mubr.bf16.mxu0 %v2260_v0 }
  0x62   : > { %1171 = vmatprep.mubr.bf16.mxu1 %v2262_v1 }
  0x68   : > { %1011 = vmatmul.mubr.bf16.gmra.mrb[32].mxu0 %v2264_v2 }
  0x69   : > { %1172 = vmatmul.mubr.bf16.gmra.mrb[32].mxu1 %v2265_v3  ;;  %1018 = vmatprep.mubr.bf16.mxu0 %v2266_v4 }
  0x6a   : > { %1179 = vmatprep.mubr.bf16.mxu1 %v2268_v5 }
  0x70   : > { %1019 = vmatmul.mubr.bf16.gmra.mrb[36].mxu0 %v2270_v6 }
  0x71   : > { %1180 = vmatmul.mubr.bf16.gmra.mrb[36].mxu1 %v2271_v7  ;;  %1026 = vmatprep.mubr.bf16.mxu0 %v2272_v8 }
  0x72   : > { %1187 = vmatprep.mubr.bf16.mxu1 %v2274_v9 }
  0x78   : > { %1027 = vmatmul.mubr.bf16.gmra.mrb[40].mxu0 %v2276_v10 }
  0x79   : > { %1188 = vmatmul.mubr.bf16.gmra.mrb[40].mxu1 %v2277_v11  ;;  %1034 = vmatprep.mubr.bf16.mxu0 %v2278_v12 }
  0x7a   : > { %1195 = vmatprep.mubr.bf16.mxu1 %v2280_v13 }
  0x80   : > { %1035 = vmatmul.mubr.bf16.gmra.mrb[44].mxu0 %v2282_v14 }
  0x81   : > { %1196 = vmatmul.mubr.bf16.gmra.mrb[44].mxu1 %v2283_v15  ;;  %1042 = vmatprep.mubr.bf16.mxu0 %v2284_v16 }
  0x82   : > { %1203 = vmatprep.mubr.bf16.mxu1 %v2286_v17 }
  0x88   : > { %1043 = vmatmul.mubr.bf16.gmra.mrb[48].mxu0 %v2288_v18 }
  0x89   : > { %1204 = vmatmul.mubr.bf16.gmra.mrb[48].mxu1 %v2289_v19  ;;  %1050 = vmatprep.mubr.bf16.mxu0 %v2290_v20 }
  0x8a   : > { %1211 = vmatprep.mubr.bf16.mxu1 %v2292_v21 }
  0x90   : > { %1051 = vmatmul.mubr.bf16.gmra.mrb[52].mxu0 %v2294_v22 }
  0x91   : > { %1212 = vmatmul.mubr.bf16.gmra.mrb[52].mxu1 %v2295_v23  ;;  %1058 = vmatprep.mubr.bf16.mxu0 %v2296_v24 }
  0x92   : > { %1219 = vmatprep.mubr.bf16.mxu1 %v2298_v25 }
  0x98   : > { %1059 = vmatmul.mubr.bf16.gmra.mrb[56].mxu0 %v2300_v26 }
  0x99   : > { %1220 = vmatmul.mubr.bf16.gmra.mrb[56].mxu1 %v2301_v27  ;;  %1066 = vmatprep.mubr.bf16.mxu0 %v2302_v28 }
  0x9a   : > { %1227 = vmatprep.mubr.bf16.mxu1 %v2304_v29 }
  0xa0   : > { %1067 = vmatmul.mubr.bf16.gmra.mrb[60].mxu0 %v2306_v30 }
  0xa1   : > { %1228 = vmatmul.mubr.bf16.gmra.mrb[60].mxu1 %v2307_v31 }
  0xfb   : > { %v1948_v32 = vpop.f32.mrb[0].mxu0 }
  0xfc   : > { %v2060_v33 = vpop.f32.mrb[0].mxu1  ;;  %v1949_v34 = vpop.f32.mrb[1].mxu0 }
  0xfd   : > { %v1950_v35 = vadd.f32 %v1949_v34, %v1948_v32  ;;  %v2061_v36 = vpop.f32.mrb[1].mxu1  ;;  %v1951_v37 = vpop.f32.mrb[2].mxu0 }
  0xfe   : > { %v2062_v38 = vadd.f32 %v2061_v36, %v2060_v33  ;;  %v2063_v39 = vpop.f32.mrb[2].mxu1  ;;  %v1952_v40 = vpop.f32.mrb[3].mxu0 }
  0xff   : > { %v1953_v41 = vadd.f32 %v1952_v40, %v1951_v37  ;;  %v2064_v42 = vpop.f32.mrb[3].mxu1 }
 0x100   : > { %v1110_v43 = vadd.f32 %v2062_v38, %v1950_v35  ;;  %v2065_v44 = vadd.f32 %v2064_v42, %v2063_v39 }
 0x102   : > { %v1113_v45 = vadd.f32 %v2065_v44, %v1953_v41  ;;  %v1434_v47 = vmul.f32 %v1110_v43, %v1110_v43 }
 0x103   : > { %v1954_v46 = vpop.f32.mrb[4].mxu0 }
 0x104   : > { %v1840_v48 = vpack.c.bf16 %v1113_v45, %v1110_v43  ;;  %v1396_v49 = vadd.f32 %v1113_v45, %v1110_v43  ;;  %v1435_v50 = vmul.f32 %v1113_v45, %v1113_v45  ;;  %v2066_v51 = vpop.f32.mrb[4].mxu1  ;;  %v1955_v52 = vpop.f32.mrb[5].mxu0 }
 0x105   : > { %v1956_v53 = vadd.f32 %v1955_v52, %v1954_v46  ;;  %v2067_v54 = vpop.f32.mrb[5].mxu1  ;;  %v1957_v55 = vpop.f32.mrb[6].mxu0 }
 0x106   : > { %1841 = vst [vmem:[%s2551_s24] sm:$0xff] %v1840_v48   ;;  %v1466_v56 = vadd.f32 %v1435_v50, %v1434_v47  ;;  %v2068_v57 = vadd.f32 %v2067_v54, %v2066_v51  ;;  %v2069_v58 = vpop.f32.mrb[6].mxu1  ;;  %v1958_v59 = vpop.f32.mrb[7].mxu0 }
 0x107   : > { %v1959_v60 = vadd.f32 %v1958_v59, %v1957_v55  ;;  %v2070_v61 = vpop.f32.mrb[7].mxu1 }
 0x108   : > { %v1118_v62 = vadd.f32 %v2068_v57, %v1956_v53  ;;  %v2071_v63 = vadd.f32 %v2070_v61, %v2069_v58 }
 0x10a   : > { %v1397_v0 = vadd.f32 %v1396_v49, %v1118_v62  ;;  %v1436_v1 = vmul.f32 %v1118_v62, %v1118_v62  ;;  %v1121_v2 = vadd.f32 %v2071_v63, %v1959_v60 }
 0x10b   : > { %v1960_v3 = vpop.f32.mrb[8].mxu0 }
 0x10c   : > { %v1467_v4 = vadd.f32 %v1466_v56, %v1436_v1  ;;  %v1845_v5 = vpack.c.bf16 %v1121_v2, %v1118_v62  ;;  %v1398_v6 = vadd.f32 %v1397_v0, %v1121_v2  ;;  %v1437_v7 = vmul.f32 %v1121_v2, %v1121_v2  ;;  %v2072_v8 = vpop.f32.mrb[8].mxu1  ;;  %v1961_v9 = vpop.f32.mrb[9].mxu0 }
 0x10d   : > { %v1962_v10 = vadd.f32 %v1961_v9, %v1960_v3  ;;  %v2073_v11 = vpop.f32.mrb[9].mxu1  ;;  %v1963_v12 = vpop.f32.mrb[10].mxu0 }
 0x10e   : > { %1917 = vst [vmem:[%s2551_s24 + $0x8] sm:$0xff] %v1845_v5   ;;  %v1468_v13 = vadd.f32 %v1467_v4, %v1437_v7  ;;  %v2074_v14 = vadd.f32 %v2073_v11, %v2072_v8  ;;  %v2075_v15 = vpop.f32.mrb[10].mxu1  ;;  %v1964_v16 = vpop.f32.mrb[11].mxu0 }
 0x10f   : > { %v1965_v17 = vadd.f32 %v1964_v16, %v1963_v12  ;;  %v2076_v18 = vpop.f32.mrb[11].mxu1 }
 0x110   : > { %v1126_v19 = vadd.f32 %v2074_v14, %v1962_v10  ;;  %v2077_v20 = vadd.f32 %v2076_v18, %v2075_v15 }
 0x112   : > { %v1399_v21 = vadd.f32 %v1398_v6, %v1126_v19  ;;  %v1438_v22 = vmul.f32 %v1126_v19, %v1126_v19  ;;  %v1129_v23 = vadd.f32 %v2077_v20, %v1965_v17 }
 0x113   : > { %v1966_v24 = vpop.f32.mrb[12].mxu0 }
 0x114   : > { %v1469_v25 = vadd.f32 %v1468_v13, %v1438_v22  ;;  %v1850_v26 = vpack.c.bf16 %v1129_v23, %v1126_v19  ;;  %v1400_v27 = vadd.f32 %v1399_v21, %v1129_v23  ;;  %v1439_v28 = vmul.f32 %v1129_v23, %v1129_v23  ;;  %v2078_v29 = vpop.f32.mrb[12].mxu1  ;;  %v1967_v30 = vpop.f32.mrb[13].mxu0 }
 0x115   : > { %v1968_v31 = vadd.f32 %v1967_v30, %v1966_v24  ;;  %v2079_v32 = vpop.f32.mrb[13].mxu1  ;;  %v1969_v33 = vpop.f32.mrb[14].mxu0 }
 0x116   : > { %1918 = vst [vmem:[%s2551_s24 + $0x10] sm:$0xff] %v1850_v26   ;;  %v1470_v34 = vadd.f32 %v1469_v25, %v1439_v28  ;;  %v2080_v35 = vadd.f32 %v2079_v32, %v2078_v29  ;;  %v2081_v36 = vpop.f32.mrb[14].mxu1  ;;  %v1970_v37 = vpop.f32.mrb[15].mxu0 }
 0x117   : > { %v1971_v38 = vadd.f32 %v1970_v37, %v1969_v33  ;;  %v2082_v39 = vpop.f32.mrb[15].mxu1 }
 0x118   : > { %v1134_v40 = vadd.f32 %v2080_v35, %v1968_v31  ;;  %v2083_v41 = vadd.f32 %v2082_v39, %v2081_v36 }
 0x11a   : > { %v1401_v42 = vadd.f32 %v1400_v27, %v1134_v40  ;;  %v1440_v43 = vmul.f32 %v1134_v40, %v1134_v40  ;;  %v1137_v44 = vadd.f32 %v2083_v41, %v1971_v38 }
 0x11b   : > { %v1972_v45 = vpop.f32.mrb[16].mxu0 }
 0x11c   : > { %v1471_v46 = vadd.f32 %v1470_v34, %v1440_v43  ;;  %v1855_v47 = vpack.c.bf16 %v1137_v44, %v1134_v40  ;;  %v1402_v48 = vadd.f32 %v1401_v42, %v1137_v44  ;;  %v1441_v49 = vmul.f32 %v1137_v44, %v1137_v44  ;;  %v2084_v50 = vpop.f32.mrb[16].mxu1  ;;  %v1973_v51 = vpop.f32.mrb[17].mxu0 }
 0x11d   : > { %v1974_v52 = vadd.f32 %v1973_v51, %v1972_v45  ;;  %v2085_v53 = vpop.f32.mrb[17].mxu1  ;;  %v1975_v54 = vpop.f32.mrb[18].mxu0 }
 0x11e   : > { %1919 = vst [vmem:[%s2551_s24 + $0x18] sm:$0xff] %v1855_v47   ;;  %v1472_v55 = vadd.f32 %v1471_v46, %v1441_v49  ;;  %v2086_v56 = vadd.f32 %v2085_v53, %v2084_v50  ;;  %v2087_v57 = vpop.f32.mrb[18].mxu1  ;;  %v1976_v58 = vpop.f32.mrb[19].mxu0 }
 0x11f   : > { %v1977_v59 = vadd.f32 %v1976_v58, %v1975_v54  ;;  %v2088_v60 = vpop.f32.mrb[19].mxu1 }
 0x120   : > { %v1142_v61 = vadd.f32 %v2086_v56, %v1974_v52  ;;  %v2089_v62 = vadd.f32 %v2088_v60, %v2087_v57 }
 0x122   : > { %v1403_v63 = vadd.f32 %v1402_v48, %v1142_v61  ;;  %v1442_v0 = vmul.f32 %v1142_v61, %v1142_v61  ;;  %v1145_v1 = vadd.f32 %v2089_v62, %v1977_v59 }
 0x123   : > { %v1978_v2 = vpop.f32.mrb[20].mxu0 }
 0x124   : > { %v1473_v3 = vadd.f32 %v1472_v55, %v1442_v0  ;;  %v1860_v4 = vpack.c.bf16 %v1145_v1, %v1142_v61  ;;  %v1404_v5 = vadd.f32 %v1403_v63, %v1145_v1  ;;  %v1443_v6 = vmul.f32 %v1145_v1, %v1145_v1  ;;  %v2090_v7 = vpop.f32.mrb[20].mxu1  ;;  %v1979_v8 = vpop.f32.mrb[21].mxu0 }
 0x125   : > { %v1980_v9 = vadd.f32 %v1979_v8, %v1978_v2  ;;  %v2091_v10 = vpop.f32.mrb[21].mxu1  ;;  %v1981_v11 = vpop.f32.mrb[22].mxu0 }
 0x126   : > { %1920 = vst [vmem:[%s2551_s24 + $0x20] sm:$0xff] %v1860_v4   ;;  %v1474_v12 = vadd.f32 %v1473_v3, %v1443_v6  ;;  %v2092_v13 = vadd.f32 %v2091_v10, %v2090_v7  ;;  %v2093_v14 = vpop.f32.mrb[22].mxu1  ;;  %v1982_v15 = vpop.f32.mrb[23].mxu0 }
 0x127   : > { %v1983_v16 = vadd.f32 %v1982_v15, %v1981_v11  ;;  %v2094_v17 = vpop.f32.mrb[23].mxu1 }
 0x128   : > { %v1150_v18 = vadd.f32 %v2092_v13, %v1980_v9  ;;  %v2095_v19 = vadd.f32 %v2094_v17, %v2093_v14 }
 0x12a   : > { %v1405_v20 = vadd.f32 %v1404_v5, %v1150_v18  ;;  %v1444_v21 = vmul.f32 %v1150_v18, %v1150_v18  ;;  %v1153_v22 = vadd.f32 %v2095_v19, %v1983_v16 }
 0x12b   : > { %v1984_v23 = vpop.f32.mrb[24].mxu0 }
 0x12c   : > { %v1475_v24 = vadd.f32 %v1474_v12, %v1444_v21  ;;  %v1865_v25 = vpack.c.bf16 %v1153_v22, %v1150_v18  ;;  %v1406_v26 = vadd.f32 %v1405_v20, %v1153_v22  ;;  %v1445_v27 = vmul.f32 %v1153_v22, %v1153_v22  ;;  %v2096_v28 = vpop.f32.mrb[24].mxu1  ;;  %v1985_v29 = vpop.f32.mrb[25].mxu0 }
 0x12d   : > { %v1986_v30 = vadd.f32 %v1985_v29, %v1984_v23  ;;  %v2097_v31 = vpop.f32.mrb[25].mxu1  ;;  %v1987_v32 = vpop.f32.mrb[26].mxu0 }
 0x12e   : > { %1921 = vst [vmem:[%s2551_s24 + $0x28] sm:$0xff] %v1865_v25   ;;  %v1476_v33 = vadd.f32 %v1475_v24, %v1445_v27  ;;  %v2098_v34 = vadd.f32 %v2097_v31, %v2096_v28  ;;  %v2099_v35 = vpop.f32.mrb[26].mxu1  ;;  %v1988_v36 = vpop.f32.mrb[27].mxu0 }
 0x12f   : > { %v1989_v37 = vadd.f32 %v1988_v36, %v1987_v32  ;;  %v2100_v38 = vpop.f32.mrb[27].mxu1 }
 0x130   : > { %v1158_v39 = vadd.f32 %v2098_v34, %v1986_v30  ;;  %v2101_v40 = vadd.f32 %v2100_v38, %v2099_v35 }
 0x132   : > { %v1407_v41 = vadd.f32 %v1406_v26, %v1158_v39  ;;  %v1446_v42 = vmul.f32 %v1158_v39, %v1158_v39  ;;  %v1161_v43 = vadd.f32 %v2101_v40, %v1989_v37 }
 0x133   : > { %v1990_v44 = vpop.f32.mrb[28].mxu0 }
 0x134   : > { %v1477_v45 = vadd.f32 %v1476_v33, %v1446_v42  ;;  %v1870_v46 = vpack.c.bf16 %v1161_v43, %v1158_v39  ;;  %v1408_v47 = vadd.f32 %v1407_v41, %v1161_v43  ;;  %v1447_v48 = vmul.f32 %v1161_v43, %v1161_v43  ;;  %v2102_v49 = vpop.f32.mrb[28].mxu1  ;;  %v1991_v50 = vpop.f32.mrb[29].mxu0 }
 0x135   : > { %v1992_v51 = vadd.f32 %v1991_v50, %v1990_v44  ;;  %v2103_v52 = vpop.f32.mrb[29].mxu1  ;;  %v1993_v53 = vpop.f32.mrb[30].mxu0 }
 0x136   : > { %1922 = vst [vmem:[%s2551_s24 + $0x30] sm:$0xff] %v1870_v46   ;;  %v1478_v54 = vadd.f32 %v1477_v45, %v1447_v48  ;;  %v2104_v55 = vadd.f32 %v2103_v52, %v2102_v49  ;;  %v2105_v56 = vpop.f32.mrb[30].mxu1  ;;  %v1994_v57 = vpop.f32.mrb[31].mxu0 }
 0x137   : > { %v1995_v58 = vadd.f32 %v1994_v57, %v1993_v53  ;;  %v2106_v59 = vpop.f32.mrb[31].mxu1 }
 0x138   : > { %v1166_v60 = vadd.f32 %v2104_v55, %v1992_v51  ;;  %v2107_v61 = vadd.f32 %v2106_v59, %v2105_v56 }
 0x13a   : > { %v1409_v62 = vadd.f32 %v1408_v47, %v1166_v60  ;;  %v1448_v63 = vmul.f32 %v1166_v60, %v1166_v60  ;;  %v1169_v0 = vadd.f32 %v2107_v61, %v1995_v58 }
 0x13b   : > { %v1996_v1 = vpop.f32.mrb[32].mxu0 }
 0x13c   : > { %v1479_v2 = vadd.f32 %v1478_v54, %v1448_v63  ;;  %v1875_v3 = vpack.c.bf16 %v1169_v0, %v1166_v60  ;;  %v1410_v4 = vadd.f32 %v1409_v62, %v1169_v0  ;;  %v1449_v5 = vmul.f32 %v1169_v0, %v1169_v0  ;;  %v2108_v6 = vpop.f32.mrb[32].mxu1  ;;  %v1997_v7 = vpop.f32.mrb[33].mxu0 }
 0x13d   : > { %v1998_v8 = vadd.f32 %v1997_v7, %v1996_v1  ;;  %v2109_v9 = vpop.f32.mrb[33].mxu1  ;;  %v1999_v10 = vpop.f32.mrb[34].mxu0 }
 0x13e   : > { %1923 = vst [vmem:[%s2551_s24 + $0x38] sm:$0xff] %v1875_v3   ;;  %v1480_v11 = vadd.f32 %v1479_v2, %v1449_v5  ;;  %v2110_v12 = vadd.f32 %v2109_v9, %v2108_v6  ;;  %v2111_v13 = vpop.f32.mrb[34].mxu1  ;;  %v2000_v14 = vpop.f32.mrb[35].mxu0 }
 0x13f   : > { %v2001_v15 = vadd.f32 %v2000_v14, %v1999_v10  ;;  %v2112_v16 = vpop.f32.mrb[35].mxu1 }
 0x140   : > { %v1174_v17 = vadd.f32 %v2110_v12, %v1998_v8  ;;  %v2113_v18 = vadd.f32 %v2112_v16, %v2111_v13 }
 0x142   : > { %v1411_v19 = vadd.f32 %v1410_v4, %v1174_v17  ;;  %v1450_v20 = vmul.f32 %v1174_v17, %v1174_v17  ;;  %v1177_v21 = vadd.f32 %v2113_v18, %v2001_v15 }
 0x143   : > { %v2002_v22 = vpop.f32.mrb[36].mxu0 }
 0x144   : > { %v1481_v23 = vadd.f32 %v1480_v11, %v1450_v20  ;;  %v1880_v24 = vpack.c.bf16 %v1177_v21, %v1174_v17  ;;  %v1412_v25 = vadd.f32 %v1411_v19, %v1177_v21  ;;  %v1451_v26 = vmul.f32 %v1177_v21, %v1177_v21  ;;  %v2114_v27 = vpop.f32.mrb[36].mxu1  ;;  %v2003_v28 = vpop.f32.mrb[37].mxu0 }
 0x145   : > { %v2004_v29 = vadd.f32 %v2003_v28, %v2002_v22  ;;  %v2115_v30 = vpop.f32.mrb[37].mxu1  ;;  %v2005_v31 = vpop.f32.mrb[38].mxu0 }
 0x146   : > { %1924 = vst [vmem:[%s2551_s24 + $0x40] sm:$0xff] %v1880_v24   ;;  %v1482_v32 = vadd.f32 %v1481_v23, %v1451_v26  ;;  %v2116_v33 = vadd.f32 %v2115_v30, %v2114_v27  ;;  %v2117_v34 = vpop.f32.mrb[38].mxu1  ;;  %v2006_v35 = vpop.f32.mrb[39].mxu0 }
 0x147   : > { %v2007_v36 = vadd.f32 %v2006_v35, %v2005_v31  ;;  %v2118_v37 = vpop.f32.mrb[39].mxu1 }
 0x148   : > { %v1182_v38 = vadd.f32 %v2116_v33, %v2004_v29  ;;  %v2119_v39 = vadd.f32 %v2118_v37, %v2117_v34 }
 0x14a   : > { %v1413_v40 = vadd.f32 %v1412_v25, %v1182_v38  ;;  %v1452_v41 = vmul.f32 %v1182_v38, %v1182_v38  ;;  %v1185_v42 = vadd.f32 %v2119_v39, %v2007_v36 }
 0x14b   : > { %v2008_v43 = vpop.f32.mrb[40].mxu0 }
 0x14c   : > { %v1483_v44 = vadd.f32 %v1482_v32, %v1452_v41  ;;  %v1885_v45 = vpack.c.bf16 %v1185_v42, %v1182_v38  ;;  %v1414_v46 = vadd.f32 %v1413_v40, %v1185_v42  ;;  %v1453_v47 = vmul.f32 %v1185_v42, %v1185_v42  ;;  %v2120_v48 = vpop.f32.mrb[40].mxu1  ;;  %v2009_v49 = vpop.f32.mrb[41].mxu0 }
 0x14d   : > { %v2010_v50 = vadd.f32 %v2009_v49, %v2008_v43  ;;  %v2121_v51 = vpop.f32.mrb[41].mxu1  ;;  %v2011_v52 = vpop.f32.mrb[42].mxu0 }
 0x14e   : > { %1925 = vst [vmem:[%s2551_s24 + $0x48] sm:$0xff] %v1885_v45   ;;  %v1484_v53 = vadd.f32 %v1483_v44, %v1453_v47  ;;  %v2122_v54 = vadd.f32 %v2121_v51, %v2120_v48  ;;  %v2123_v55 = vpop.f32.mrb[42].mxu1  ;;  %v2012_v56 = vpop.f32.mrb[43].mxu0 }
 0x14f   : > { %v2013_v57 = vadd.f32 %v2012_v56, %v2011_v52  ;;  %v2124_v58 = vpop.f32.mrb[43].mxu1 }
 0x150   : > { %v1190_v59 = vadd.f32 %v2122_v54, %v2010_v50  ;;  %v2125_v60 = vadd.f32 %v2124_v58, %v2123_v55 }
 0x152   : > { %v1415_v61 = vadd.f32 %v1414_v46, %v1190_v59  ;;  %v1454_v62 = vmul.f32 %v1190_v59, %v1190_v59  ;;  %v1193_v63 = vadd.f32 %v2125_v60, %v2013_v57 }
 0x153   : > { %v2014_v0 = vpop.f32.mrb[44].mxu0 }
 0x154   : > { %v1485_v1 = vadd.f32 %v1484_v53, %v1454_v62  ;;  %v1890_v2 = vpack.c.bf16 %v1193_v63, %v1190_v59  ;;  %v1416_v3 = vadd.f32 %v1415_v61, %v1193_v63  ;;  %v1455_v4 = vmul.f32 %v1193_v63, %v1193_v63  ;;  %v2126_v5 = vpop.f32.mrb[44].mxu1  ;;  %v2015_v6 = vpop.f32.mrb[45].mxu0 }
 0x155   : > { %v2016_v7 = vadd.f32 %v2015_v6, %v2014_v0  ;;  %v2127_v8 = vpop.f32.mrb[45].mxu1  ;;  %v2017_v9 = vpop.f32.mrb[46].mxu0 }
 0x156   : > { %1926 = vst [vmem:[%s2551_s24 + $0x50] sm:$0xff] %v1890_v2   ;;  %v1486_v10 = vadd.f32 %v1485_v1, %v1455_v4  ;;  %v2128_v11 = vadd.f32 %v2127_v8, %v2126_v5  ;;  %v2129_v12 = vpop.f32.mrb[46].mxu1  ;;  %v2018_v13 = vpop.f32.mrb[47].mxu0 }
 0x157   : > { %v2019_v14 = vadd.f32 %v2018_v13, %v2017_v9  ;;  %v2130_v15 = vpop.f32.mrb[47].mxu1 }
 0x158   : > { %v1198_v16 = vadd.f32 %v2128_v11, %v2016_v7  ;;  %v2131_v17 = vadd.f32 %v2130_v15, %v2129_v12 }
 0x15a   : > { %v1417_v18 = vadd.f32 %v1416_v3, %v1198_v16  ;;  %v1456_v19 = vmul.f32 %v1198_v16, %v1198_v16  ;;  %v1201_v20 = vadd.f32 %v2131_v17, %v2019_v14 }
 0x15b   : > { %v2020_v21 = vpop.f32.mrb[48].mxu0 }
 0x15c   : > { %v1487_v22 = vadd.f32 %v1486_v10, %v1456_v19  ;;  %v1895_v23 = vpack.c.bf16 %v1201_v20, %v1198_v16  ;;  %v1418_v24 = vadd.f32 %v1417_v18, %v1201_v20  ;;  %v1457_v25 = vmul.f32 %v1201_v20, %v1201_v20  ;;  %v2132_v26 = vpop.f32.mrb[48].mxu1  ;;  %v2021_v27 = vpop.f32.mrb[49].mxu0 }
 0x15d   : > { %v2022_v28 = vadd.f32 %v2021_v27, %v2020_v21  ;;  %v2133_v29 = vpop.f32.mrb[49].mxu1  ;;  %v2023_v30 = vpop.f32.mrb[50].mxu0 }
 0x15e   : > { %1927 = vst [vmem:[%s2551_s24 + $0x58] sm:$0xff] %v1895_v23   ;;  %v1488_v31 = vadd.f32 %v1487_v22, %v1457_v25  ;;  %v2134_v32 = vadd.f32 %v2133_v29, %v2132_v26  ;;  %v2135_v33 = vpop.f32.mrb[50].mxu1  ;;  %v2024_v34 = vpop.f32.mrb[51].mxu0 }
 0x15f   : > { %v2025_v35 = vadd.f32 %v2024_v34, %v2023_v30  ;;  %v2136_v36 = vpop.f32.mrb[51].mxu1 }
 0x160   : > { %v1206_v37 = vadd.f32 %v2134_v32, %v2022_v28  ;;  %v2137_v38 = vadd.f32 %v2136_v36, %v2135_v33 }
 0x162   : > { %v1419_v39 = vadd.f32 %v1418_v24, %v1206_v37  ;;  %v1458_v40 = vmul.f32 %v1206_v37, %v1206_v37  ;;  %v1209_v41 = vadd.f32 %v2137_v38, %v2025_v35 }
 0x163   : > { %v2026_v42 = vpop.f32.mrb[52].mxu0 }
 0x164   : > { %v1489_v43 = vadd.f32 %v1488_v31, %v1458_v40  ;;  %v1900_v44 = vpack.c.bf16 %v1209_v41, %v1206_v37  ;;  %v1420_v45 = vadd.f32 %v1419_v39, %v1209_v41  ;;  %v1459_v46 = vmul.f32 %v1209_v41, %v1209_v41  ;;  %v2138_v47 = vpop.f32.mrb[52].mxu1  ;;  %v2027_v48 = vpop.f32.mrb[53].mxu0 }
 0x165   : > { %v2028_v49 = vadd.f32 %v2027_v48, %v2026_v42  ;;  %v2139_v50 = vpop.f32.mrb[53].mxu1  ;;  %v2029_v51 = vpop.f32.mrb[54].mxu0 }
 0x166   : > { %1928 = vst [vmem:[%s2551_s24 + $0x60] sm:$0xff] %v1900_v44   ;;  %v1490_v52 = vadd.f32 %v1489_v43, %v1459_v46  ;;  %v2140_v53 = vadd.f32 %v2139_v50, %v2138_v47  ;;  %v2141_v54 = vpop.f32.mrb[54].mxu1  ;;  %v2030_v55 = vpop.f32.mrb[55].mxu0 }
 0x167   : > { %v2031_v56 = vadd.f32 %v2030_v55, %v2029_v51  ;;  %v2142_v57 = vpop.f32.mrb[55].mxu1 }
 0x168   : > { %v1214_v58 = vadd.f32 %v2140_v53, %v2028_v49  ;;  %v2143_v59 = vadd.f32 %v2142_v57, %v2141_v54 }
 0x16a   : > { %v1421_v60 = vadd.f32 %v1420_v45, %v1214_v58  ;;  %v1460_v61 = vmul.f32 %v1214_v58, %v1214_v58  ;;  %v1217_v62 = vadd.f32 %v2143_v59, %v2031_v56 }
 0x16b   : > { %v2032_v63 = vpop.f32.mrb[56].mxu0 }
 0x16c   : > { %v1491_v0 = vadd.f32 %v1490_v52, %v1460_v61  ;;  %v1905_v1 = vpack.c.bf16 %v1217_v62, %v1214_v58  ;;  %v1422_v2 = vadd.f32 %v1421_v60, %v1217_v62  ;;  %v1461_v3 = vmul.f32 %v1217_v62, %v1217_v62  ;;  %v2144_v4 = vpop.f32.mrb[56].mxu1  ;;  %v2033_v5 = vpop.f32.mrb[57].mxu0 }
 0x16d   : > { %v2034_v6 = vadd.f32 %v2033_v5, %v2032_v63  ;;  %v2145_v7 = vpop.f32.mrb[57].mxu1  ;;  %v2035_v8 = vpop.f32.mrb[58].mxu0 }
 0x16e   : > { %1929 = vst [vmem:[%s2551_s24 + $0x68] sm:$0xff] %v1905_v1   ;;  %v1492_v9 = vadd.f32 %v1491_v0, %v1461_v3  ;;  %v2146_v10 = vadd.f32 %v2145_v7, %v2144_v4  ;;  %v2147_v11 = vpop.f32.mrb[58].mxu1  ;;  %v2036_v12 = vpop.f32.mrb[59].mxu0 }
 0x16f   : > { %v2037_v13 = vadd.f32 %v2036_v12, %v2035_v8  ;;  %v2148_v14 = vpop.f32.mrb[59].mxu1 }
 0x170   : > { %v1222_v15 = vadd.f32 %v2146_v10, %v2034_v6  ;;  %v2149_v16 = vadd.f32 %v2148_v14, %v2147_v11 }
 0x172   : > { %v1423_v17 = vadd.f32 %v1422_v2, %v1222_v15  ;;  %v1462_v18 = vmul.f32 %v1222_v15, %v1222_v15  ;;  %v1225_v19 = vadd.f32 %v2149_v16, %v2037_v13 }
 0x173   : > { %v2038_v20 = vpop.f32.mrb[60].mxu0 }
 0x174   : > { %v1493_v21 = vadd.f32 %v1492_v9, %v1462_v18  ;;  %v1910_v22 = vpack.c.bf16 %v1225_v19, %v1222_v15  ;;  %v1424_v23 = vadd.f32 %v1423_v17, %v1225_v19  ;;  %v1463_v24 = vmul.f32 %v1225_v19, %v1225_v19  ;;  %v2150_v25 = vpop.f32.mrb[60].mxu1  ;;  %v2039_v26 = vpop.f32.mrb[61].mxu0 }
 0x175   : > { %v2040_v27 = vadd.f32 %v2039_v26, %v2038_v20  ;;  %v2151_v28 = vpop.f32.mrb[61].mxu1  ;;  %v2041_v29 = vpop.f32.mrb[62].mxu0 }
 0x176   : > { %1930 = vst [vmem:[%s2551_s24 + $0x70] sm:$0xff] %v1910_v22   ;;  %v1494_v30 = vadd.f32 %v1493_v21, %v1463_v24  ;;  %v2152_v31 = vadd.f32 %v2151_v28, %v2150_v25  ;;  %v2153_v32 = vpop.f32.mrb[62].mxu1  ;;  %v2042_v33 = vpop.f32.mrb[63].mxu0 }
 0x177   : > { %v2043_v34 = vadd.f32 %v2042_v33, %v2041_v29  ;;  %v2154_v35 = vpop.f32.mrb[63].mxu1 }
 0x178   : > { %v1230_v36 = vadd.f32 %v2152_v31, %v2040_v27  ;;  %v2155_v37 = vadd.f32 %v2154_v35, %v2153_v32 }
 0x17a   : > { %v1425_v38 = vadd.f32 %v1424_v23, %v1230_v36  ;;  %v1464_v39 = vmul.f32 %v1230_v36, %v1230_v36  ;;  %v1233_v40 = vadd.f32 %v2155_v37, %v2043_v34 }
 0x17c   : > { %v1495_v41 = vadd.f32 %v1494_v30, %v1464_v39  ;;  %v1915_v42 = vpack.c.bf16 %v1233_v40, %v1230_v36  ;;  %v1426_v43 = vadd.f32 %v1425_v38, %v1233_v40  ;;  %v1465_v44 = vmul.f32 %v1233_v40, %v1233_v40 }
 0x17e   : > { %1931 = vst [vmem:[%s2551_s24 + $0x78] sm:$0xff] %v1915_v42   ;;  %v1427_v45 = vrot.slane %v1426_v43, 4  ;;  %v1496_v46 = vadd.f32 %v1495_v41, %v1465_v44 }
 0x180   : > { %v1428_v47 = vadd.f32 %v1427_v45, %v1426_v43  ;;  %v1497_v48 = vrot.slane %v1496_v46, 4 }
 0x182   : > { %v1429_v49 = vrot.slane %v1428_v47, 2  ;;  %v1498_v50 = vadd.f32 %v1497_v48, %v1496_v46 }
 0x184   : > { %v1430_v51 = vadd.f32 %v1429_v49, %v1428_v47  ;;  %v1499_v52 = vrot.slane %v1498_v50, 2 }
 0x186   : > { %v1431_v53 = vrot.slane %v1430_v51, 1  ;;  %v1500_v54 = vadd.f32 %v1499_v52, %v1498_v50 }
 0x188   : > { %v1432_v55 = vadd.f32 %v1431_v53, %v1430_v51  ;;  %v1501_v56 = vrot.slane %v1500_v54, 1 }
 0x18a   : > { %1433 = vst [vmem:[%s266_s27] sm:$0x1] %v1432_v55  ;;  %v1502_v57 = vadd.f32 %v1501_v56, %v1500_v54 }
 0x18c   : > { %1503 = vst [vmem:[%s272_s30] sm:$0x1] %v1502_v57 }
 0x18d PF: > { %s15_s17 = sadd.s32 1, %s2330_s17   ;;  %s2591_s15 = smov %s2326_s16 }
 0x18e   : > { %p12_p5 = scmp.ge.s32.totalorder %s15_s17, 4   ;;  %s2592_s16 = smov %s2594_s18 }
 0x190   :  { %14 = sbr.rel (!%p12_p5) target bundleno = 2 (0x2), region = 82 }

// kernel: generator_forward.21
= control target key start
LH: loop header
LB: loop body
LE: loop exit
PB: predicated region body
PF: predicated region fallthrough
CT: control target
= control target key end

     0   :  { %s984_s15 = smov 0   ;;  %s986_s16 = smov 0   ;;  %s1093_s0 = inlined_call_operand.vmem [shape: bf16[2,64,256], index: 0, kind: input, shape index: {}]   ;;  %s1094_s1 = inlined_call_operand.vmem [shape: bf16[256,128], index: 1, kind: input, shape index: {}]   ;;  %s1095_s2 = inlined_call_operand.vmem [shape: bf16[2,64,128], index: 2, kind: output, shape index: {0}]   ;;  %s1096_s3 = inlined_call_operand.vmem [shape: f32[2,1,128], index: 3, kind: output, shape index: {1}]   ;;  %s1097_s4 = inlined_call_operand.vmem [shape: f32[2,1,128], index: 4, kind: output, shape index: {2}]  }
   0x1   :  { %s988_s17 = smov 0  }
   0x2 LB: > { %s27_s18 = sadd.s32 1, %s953_s16  ;;  %p755_p0 = scmp.ge.s32.totalorder %s957_s17, 1  ;;  %s957_s17 = sphi %s988_s17, %s15_s17   ;;  %s953_s16 = sphi %s986_s16, %s1099_s16   ;;  %s949_s15 = sphi %s984_s15, %s1098_s15  }
   0x3   : > { %p29_p1 = scmp.ge.s32.totalorder %s27_s18, 2  ;;  %p193_p2 = scmp.lt.s32.totalorder %s957_s17, 3 }
   0x5   : > { %s1101_s18 = smov (%p29_p1, %s27_s18), 0  ;;  %p194_p3 = pnand %p755_p0, %p193_p2 }
   0x6   : > { %v907_v0 = vld [vmem:[%s1094_s1 + $0x40] sm:$0xff] (!%p194_p3)   ;;  %v909_v2 = vld [vmem:[%s1094_s1 + $0x48] sm:$0xff] (!%p194_p3)   ;;  %p241_p4 = scmp.lt.s32.totalorder (!%p194_p3), %s949_s15, 1  ;;  %v911_v4 = vld [vmem:[%s1094_s1 + $0x50] sm:$0xff] (!%p194_p3)  }
   0x7   : > { %197 = sbr.rel (%p194_p3) target bundleno = 289 (0x121), region = 28  ;;  %v908_v1 = vld [vmem:[%s1094_s1] sm:$0xff] (!%p194_p3)   ;;  %827 = vmatprep.subr.bf16.mxu0 (!%p194_p3), %v907_v0  ;;  %867 = vmatprep.subr.bf16.mxu1 (!%p194_p3), %v907_v0  ;;  %v910_v3 = vld [vmem:[%s1094_s1 + $0x8] sm:$0xff] (!%p194_p3)   ;;  %v912_v5 = vld [vmem:[%s1094_s1 + $0x10] sm:$0xff] (!%p194_p3)  }
   0x8   : > { %828 = vmatpush3.bf16.msra.mxu0 (!%p194_p3), %v908_v1  ;;  %875 = vmatpush3.bf16.msra.mxu1 (!%p194_p3), %v908_v1  ;;  %v913_v6 = vld [vmem:[%s1094_s1 + $0x58] sm:$0xff] (!%p194_p3)   ;;  %v915_v8 = vld [vmem:[%s1094_s1 + $0x60] sm:$0xff] (!%p194_p3)   ;;  %v917_v10 = vld [vmem:[%s1094_s1 + $0x68] sm:$0xff] (!%p194_p3)  }
   0x9   : > { %829 = vmatprep.subr.bf16.mxu0 (!%p194_p3), %v909_v2  ;;  %868 = vmatprep.subr.bf16.mxu1 (!%p194_p3), %v909_v2  ;;  %v914_v7 = vld [vmem:[%s1094_s1 + $0x18] sm:$0xff] (!%p194_p3)   ;;  %v916_v9 = vld [vmem:[%s1094_s1 + $0x20] sm:$0xff] (!%p194_p3)   ;;  %v918_v13 = vld [vmem:[%s1094_s1 + $0x28] sm:$0xff] (!%p194_p3)  }
   0xa   : > { %v919_v14 = vld [vmem:[%s1094_s1 + $0x70] sm:$0xff] (!%p194_p3)   ;;  %v921_v16 = vld [vmem:[%s1094_s1 + $0x78] sm:$0xff] (!%p194_p3)  }
   0xb   : > { %v920_v15 = vld [vmem:[%s1094_s1 + $0x30] sm:$0xff] (!%p194_p3)   ;;  %v922_v17 = vld [vmem:[%s1094_s1 + $0x38] sm:$0xff] (!%p194_p3)  }
   0xc   : > { %830 = vmatpush3.bf16.msra.mxu0 (!%p194_p3), %v910_v3  ;;  %876 = vmatpush3.bf16.msra.mxu1 (!%p194_p3), %v910_v3 }
   0xd   : > { %831 = vmatprep.subr.bf16.mxu0 (!%p194_p3), %v911_v4  ;;  %869 = vmatprep.subr.bf16.mxu1 (!%p194_p3), %v911_v4 }
   0xe   : > { %s1103_s15 = smov (!%p241_p4, %s949_s15), 1 }
   0xf   : > { %s794_s9 = sshll.u32 %s1103_s15, 6  ;;  %s795_s7 = sshll.u32 %s1103_s15, 5 }
  0x10   : > { %832 = vmatpush3.bf16.msra.mxu0 %v912_v5  ;;  %877 = vmatpush3.bf16.msra.mxu1 %v912_v5  ;;  %s1035_s14 = scalar_lea.vmem %s1093_s0, %s794_s9  ;;  %s1070_s10 = scalar_lea.vmem %s1095_s2, %s795_s7 }
  0x11   : > { %833 = vmatprep.subr.bf16.mxu0 %v913_v6  ;;  %870 = vmatprep.subr.bf16.mxu1 %v913_v6  ;;  %v925_v11 = vld [vmem:[%s1035_s14 + $0x4] ss:$8 sps:$4 sm:$0xff]   ;;  %v923_v18 = vld [vmem:[%s1035_s14] ss:$8 sps:$4 sm:$0xff]   ;;  %v929_v20 = vld [vmem:[%s1035_s14 + $0x14] ss:$8 sps:$4 sm:$0xff]   ;;  %s266_s13 = scalar_lea.vmem %s1096_s3, %s1103_s15  ;;  %s272_s20 = scalar_lea.vmem %s1097_s4, %s1103_s15 }
  0x12   : > { %v928_v12 = vld [vmem:[%s1035_s14 + $0x24] ss:$8 sps:$4 sm:$0xff]   ;;  %482 = vmatprep.mubr.bf16.mxu0 %v925_v11  ;;  %v926_v19 = vld [vmem:[%s1035_s14 + $0x20] ss:$8 sps:$4 sm:$0xff]   ;;  %v932_v21 = vld [vmem:[%s1035_s14 + $0x34] ss:$8 sps:$4 sm:$0xff]  }
  0x13   : > { %498 = vmatprep.mubr.bf16.mxu1 %v928_v12  ;;  %v931_v22 = vld [vmem:[%s1035_s14 + $0x10] ss:$8 sps:$4 sm:$0xff]  }
  0x14   : > { %834 = vmatpush3.bf16.msra.mxu0 %v914_v7  ;;  %878 = vmatpush3.bf16.msra.mxu1 %v914_v7  ;;  %v934_v23 = vld [vmem:[%s1035_s14 + $0x30] ss:$8 sps:$4 sm:$0xff]  }
  0x15   : > { %835 = vmatprep.subr.bf16.mxu0 %v915_v8  ;;  %871 = vmatprep.subr.bf16.mxu1 %v915_v8 }
  0x18   : > { %836 = vmatpush3.bf16.msra.mxu0 %v916_v9  ;;  %879 = vmatpush3.bf16.msra.mxu1 %v916_v9 }
  0x19   : > { %837 = vmatprep.subr.bf16.mxu0 %v917_v10  ;;  %872 = vmatprep.subr.bf16.mxu1 %v917_v10 }
  0x1c   : > { %838 = vmatpush3.bf16.msra.mxu0 %v918_v13  ;;  %880 = vmatpush3.bf16.msra.mxu1 %v918_v13 }
  0x1d   : > { %839 = vmatprep.subr.bf16.mxu0 %v919_v14  ;;  %873 = vmatprep.subr.bf16.mxu1 %v919_v14 }
  0x20   : > { %840 = vmatpush3.bf16.msra.mxu0 %v920_v15  ;;  %881 = vmatpush3.bf16.msra.mxu1 %v920_v15 }
  0x21   : > { %841 = vmatprep.subr.bf16.mxu0 %v921_v16  ;;  %874 = vmatprep.subr.bf16.mxu1 %v921_v16 }
  0x24   : > { %842 = vmatpush3.bf16.msra.mxu0 %v922_v17  ;;  %882 = vmatpush3.bf16.msra.mxu1 %v922_v17 }
  0x27   : > { %483 = vmatmul.mubr.bf16.vlgmr.msra.gmra.mrb[0].mxu0 %v923_v18  ;;  %499 = vmatmul.mubr.bf16.vlgmr.msra.gmra.mrb[0].mxu1 %v926_v19 }
  0x28   : > { %490 = vmatprep.mubr.bf16.mxu0 %v929_v20  ;;  %506 = vmatprep.mubr.bf16.mxu1 %v932_v21 }
  0x2f   : > { %491 = vmatmul.mubr.bf16.gmra.mrb[4].mxu0 %v931_v22  ;;  %507 = vmatmul.mubr.bf16.gmra.mrb[4].mxu1 %v934_v23 }
  0xfa   : > { %v843_v24 = vpop.f32.mrb[0].mxu0  ;;  %v855_v25 = vpop.f32.mrb[0].mxu1 }
  0xfb   : > { %v844_v26 = vpop.f32.mrb[1].mxu0  ;;  %v856_v27 = vpop.f32.mrb[1].mxu1 }
  0xfc   : > { %v845_v28 = vadd.f32 %v844_v26, %v843_v24  ;;  %v846_v29 = vpop.f32.mrb[2].mxu0  ;;  %v857_v30 = vadd.f32 %v856_v27, %v855_v25  ;;  %v858_v31 = vpop.f32.mrb[2].mxu1 }
  0xfd   : > { %v847_v32 = vpop.f32.mrb[3].mxu0  ;;  %v859_v33 = vpop.f32.mrb[3].mxu1 }
  0xfe   : > { %v848_v34 = vadd.f32 %v847_v32, %v846_v29  ;;  %v860_v35 = vadd.f32 %v859_v33, %v858_v31  ;;  %v569_v36 = vmul.f32 %v845_v28, %v845_v28  ;;  %v573_v61 = vmul.f32 %v857_v30, %v857_v30 }
 0x100   : > { %v807_v37 = vpack.c.bf16 %v848_v34, %v845_v28  ;;  %v555_v38 = vadd.f32 %v848_v34, %v845_v28  ;;  %v570_v39 = vmul.f32 %v848_v34, %v848_v34  ;;  %v817_v40 = vpack.c.bf16 %v860_v35, %v857_v30 }
 0x101   : > { %v574_v0 = vmul.f32 %v860_v35, %v860_v35 }
 0x102   : > { %808 = vst [vmem:[%s1070_s10] sm:$0xff] %v807_v37   ;;  %v577_v41 = vadd.f32 %v570_v39, %v569_v36  ;;  %v849_v42 = vpop.f32.mrb[4].mxu0  ;;  %825 = vst [vmem:[%s1070_s10 + $0x10] sm:$0xff] %v817_v40   ;;  %v861_v43 = vpop.f32.mrb[4].mxu1 }
 0x103   : > { %v850_v44 = vpop.f32.mrb[5].mxu0  ;;  %v862_v45 = vpop.f32.mrb[5].mxu1 }
 0x104   : > { %v851_v46 = vadd.f32 %v850_v44, %v849_v42  ;;  %v852_v47 = vpop.f32.mrb[6].mxu0  ;;  %v863_v48 = vadd.f32 %v862_v45, %v861_v43  ;;  %v864_v49 = vpop.f32.mrb[6].mxu1 }
 0x105   : > { %v853_v50 = vpop.f32.mrb[7].mxu0  ;;  %v865_v51 = vpop.f32.mrb[7].mxu1 }
 0x106   : > { %v556_v52 = vadd.f32 %v851_v46, %v555_v38  ;;  %v571_v53 = vmul.f32 %v851_v46, %v851_v46  ;;  %v854_v54 = vadd.f32 %v853_v50, %v852_v47  ;;  %v866_v55 = vadd.f32 %v865_v51, %v864_v49 }
 0x107   : > { %v575_v3 = vmul.f32 %v863_v48, %v863_v48 }
 0x108   : > { %v578_v56 = vadd.f32 %v577_v41, %v571_v53  ;;  %v812_v57 = vpack.c.bf16 %v854_v54, %v851_v46  ;;  %v557_v58 = vadd.f32 %v854_v54, %v556_v52  ;;  %v572_v59 = vmul.f32 %v854_v54, %v854_v54 }
 0x109   : > { %v822_v60 = vpack.c.bf16 %v866_v55, %v863_v48  ;;  %v576_v8 = vmul.f32 %v866_v55, %v866_v55 }
 0x10a   : > { %824 = vst [vmem:[%s1070_s10 + $0x8] sm:$0xff] %v812_v57   ;;  %v558_v62 = vadd.f32 %v857_v30, %v557_v58  ;;  %v579_v63 = vadd.f32 %v578_v56, %v572_v59 }
 0x10b   : > { %826 = vst [vmem:[%s1070_s10 + $0x18] sm:$0xff] %v822_v60  }
 0x10c   : > { %v580_v1 = vadd.f32 %v579_v63, %v573_v61  ;;  %v559_v2 = vadd.f32 %v860_v35, %v558_v62 }
 0x10e   : > { %v560_v4 = vadd.f32 %v863_v48, %v559_v2  ;;  %v581_v5 = vadd.f32 %v580_v1, %v574_v0 }
 0x110   : > { %v582_v6 = vadd.f32 %v581_v5, %v575_v3  ;;  %v561_v7 = vadd.f32 %v866_v55, %v560_v4 }
 0x112   : > { %v562_v9 = vrot.slane %v561_v7, 4  ;;  %v583_v10 = vadd.f32 %v582_v6, %v576_v8 }
 0x114   : > { %v563_v11 = vadd.f32 %v562_v9, %v561_v7  ;;  %v584_v12 = vrot.slane %v583_v10, 4 }
 0x116   : > { %v564_v13 = vrot.slane %v563_v11, 2  ;;  %v585_v14 = vadd.f32 %v584_v12, %v583_v10 }
 0x118   : > { %v565_v15 = vadd.f32 %v564_v13, %v563_v11  ;;  %v586_v16 = vrot.slane %v585_v14, 2 }
 0x11a   : > { %v566_v17 = vrot.slane %v565_v15, 1  ;;  %v587_v18 = vadd.f32 %v586_v16, %v585_v14 }
 0x11c   : > { %v567_v19 = vadd.f32 %v566_v17, %v565_v15  ;;  %v588_v20 = vrot.slane %v587_v18, 1 }
 0x11e   : > { %568 = vst [vmem:[%s266_s13] sm:$0x1] %v567_v19  ;;  %v589_v21 = vadd.f32 %v588_v20, %v587_v18 }
 0x120   : > { %590 = vst [vmem:[%s272_s20] sm:$0x1] %v589_v21 }
 0x121 PF: > { %s15_s17 = sadd.s32 1, %s957_s17   ;;  %s1098_s15 = smov %s953_s16 }
 0x122   : > { %p12_p5 = scmp.ge.s32.totalorder %s15_s17, 4   ;;  %s1099_s16 = smov %s1101_s18 }
 0x124   :  { %14 = sbr.rel (!%p12_p5) target bundleno = 2 (0x2), region = 82 }

// kernel: generator_forward.22
= control target key start
LH: loop header
LB: loop body
LE: loop exit
PB: predicated region body
PF: predicated region fallthrough
CT: control target
= control target key end

     0   :  { %s681_s18 = smov 0   ;;  %s683_s19 = smov 0   ;;  %s735_s0 = inlined_call_operand.vmem [shape: bf16[2,64,128], index: 0, kind: input, shape index: {}]   ;;  %s736_s1 = inlined_call_operand.vmem [shape: f32[2,1,128], index: 1, kind: input, shape index: {}]   ;;  %s737_s2 = inlined_call_operand.vmem [shape: f32[2,1,128], index: 2, kind: input, shape index: {}]   ;;  %s738_s3 = inlined_call_operand.vmem [shape: f32[1,128], index: 3, kind: input, shape index: {}]   ;;  %s739_s4 = inlined_call_operand.vmem [shape: f32[1,128], index: 4, kind: input, shape index: {}]   ;;  %s740_s5 = inlined_call_operand.vmem [shape: bf16[2,64,128], index: 5, kind: output, shape index: {}]  }
   0x1   :  { %s685_s20 = smov 0  }
   0x2 LB: > { %s27_s21 = sadd.s32 1, %s645_s19  ;;  %p532_p0 = scmp.ge.s32.totalorder %s649_s20, 1  ;;  %s649_s20 = sphi %s685_s20, %s15_s20   ;;  %s645_s19 = sphi %s683_s19, %s742_s19   ;;  %s641_s18 = sphi %s681_s18, %s741_s18  }
   0x3   : > { %p29_p1 = scmp.ge.s32.totalorder %s27_s21, 2  ;;  %p224_p2 = scmp.lt.s32.totalorder %s649_s20, 3 }
   0x5   : > { %s744_s21 = smov (%p29_p1, %s27_s21), 0  ;;  %p225_p3 = pnand %p532_p0, %p224_p2 }
   0x6   : > { %p267_p4 = scmp.lt.s32.totalorder (!%p225_p3), %s641_s18, 1  ;;  %v316_v5 = vlaneseq (!%p225_p3)  ;;  %v537_v34 = vld [vmem:[%s738_s3] ss:$0 sm:$0xff] (!%p225_p3) }
   0x7   : > { %228 = sbr.rel (%p225_p3) target bundleno = 52 (0x34), region = 40  ;;  %v538_v39 = vld [vmem:[%s739_s4] ss:$0 sm:$0xff] (!%p225_p3) }
   0x8   : > { %v317_v8 = vshrl.u32 (!%p225_p3), %v316_v5, 7 }
   0xa   : > { %v318_v11 = vsub.s32 (!%p225_p3), 0, %v317_v8 }
   0xe   : > { %s746_s18 = smov (!%p267_p4, %s641_s18), 1 }
   0xf   : > { %s278_s24 = scalar_lea.vmem %s736_s1, %s746_s18  ;;  %s281_s27 = scalar_lea.vmem %s737_s2, %s746_s18 }
  0x10   : > { %v308_v0 = vld [vmem:[%s278_s24] sm:$0x1]  ;;  %s549_s28 = sshll.u32 %s746_s18, 5 }
  0x11   : > { %v309_v1 = vmul.f32 0.015625, %v308_v0  ;;  %v310_v2 = vld [vmem:[%s281_s27] sm:$0x1]  ;;  %s274_s6 = scalar_lea.vmem %s735_s0, %s549_s28  ;;  %s290_s13 = scalar_lea.vmem %s740_s5, %s549_s28 }
  0x12   : > { %v311_v3 = vmul.f32 0.015625, %v310_v2  ;;  %v560_v10 = vld [vmem:[%s274_s6] sm:$0xff]   ;;  %v595_v12 = vld [vmem:[%s274_s6 + $0x8] sm:$0xff]   ;;  %v596_v13 = vld [vmem:[%s274_s6 + $0x10] sm:$0xff]  }
  0x13   : > { %v312_v4 = vmul.f32 %v309_v1, %v309_v1  ;;  %v597_v14 = vld [vmem:[%s274_s6 + $0x18] sm:$0xff]   ;;  %v561_v15 = vunpack.c.l.bf16 %v560_v10  ;;  %v562_v16 = vunpack.c.h.bf16 %v560_v10  ;;  %v565_v17 = vunpack.c.l.bf16 %v595_v12 }
  0x14   : > { %v566_v18 = vunpack.c.h.bf16 %v595_v12  ;;  %v319_v19 = vrot.slane %v309_v1, %v318_v11  ;;  %v569_v20 = vunpack.c.l.bf16 %v596_v13  ;;  %v570_v21 = vunpack.c.h.bf16 %v596_v13 }
  0x15   : > { %v313_v6 = vsub.f32 %v311_v3, %v312_v4  ;;  %v573_v22 = vunpack.c.l.bf16 %v597_v14  ;;  %v574_v23 = vunpack.c.h.bf16 %v597_v14 }
  0x16   : > { %v321_v24 = vsub.f32 %v561_v15, %v319_v19  ;;  %v322_v25 = vsub.f32 %v562_v16, %v319_v19  ;;  %v323_v26 = vsub.f32 %v565_v17, %v319_v19  ;;  %v324_v27 = vsub.f32 %v566_v18, %v319_v19 }
  0x17   : > { %v314_v7 = vmax.f32 %v313_v6, 0.0  ;;  %v325_v29 = vsub.f32 %v569_v20, %v319_v19  ;;  %v326_v30 = vsub.f32 %v570_v21, %v319_v19  ;;  %v327_v31 = vsub.f32 %v573_v22, %v319_v19 }
  0x18   : > { %v328_v32 = vsub.f32 %v574_v23, %v319_v19 }
  0x19   : > { %v329_v9 = vadd.f32 1e-05, %v314_v7 }
  0x1b   : > { %625 = vrsqrt.f32 %v329_v9 }
  0x25   : > { %v626_v28 = vpop.eup %625 }
  0x26   : > { %v335_v33 = vrot.slane %v626_v28, %v318_v11 }
  0x28   : > { %v337_v35 = vmul.f32 %v335_v33, %v321_v24  ;;  %v338_v36 = vmul.f32 %v335_v33, %v322_v25  ;;  %v339_v37 = vmul.f32 %v335_v33, %v323_v26  ;;  %v340_v38 = vmul.f32 %v335_v33, %v324_v27 }
  0x29   : > { %v341_v40 = vmul.f32 %v335_v33, %v325_v29  ;;  %v342_v41 = vmul.f32 %v335_v33, %v326_v30  ;;  %v343_v42 = vmul.f32 %v335_v33, %v327_v31  ;;  %v344_v43 = vmul.f32 %v335_v33, %v328_v32 }
  0x2a   : > { %v352_v44 = vmul.f32 %v537_v34, %v337_v35  ;;  %v353_v45 = vmul.f32 %v537_v34, %v338_v36  ;;  %v354_v46 = vmul.f32 %v537_v34, %v339_v37  ;;  %v355_v47 = vmul.f32 %v537_v34, %v340_v38 }
  0x2b   : > { %v356_v48 = vmul.f32 %v537_v34, %v341_v40  ;;  %v357_v49 = vmul.f32 %v537_v34, %v342_v41  ;;  %v358_v50 = vmul.f32 %v537_v34, %v343_v42  ;;  %v359_v51 = vmul.f32 %v537_v34, %v344_v43 }
  0x2c   : > { %v367_v52 = vadd.f32 %v538_v39, %v352_v44  ;;  %v368_v53 = vadd.f32 %v538_v39, %v353_v45  ;;  %v369_v54 = vadd.f32 %v538_v39, %v354_v46  ;;  %v370_v55 = vadd.f32 %v538_v39, %v355_v47 }
  0x2d   : > { %v371_v56 = vadd.f32 %v538_v39, %v356_v48  ;;  %v372_v57 = vadd.f32 %v538_v39, %v357_v49  ;;  %v373_v58 = vadd.f32 %v538_v39, %v358_v50  ;;  %v374_v59 = vadd.f32 %v538_v39, %v359_v51 }
  0x2e   : > { %v375_v60 = vmax.f32 %v367_v52, 0.0  ;;  %v376_v61 = vmax.f32 %v368_v53, 0.0  ;;  %v377_v62 = vmax.f32 %v369_v54, 0.0  ;;  %v378_v63 = vmax.f32 %v370_v55, 0.0 }
  0x2f   : > { %v379_v0 = vmax.f32 %v371_v56, 0.0  ;;  %v380_v1 = vmax.f32 %v372_v57, 0.0  ;;  %v381_v2 = vmax.f32 %v373_v58, 0.0  ;;  %v382_v3 = vmax.f32 %v374_v59, 0.0 }
  0x30   : > { %v578_v4 = vpack.c.bf16 %v376_v61, %v375_v60  ;;  %v583_v5 = vpack.c.bf16 %v378_v63, %v377_v62 }
  0x31   : > { %v588_v6 = vpack.c.bf16 %v380_v1, %v379_v0  ;;  %v593_v7 = vpack.c.bf16 %v382_v3, %v381_v2 }
  0x32   : > { %579 = vst [vmem:[%s290_s13] sm:$0xff] %v578_v4   ;;  %598 = vst [vmem:[%s290_s13 + $0x8] sm:$0xff] %v583_v5  }
  0x33   : > { %599 = vst [vmem:[%s290_s13 + $0x10] sm:$0xff] %v588_v6   ;;  %600 = vst [vmem:[%s290_s13 + $0x18] sm:$0xff] %v593_v7  }
  0x34 PF: > { %s15_s20 = sadd.s32 1, %s649_s20   ;;  %s741_s18 = smov %s645_s19 }
  0x35   : > { %p12_p5 = scmp.ge.s32.totalorder %s15_s20, 4   ;;  %s742_s19 = smov %s744_s21 }
  0x37   :  { %14 = sbr.rel (!%p12_p5) target bundleno = 2 (0x2), region = 76 }

// kernel: generator_forward.24
= control target key start
LH: loop header
LB: loop body
LE: loop exit
PB: predicated region body
PF: predicated region fallthrough
CT: control target
= control target key end

     0   :  { %s564_s18 = smov 0   ;;  %s566_s19 = smov 0   ;;  %s614_s0 = inlined_call_operand.vmem [shape: bf16[2,16,128], index: 0, kind: input, shape index: {}]   ;;  %s615_s1 = inlined_call_operand.vmem [shape: f32[2,1,128], index: 1, kind: input, shape index: {}]   ;;  %s616_s2 = inlined_call_operand.vmem [shape: f32[2,1,128], index: 2, kind: input, shape index: {}]   ;;  %s617_s3 = inlined_call_operand.vmem [shape: f32[1,128], index: 3, kind: input, shape index: {}]   ;;  %s618_s4 = inlined_call_operand.vmem [shape: f32[1,128], index: 4, kind: input, shape index: {}]   ;;  %s619_s5 = inlined_call_operand.vmem [shape: bf16[2,16,128], index: 5, kind: output, shape index: {}]  }
   0x1   :  { %s568_s20 = smov 0  }
   0x2 LB: > { %s27_s21 = sadd.s32 1, %s528_s19  ;;  %p460_p0 = scmp.ge.s32.totalorder %s532_s20, 1  ;;  %s532_s20 = sphi %s568_s20, %s15_s20   ;;  %s528_s19 = sphi %s566_s19, %s621_s19   ;;  %s524_s18 = sphi %s564_s18, %s620_s18  }
   0x3   : > { %p29_p1 = scmp.ge.s32.totalorder %s27_s21, 2  ;;  %p224_p2 = scmp.lt.s32.totalorder %s532_s20, 3 }
   0x5   : > { %s623_s21 = smov (%p29_p1, %s27_s21), 0  ;;  %p225_p3 = pnand %p460_p0, %p224_p2 }
   0x6   : > { %p267_p4 = scmp.lt.s32.totalorder (!%p225_p3), %s524_s18, 1  ;;  %v304_v5 = vlaneseq (!%p225_p3)  ;;  %v465_v19 = vld [vmem:[%s617_s3] ss:$0 sm:$0xff] (!%p225_p3) }
   0x7   : > { %228 = sbr.rel (%p225_p3) target bundleno = 51 (0x33), region = 40  ;;  %v466_v22 = vld [vmem:[%s618_s4] ss:$0 sm:$0xff] (!%p225_p3) }
   0x8   : > { %v305_v8 = vshrl.u32 (!%p225_p3), %v304_v5, 7 }
   0xa   : > { %v306_v10 = vsub.s32 (!%p225_p3), 0, %v305_v8 }
   0xe   : > { %s625_s18 = smov (!%p267_p4, %s524_s18), 1 }
   0xf   : > { %s278_s24 = scalar_lea.vmem %s615_s1, %s625_s18  ;;  %s281_s27 = scalar_lea.vmem %s616_s2, %s625_s18 }
  0x10   : > { %v296_v0 = vld [vmem:[%s278_s24] sm:$0x1]  ;;  %s471_s28 = sshll.u32 %s625_s18, 3 }
  0x11   : > { %v297_v1 = vmul.f32 0.0625, %v296_v0  ;;  %v298_v2 = vld [vmem:[%s281_s27] sm:$0x1]  ;;  %s274_s6 = scalar_lea.vmem %s614_s0, %s471_s28  ;;  %s290_s13 = scalar_lea.vmem %s619_s5, %s471_s28 }
  0x12   : > { %v299_v3 = vmul.f32 0.0625, %v298_v2  ;;  %v476_v11 = vld [vmem:[%s274_s6] sm:$0xff]  }
  0x13   : > { %v300_v4 = vmul.f32 %v297_v1, %v297_v1  ;;  %v477_v12 = vunpack.c.l.bf16 %v476_v11  ;;  %v478_v13 = vunpack.c.h.bf16 %v476_v11  ;;  %v307_v14 = vrot.slane %v297_v1, %v306_v10 }
  0x15   : > { %v301_v6 = vsub.f32 %v299_v3, %v300_v4  ;;  %v309_v15 = vsub.f32 %v477_v12, %v307_v14  ;;  %v310_v16 = vsub.f32 %v478_v13, %v307_v14 }
  0x17   : > { %v302_v7 = vmax.f32 %v301_v6, 0.0 }
  0x19   : > { %v311_v9 = vadd.f32 1e-05, %v302_v7 }
  0x1b   : > { %508 = vrsqrt.f32 %v311_v9 }
  0x25   : > { %v509_v17 = vpop.eup %508 }
  0x26   : > { %v317_v18 = vrot.slane %v509_v17, %v306_v10 }
  0x28   : > { %v319_v20 = vmul.f32 %v317_v18, %v309_v15  ;;  %v320_v21 = vmul.f32 %v317_v18, %v310_v16 }
  0x2a   : > { %v328_v23 = vmul.f32 %v465_v19, %v319_v20  ;;  %v329_v24 = vmul.f32 %v465_v19, %v320_v21 }
  0x2c   : > { %v337_v25 = vadd.f32 %v466_v22, %v328_v23  ;;  %v338_v26 = vadd.f32 %v466_v22, %v329_v24 }
  0x2e   : > { %v339_v27 = vmax.f32 %v337_v25, 0.0  ;;  %v340_v28 = vmax.f32 %v338_v26, 0.0 }
  0x30   : > { %v482_v29 = vpack.c.bf16 %v340_v28, %v339_v27 }
  0x32   : > { %483 = vst [vmem:[%s290_s13] sm:$0xff] %v482_v29  }
  0x33 PF: > { %s15_s20 = sadd.s32 1, %s532_s20   ;;  %s620_s18 = smov %s528_s19 }
  0x34   : > { %p12_p5 = scmp.ge.s32.totalorder %s15_s20, 4   ;;  %s621_s19 = smov %s623_s21 }
  0x36   :  { %14 = sbr.rel (!%p12_p5) target bundleno = 2 (0x2), region = 76 }

// kernel: generator_forward.23
= control target key start
LH: loop header
LB: loop body
LE: loop exit
PB: predicated region body
PF: predicated region fallthrough
CT: control target
= control target key end

     0   :  { %s1037_s15 = smov 0   ;;  %s1039_s16 = smov 0   ;;  %s1182_s0 = inlined_call_operand.vmem [shape: bf16[2,16,512], index: 0, kind: input, shape index: {}]   ;;  %s1183_s1 = inlined_call_operand.vmem [shape: bf16[512,128], index: 1, kind: input, shape index: {}]   ;;  %s1184_s2 = inlined_call_operand.vmem [shape: bf16[2,16,128], index: 2, kind: output, shape index: {0}]   ;;  %s1185_s3 = inlined_call_operand.vmem [shape: f32[2,1,128], index: 3, kind: output, shape index: {1}]   ;;  %s1186_s4 = inlined_call_operand.vmem [shape: f32[2,1,128], index: 4, kind: output, shape index: {2}]  }
   0x1   :  { %s1041_s17 = smov 0  }
   0x2 LB: > { %s27_s18 = sadd.s32 1, %s1006_s16  ;;  %p828_p0 = scmp.ge.s32.totalorder %s1010_s17, 1  ;;  %s1010_s17 = sphi %s1041_s17, %s15_s17   ;;  %s1006_s16 = sphi %s1039_s16, %s1188_s16   ;;  %s1002_s15 = sphi %s1037_s15, %s1187_s15  }
   0x3   : > { %p29_p1 = scmp.ge.s32.totalorder %s27_s18, 2  ;;  %p193_p2 = scmp.lt.s32.totalorder %s1010_s17, 3 }
   0x5   : > { %s1190_s18 = smov (%p29_p1, %s27_s18), 0  ;;  %p194_p3 = pnand %p828_p0, %p193_p2 }
   0x6   : > { %v950_v0 = vld [vmem:[%s1183_s1 + $0x40] sm:$0xff] (!%p194_p3)   ;;  %v954_v4 = vld [vmem:[%s1183_s1 + $0x48] sm:$0xff] (!%p194_p3)   ;;  %v958_v8 = vld [vmem:[%s1183_s1 + $0x50] sm:$0xff] (!%p194_p3)   ;;  %p241_p4 = scmp.lt.s32.totalorder (!%p194_p3), %s1002_s15, 1 }
   0x7   : > { %197 = sbr.rel (%p194_p3) target bundleno = 277 (0x115), region = 28  ;;  %v951_v1 = vld [vmem:[%s1183_s1 + $0xc0] sm:$0xff] (!%p194_p3)   ;;  %882 = vmatprep.subr.bf16.mxu0 (!%p194_p3), %v950_v0  ;;  %v955_v5 = vld [vmem:[%s1183_s1 + $0xc8] sm:$0xff] (!%p194_p3)   ;;  %v959_v9 = vld [vmem:[%s1183_s1 + $0xd0] sm:$0xff] (!%p194_p3)  }
   0x8   : > { %v952_v2 = vld [vmem:[%s1183_s1] sm:$0xff] (!%p194_p3)   ;;  %904 = vmatprep.subr.bf16.mxu1 (!%p194_p3), %v951_v1  ;;  %v956_v6 = vld [vmem:[%s1183_s1 + $0x8] sm:$0xff] (!%p194_p3)   ;;  %v960_v10 = vld [vmem:[%s1183_s1 + $0x10] sm:$0xff] (!%p194_p3)  }
   0x9   : > { %v953_v3 = vld [vmem:[%s1183_s1 + $0x80] sm:$0xff] (!%p194_p3)   ;;  %883 = vmatpush3.bf16.msra.mxu0 (!%p194_p3), %v952_v2  ;;  %v957_v7 = vld [vmem:[%s1183_s1 + $0x88] sm:$0xff] (!%p194_p3)   ;;  %v961_v11 = vld [vmem:[%s1183_s1 + $0x90] sm:$0xff] (!%p194_p3)  }
   0xa   : > { %905 = vmatpush3.bf16.msra.mxu1 (!%p194_p3), %v953_v3  ;;  %884 = vmatprep.subr.bf16.mxu0 (!%p194_p3), %v954_v4  ;;  %v962_v12 = vld [vmem:[%s1183_s1 + $0x58] sm:$0xff] (!%p194_p3)   ;;  %v966_v16 = vld [vmem:[%s1183_s1 + $0x60] sm:$0xff] (!%p194_p3)   ;;  %v970_v20 = vld [vmem:[%s1183_s1 + $0x68] sm:$0xff] (!%p194_p3)  }
   0xb   : > { %906 = vmatprep.subr.bf16.mxu1 (!%p194_p3), %v955_v5  ;;  %v963_v13 = vld [vmem:[%s1183_s1 + $0xd8] sm:$0xff] (!%p194_p3)   ;;  %v967_v17 = vld [vmem:[%s1183_s1 + $0xe0] sm:$0xff] (!%p194_p3)   ;;  %v971_v21 = vld [vmem:[%s1183_s1 + $0xe8] sm:$0xff] (!%p194_p3)  }
   0xc   : > { %v964_v14 = vld [vmem:[%s1183_s1 + $0x18] sm:$0xff] (!%p194_p3)   ;;  %v968_v18 = vld [vmem:[%s1183_s1 + $0x20] sm:$0xff] (!%p194_p3)   ;;  %v972_v22 = vld [vmem:[%s1183_s1 + $0x28] sm:$0xff] (!%p194_p3)  }
   0xd   : > { %885 = vmatpush3.bf16.msra.mxu0 (!%p194_p3), %v956_v6  ;;  %v965_v15 = vld [vmem:[%s1183_s1 + $0x98] sm:$0xff] (!%p194_p3)   ;;  %v969_v19 = vld [vmem:[%s1183_s1 + $0xa0] sm:$0xff] (!%p194_p3)   ;;  %v973_v23 = vld [vmem:[%s1183_s1 + $0xa8] sm:$0xff] (!%p194_p3)  }
   0xe   : > { %907 = vmatpush3.bf16.msra.mxu1 %v957_v7  ;;  %886 = vmatprep.subr.bf16.mxu0 %v958_v8  ;;  %s1192_s15 = smov (!%p241_p4, %s1002_s15), 1  ;;  %v974_v24 = vld [vmem:[%s1183_s1 + $0x70] sm:$0xff]   ;;  %v978_v28 = vld [vmem:[%s1183_s1 + $0x78] sm:$0xff]  }
   0xf   : > { %908 = vmatprep.subr.bf16.mxu1 %v959_v9  ;;  %v975_v25 = vld [vmem:[%s1183_s1 + $0xf0] sm:$0xff]   ;;  %s873_s29 = sshll.u32 %s1192_s15, 5  ;;  %v979_v29 = vld [vmem:[%s1183_s1 + $0xf8] sm:$0xff]   ;;  %s874_s21 = sshll.u32 %s1192_s15, 3 }
  0x10   : > { %v976_v26 = vld [vmem:[%s1183_s1 + $0x30] sm:$0xff]   ;;  %s249_s12 = scalar_lea.vmem %s1182_s0, %s873_s29  ;;  %v980_v30 = vld [vmem:[%s1183_s1 + $0x38] sm:$0xff]   ;;  %s259_s24 = scalar_lea.vmem %s1184_s2, %s874_s21 }
  0x11   : > { %887 = vmatpush3.bf16.msra.mxu0 %v960_v10  ;;  %v977_v27 = vld [vmem:[%s1183_s1 + $0xb0] sm:$0xff]   ;;  %v981_v31 = vld [vmem:[%s1183_s1 + $0xb8] sm:$0xff]   ;;  %s266_s27 = scalar_lea.vmem %s1185_s3, %s1192_s15  ;;  %s272_s30 = scalar_lea.vmem %s1186_s4, %s1192_s15 }
  0x12   : > { %909 = vmatpush3.bf16.msra.mxu1 %v961_v11  ;;  %888 = vmatprep.subr.bf16.mxu0 %v962_v12  ;;  %v982_v32 = vld [vmem:[%s249_s12] ss:$16 sps:$4 sm:$0xff]   ;;  %v984_v33 = vld [vmem:[%s249_s12 + $0x4] ss:$16 sps:$4 sm:$0xff]   ;;  %v985_v34 = vld [vmem:[%s249_s12 + $0x8] ss:$16 sps:$4 sm:$0xff]  }
  0x13   : > { %910 = vmatprep.subr.bf16.mxu1 %v963_v13  ;;  %v987_v35 = vld [vmem:[%s249_s12 + $0xc] ss:$16 sps:$4 sm:$0xff]   ;;  %586 = vmatprep.mubr.bf16.mxu0 %v984_v33 }
  0x14   : > { %627 = vmatprep.mubr.bf16.mxu1 %v987_v35 }
  0x15   : > { %889 = vmatpush3.bf16.msra.mxu0 %v964_v14 }
  0x16   : > { %911 = vmatpush3.bf16.msra.mxu1 %v965_v15  ;;  %890 = vmatprep.subr.bf16.mxu0 %v966_v16 }
  0x17   : > { %912 = vmatprep.subr.bf16.mxu1 %v967_v17 }
  0x19   : > { %891 = vmatpush3.bf16.msra.mxu0 %v968_v18 }
  0x1a   : > { %913 = vmatpush3.bf16.msra.mxu1 %v969_v19  ;;  %892 = vmatprep.subr.bf16.mxu0 %v970_v20 }
  0x1b   : > { %914 = vmatprep.subr.bf16.mxu1 %v971_v21 }
  0x1d   : > { %893 = vmatpush3.bf16.msra.mxu0 %v972_v22 }
  0x1e   : > { %915 = vmatpush3.bf16.msra.mxu1 %v973_v23  ;;  %894 = vmatprep.subr.bf16.mxu0 %v974_v24 }
  0x1f   : > { %916 = vmatprep.subr.bf16.mxu1 %v975_v25 }
  0x21   : > { %895 = vmatpush3.bf16.msra.mxu0 %v976_v26 }
  0x22   : > { %917 = vmatpush3.bf16.msra.mxu1 %v977_v27  ;;  %896 = vmatprep.subr.bf16.mxu0 %v978_v28 }
  0x23   : > { %918 = vmatprep.subr.bf16.mxu1 %v979_v29 }
  0x25   : > { %897 = vmatpush3.bf16.msra.mxu0 %v980_v30 }
  0x26   : > { %919 = vmatpush3.bf16.msra.mxu1 %v981_v31 }
  0x28   : > { %587 = vmatmul.mubr.bf16.vlgmr.msra.gmra.mrb[0].mxu0 %v982_v32 }
  0x29   : > { %628 = vmatmul.mubr.bf16.vlgmr.msra.gmra.mrb[0].mxu1 %v985_v34 }
  0xfb   : > { %v898_v36 = vpop.f32.mrb[0].mxu0 }
  0xfc   : > { %v920_v37 = vpop.f32.mrb[0].mxu1  ;;  %v899_v38 = vpop.f32.mrb[1].mxu0 }
  0xfd   : > { %v900_v39 = vadd.f32 %v899_v38, %v898_v36  ;;  %v921_v40 = vpop.f32.mrb[1].mxu1  ;;  %v901_v41 = vpop.f32.mrb[2].mxu0 }
  0xfe   : > { %v922_v42 = vadd.f32 %v921_v40, %v920_v37  ;;  %v923_v43 = vpop.f32.mrb[2].mxu1  ;;  %v902_v44 = vpop.f32.mrb[3].mxu0 }
  0xff   : > { %v903_v45 = vadd.f32 %v902_v44, %v901_v41  ;;  %v924_v46 = vpop.f32.mrb[3].mxu1 }
 0x100   : > { %v630_v47 = vadd.f32 %v922_v42, %v900_v39  ;;  %v925_v48 = vadd.f32 %v924_v46, %v923_v43 }
 0x102   : > { %v633_v49 = vadd.f32 %v925_v48, %v903_v45  ;;  %v654_v50 = vmul.f32 %v630_v47, %v630_v47 }
 0x104   : > { %v880_v51 = vpack.c.bf16 %v633_v49, %v630_v47  ;;  %v646_v52 = vadd.f32 %v633_v49, %v630_v47  ;;  %v655_v53 = vmul.f32 %v633_v49, %v633_v49 }
 0x106   : > { %881 = vst [vmem:[%s259_s24] sm:$0xff] %v880_v51   ;;  %v647_v54 = vrot.slane %v646_v52, 4  ;;  %v656_v55 = vadd.f32 %v655_v53, %v654_v50 }
 0x108   : > { %v648_v56 = vadd.f32 %v647_v54, %v646_v52  ;;  %v657_v57 = vrot.slane %v656_v55, 4 }
 0x10a   : > { %v649_v58 = vrot.slane %v648_v56, 2  ;;  %v658_v59 = vadd.f32 %v657_v57, %v656_v55 }
 0x10c   : > { %v650_v60 = vadd.f32 %v649_v58, %v648_v56  ;;  %v659_v61 = vrot.slane %v658_v59, 2 }
 0x10e   : > { %v651_v62 = vrot.slane %v650_v60, 1  ;;  %v660_v63 = vadd.f32 %v659_v61, %v658_v59 }
 0x110   : > { %v652_v0 = vadd.f32 %v651_v62, %v650_v60  ;;  %v661_v1 = vrot.slane %v660_v63, 1 }
 0x112   : > { %653 = vst [vmem:[%s266_s27] sm:$0x1] %v652_v0  ;;  %v662_v2 = vadd.f32 %v661_v1, %v660_v63 }
 0x114   : > { %663 = vst [vmem:[%s272_s30] sm:$0x1] %v662_v2 }
 0x115 PF: > { %s15_s17 = sadd.s32 1, %s1010_s17   ;;  %s1187_s15 = smov %s1006_s16 }
 0x116   : > { %p12_p5 = scmp.ge.s32.totalorder %s15_s17, 4   ;;  %s1188_s16 = smov %s1190_s18 }
 0x118   :  { %14 = sbr.rel (!%p12_p5) target bundleno = 2 (0x2), region = 82 }

// kernel: generator_forward.28
= control target key start
LH: loop header
LB: loop body
LE: loop exit
PB: predicated region body
PF: predicated region fallthrough
CT: control target
= control target key end

     0   :  { %s661_s21 = smov 0   ;;  %s663_s22 = smov 0   ;;  %s714_s0 = inlined_call_operand.vmem [shape: bf16[2,16,128], index: 0, kind: input, shape index: {}]   ;;  %s715_s1 = inlined_call_operand.vmem [shape: f32[2,1,128], index: 1, kind: input, shape index: {}]   ;;  %s716_s2 = inlined_call_operand.vmem [shape: f32[2,1,128], index: 2, kind: input, shape index: {}]   ;;  %s717_s3 = inlined_call_operand.vmem [shape: f32[1,128], index: 3, kind: input, shape index: {}]   ;;  %s718_s4 = inlined_call_operand.vmem [shape: f32[1,128], index: 4, kind: input, shape index: {}]   ;;  %s719_s5 = inlined_call_operand.vmem [shape: bf16[2,16,128], index: 5, kind: input, shape index: {}]   ;;  %s720_s6 = inlined_call_operand.vmem [shape: bf16[2,16,128], index: 6, kind: output, shape index: {}]  }
   0x1   :  { %s665_s23 = smov 0  }
   0x2 LB: > { %s28_s24 = sadd.s32 1, %s620_s22  ;;  %p545_p0 = scmp.ge.s32.totalorder %s624_s23, 1  ;;  %s624_s23 = sphi %s665_s23, %s16_s23   ;;  %s620_s22 = sphi %s663_s22, %s722_s22   ;;  %s616_s21 = sphi %s661_s21, %s721_s21  }
   0x3   : > { %p30_p1 = scmp.ge.s32.totalorder %s28_s24, 2  ;;  %p266_p2 = scmp.lt.s32.totalorder %s624_s23, 3 }
   0x5   : > { %s724_s24 = smov (%p30_p1, %s28_s24), 0  ;;  %p267_p3 = pnand %p545_p0, %p266_p2 }
   0x6   : > { %p320_p4 = scmp.lt.s32.totalorder (!%p267_p3), %s616_s21, 1  ;;  %v367_v5 = vlaneseq (!%p267_p3)  ;;  %v552_v19 = vld [vmem:[%s717_s3] ss:$0 sm:$0xff] (!%p267_p3) }
   0x7   : > { %270 = sbr.rel (%p267_p3) target bundleno = 51 (0x33), region = 44  ;;  %v553_v23 = vld [vmem:[%s718_s4] ss:$0 sm:$0xff] (!%p267_p3) }
   0x8   : > { %v368_v8 = vshrl.u32 (!%p267_p3), %v367_v5, 7 }
   0xa   : > { %v369_v10 = vsub.s32 (!%p267_p3), 0, %v368_v8 }
   0xe   : > { %s726_s21 = smov (!%p320_p4, %s616_s21), 1 }
   0xf   : > { %s331_s27 = scalar_lea.vmem %s715_s1, %s726_s21  ;;  %s334_s30 = scalar_lea.vmem %s716_s2, %s726_s21 }
  0x10   : > { %v359_v0 = vld [vmem:[%s331_s27] sm:$0x1]  ;;  %s685_s7 = sshll.u32 %s726_s21, 3 }
  0x11   : > { %v360_v1 = vmul.f32 0.0625, %v359_v0  ;;  %v361_v2 = vld [vmem:[%s334_s30] sm:$0x1]  ;;  %s327_s10 = scalar_lea.vmem %s714_s0, %s685_s7  ;;  %s343_s13 = scalar_lea.vmem %s719_s5, %s685_s7 }
  0x12   : > { %v362_v3 = vmul.f32 0.0625, %v361_v2  ;;  %v564_v11 = vld [vmem:[%s327_s10] sm:$0xff]   ;;  %s353_s20 = scalar_lea.vmem %s720_s6, %s685_s7 }
  0x13   : > { %v363_v4 = vmul.f32 %v360_v1, %v360_v1  ;;  %v565_v12 = vunpack.c.l.bf16 %v564_v11  ;;  %v566_v13 = vunpack.c.h.bf16 %v564_v11  ;;  %v370_v14 = vrot.slane %v360_v1, %v369_v10  ;;  %v568_v20 = vld [vmem:[%s343_s13] sm:$0xff]  }
  0x14   : > { %v569_v26 = vunpack.c.l.bf16 %v568_v20  ;;  %v570_v27 = vunpack.c.h.bf16 %v568_v20 }
  0x15   : > { %v364_v6 = vsub.f32 %v362_v3, %v363_v4  ;;  %v372_v15 = vsub.f32 %v565_v12, %v370_v14  ;;  %v373_v16 = vsub.f32 %v566_v13, %v370_v14 }
  0x17   : > { %v365_v7 = vmax.f32 %v364_v6, 0.0 }
  0x19   : > { %v374_v9 = vadd.f32 1e-05, %v365_v7 }
  0x1b   : > { %600 = vrsqrt.f32 %v374_v9 }
  0x25   : > { %v601_v17 = vpop.eup %600 }
  0x26   : > { %v380_v18 = vrot.slane %v601_v17, %v369_v10 }
  0x28   : > { %v382_v21 = vmul.f32 %v380_v18, %v372_v15  ;;  %v383_v22 = vmul.f32 %v380_v18, %v373_v16 }
  0x2a   : > { %v391_v24 = vmul.f32 %v552_v19, %v382_v21  ;;  %v392_v25 = vmul.f32 %v552_v19, %v383_v22 }
  0x2c   : > { %v400_v28 = vadd.f32 %v553_v23, %v391_v24  ;;  %v401_v29 = vadd.f32 %v553_v23, %v392_v25 }
  0x2e   : > { %v406_v30 = vadd.f32 %v569_v26, %v400_v28  ;;  %v407_v31 = vadd.f32 %v570_v27, %v401_v29 }
  0x30   : > { %v574_v32 = vpack.c.bf16 %v407_v31, %v406_v30 }
  0x32   : > { %575 = vst [vmem:[%s353_s20] sm:$0xff] %v574_v32  }
  0x33 PF: > { %s16_s23 = sadd.s32 1, %s624_s23   ;;  %s721_s21 = smov %s620_s22 }
  0x34   : > { %p13_p5 = scmp.ge.s32.totalorder %s16_s23, 4   ;;  %s722_s22 = smov %s724_s24 }
  0x36   :  { %15 = sbr.rel (!%p13_p5) target bundleno = 2 (0x2), region = 83 }

// kernel: generator_forward.25
= control target key start
LH: loop header
LB: loop body
LE: loop exit
PB: predicated region body
PF: predicated region fallthrough
CT: control target
= control target key end

     0   :  { %s1200_s15 = smov 0   ;;  %s1202_s16 = smov 0   ;;  %s1376_s0 = inlined_call_operand.vmem [shape: bf16[2,16,640], index: 0, kind: input, shape index: {}]   ;;  %s1377_s1 = inlined_call_operand.vmem [shape: bf16[640,128], index: 1, kind: input, shape index: {}]   ;;  %s1378_s2 = inlined_call_operand.vmem [shape: bf16[2,16,128], index: 2, kind: output, shape index: {0}]   ;;  %s1379_s3 = inlined_call_operand.vmem [shape: f32[2,1,128], index: 3, kind: output, shape index: {1}]   ;;  %s1380_s4 = inlined_call_operand.vmem [shape: f32[2,1,128], index: 4, kind: output, shape index: {2}]  }
   0x1   :  { %s1204_s17 = smov 0  }
   0x2 LB: > { %s27_s18 = sadd.s32 1, %s1167_s16  ;;  %p941_p0 = scmp.ge.s32.totalorder %s1171_s17, 1  ;;  %s1171_s17 = sphi %s1204_s17, %s15_s17   ;;  %s1167_s16 = sphi %s1202_s16, %s1382_s16   ;;  %s1163_s15 = sphi %s1200_s15, %s1381_s15  }
   0x3   : > { %p29_p1 = scmp.ge.s32.totalorder %s27_s18, 2  ;;  %p193_p2 = scmp.lt.s32.totalorder %s1171_s17, 3 }
   0x5   : > { %s1384_s18 = smov (%p29_p1, %s27_s18), 0  ;;  %p194_p3 = pnand %p941_p0, %p193_p2 }
   0x6   : > { %v1102_v0 = vld [vmem:[%s1377_s1 + $0x40] sm:$0xff] (!%p194_p3)   ;;  %v1106_v4 = vld [vmem:[%s1377_s1 + $0x48] sm:$0xff] (!%p194_p3)   ;;  %v1110_v8 = vld [vmem:[%s1377_s1 + $0x50] sm:$0xff] (!%p194_p3)   ;;  %p241_p4 = scmp.lt.s32.totalorder (!%p194_p3), %s1163_s15, 1  ;;  %v1173_v34 = vmov (!%p194_p3), 0.0   ;;  %vm1174_vm0 = vmmov (!%p194_p3), 0  }
   0x7   : > { %197 = sbr.rel (%p194_p3) target bundleno = 305 (0x131), region = 28  ;;  %v1103_v1 = vld [vmem:[%s1377_s1 + $0xc0] sm:$0xff] (!%p194_p3)   ;;  %1002 = vmatprep.subr.bf16.mxu0 (!%p194_p3), %v1102_v0  ;;  %v1107_v5 = vld [vmem:[%s1377_s1 + $0xc8] sm:$0xff] (!%p194_p3)   ;;  %v1111_v9 = vld [vmem:[%s1377_s1 + $0xd0] sm:$0xff] (!%p194_p3)  }
   0x8   : > { %v1104_v2 = vld [vmem:[%s1377_s1] sm:$0xff] (!%p194_p3)   ;;  %1024 = vmatprep.subr.bf16.mxu1 (!%p194_p3), %v1103_v1  ;;  %v1108_v6 = vld [vmem:[%s1377_s1 + $0x8] sm:$0xff] (!%p194_p3)   ;;  %v1112_v10 = vld [vmem:[%s1377_s1 + $0x10] sm:$0xff] (!%p194_p3)  }
   0x9   : > { %v1105_v3 = vld [vmem:[%s1377_s1 + $0x80] sm:$0xff] (!%p194_p3)   ;;  %1003 = vmatpush3.bf16.msra.mxu0 (!%p194_p3), %v1104_v2  ;;  %v1109_v7 = vld [vmem:[%s1377_s1 + $0x88] sm:$0xff] (!%p194_p3)   ;;  %v1113_v11 = vld [vmem:[%s1377_s1 + $0x90] sm:$0xff] (!%p194_p3)  }
   0xa   : > { %1025 = vmatpush3.bf16.msra.mxu1 (!%p194_p3), %v1105_v3  ;;  %1004 = vmatprep.subr.bf16.mxu0 (!%p194_p3), %v1106_v4  ;;  %v1114_v12 = vld [vmem:[%s1377_s1 + $0x58] sm:$0xff] (!%p194_p3)   ;;  %v1118_v16 = vld [vmem:[%s1377_s1 + $0x60] sm:$0xff] (!%p194_p3)   ;;  %v1122_v20 = vld [vmem:[%s1377_s1 + $0x68] sm:$0xff] (!%p194_p3)  }
   0xb   : > { %1026 = vmatprep.subr.bf16.mxu1 (!%p194_p3), %v1107_v5  ;;  %v1115_v13 = vld [vmem:[%s1377_s1 + $0xd8] sm:$0xff] (!%p194_p3)   ;;  %v1119_v17 = vld [vmem:[%s1377_s1 + $0xe0] sm:$0xff] (!%p194_p3)   ;;  %v1123_v21 = vld [vmem:[%s1377_s1 + $0xe8] sm:$0xff] (!%p194_p3)  }
   0xc   : > { %v1116_v14 = vld [vmem:[%s1377_s1 + $0x18] sm:$0xff] (!%p194_p3)   ;;  %v1120_v18 = vld [vmem:[%s1377_s1 + $0x20] sm:$0xff] (!%p194_p3)   ;;  %v1124_v22 = vld [vmem:[%s1377_s1 + $0x28] sm:$0xff] (!%p194_p3)  }
   0xd   : > { %1005 = vmatpush3.bf16.msra.mxu0 (!%p194_p3), %v1108_v6  ;;  %v1117_v15 = vld [vmem:[%s1377_s1 + $0x98] sm:$0xff] (!%p194_p3)   ;;  %v1121_v19 = vld [vmem:[%s1377_s1 + $0xa0] sm:$0xff] (!%p194_p3)   ;;  %v1125_v23 = vld [vmem:[%s1377_s1 + $0xa8] sm:$0xff] (!%p194_p3)  }
   0xe   : > { %1027 = vmatpush3.bf16.msra.mxu1 %v1109_v7  ;;  %1006 = vmatprep.subr.bf16.mxu0 %v1110_v8  ;;  %s1386_s15 = smov (!%p241_p4, %s1163_s15), 1  ;;  %v1126_v24 = vld [vmem:[%s1377_s1 + $0x70] sm:$0xff]   ;;  %v1130_v28 = vld [vmem:[%s1377_s1 + $0x78] sm:$0xff]   ;;  %v1140_v37 = vld [vmem:[%s1377_s1 + $0x100] sm:$0xff]  }
   0xf   : > { %1028 = vmatprep.subr.bf16.mxu1 %v1111_v9  ;;  %v1127_v25 = vld [vmem:[%s1377_s1 + $0xf0] sm:$0xff]   ;;  %s1075_s27 = smul.u32 40, %s1386_s15  ;;  %v1131_v29 = vld [vmem:[%s1377_s1 + $0xf8] sm:$0xff]   ;;  %v1141_v38 = vld [vmem:[%s1377_s1 + $0x108] sm:$0xff]   ;;  %s994_s11 = sshll.u32 %s1386_s15, 3 }
  0x10   : > { %v1128_v26 = vld [vmem:[%s1377_s1 + $0x30] sm:$0xff]   ;;  %v1132_v30 = vld [vmem:[%s1377_s1 + $0x38] sm:$0xff]   ;;  %v1144_v41 = vld [vmem:[%s1377_s1 + $0x120] sm:$0xff]   ;;  %s259_s14 = scalar_lea.vmem %s1378_s2, %s994_s11  ;;  %s266_s21 = scalar_lea.vmem %s1379_s3, %s1386_s15 }
  0x11   : > { %1007 = vmatpush3.bf16.msra.mxu0 %v1112_v10  ;;  %v1129_v27 = vld [vmem:[%s1377_s1 + $0xb0] sm:$0xff]   ;;  %s1318_s12 = scalar_lea.vmem %s1376_s0, %s1075_s27  ;;  %v1133_v31 = vld [vmem:[%s1377_s1 + $0xb8] sm:$0xff]   ;;  %v1145_v42 = vld [vmem:[%s1377_s1 + $0x128] sm:$0xff]   ;;  %s272_s24 = scalar_lea.vmem %s1380_s4, %s1386_s15 }
  0x12   : > { %1029 = vmatpush3.bf16.msra.mxu1 %v1113_v11  ;;  %1008 = vmatprep.subr.bf16.mxu0 %v1114_v12  ;;  %v1134_v32 = vld [vmem:[%s1318_s12] ss:$20 sps:$4 sm:$0xff]   ;;  %v1136_v33 = vld [vmem:[%s1318_s12 + $0x4] ss:$20 sps:$4 sm:$0xff]   ;;  %v1137_v35 = vld [vmem:[%s1318_s12 + $0x8] ss:$20 sps:$4 sm:$0xff]  }
  0x13   : > { %1030 = vmatprep.subr.bf16.mxu1 %v1115_v13  ;;  %v1139_v36 = vld [vmem:[%s1318_s12 + $0xc] ss:$20 sps:$4 sm:$0xff]   ;;  %658 = vmatprep.mubr.bf16.mxu0 %v1136_v33  ;;  %v1142_v39 = vld [vmem:[%s1377_s1 + $0x110] sm:$0xff]   ;;  %v1143_v40 = vld [vmem:[%s1377_s1 + $0x118] sm:$0xff]  }
  0x14   : > { %699 = vmatprep.mubr.bf16.mxu1 %v1139_v36  ;;  %v1146_v43 = vld [vmem:[%s1377_s1 + $0x130] sm:$0xff]   ;;  %v1147_v44 = vld [vmem:[%s1377_s1 + $0x138] sm:$0xff]  }
  0x15   : > { %1009 = vmatpush3.bf16.msra.mxu0 %v1116_v14  ;;  %v1148_v45 = vld [vmem:[%s1318_s12 + $0x10] ss:$20 sps:$4 sm:$0xff]  }
  0x16   : > { %1031 = vmatpush3.bf16.msra.mxu1 %v1117_v15  ;;  %1010 = vmatprep.subr.bf16.mxu0 %v1118_v16 }
  0x17   : > { %1032 = vmatprep.subr.bf16.mxu1 %v1119_v17 }
  0x19   : > { %1011 = vmatpush3.bf16.msra.mxu0 %v1120_v18 }
  0x1a   : > { %1033 = vmatpush3.bf16.msra.mxu1 %v1121_v19  ;;  %1012 = vmatprep.subr.bf16.mxu0 %v1122_v20 }
  0x1b   : > { %1034 = vmatprep.subr.bf16.mxu1 %v1123_v21 }
  0x1d   : > { %1013 = vmatpush3.bf16.msra.mxu0 %v1124_v22 }
  0x1e   : > { %1035 = vmatpush3.bf16.msra.mxu1 %v1125_v23  ;;  %1014 = vmatprep.subr.bf16.mxu0 %v1126_v24 }
  0x1f   : > { %1036 = vmatprep.subr.bf16.mxu1 %v1127_v25 }
  0x21   : > { %1015 = vmatpush3.bf16.msra.mxu0 %v1128_v26 }
  0x22   : > { %1037 = vmatpush3.bf16.msra.mxu1 %v1129_v27  ;;  %1016 = vmatprep.subr.bf16.mxu0 %v1130_v28 }
  0x23   : > { %1038 = vmatprep.subr.bf16.mxu1 %v1131_v29 }
  0x25   : > { %1017 = vmatpush3.bf16.msra.mxu0 %v1132_v30 }
  0x26   : > { %1039 = vmatpush3.bf16.msra.mxu1 %v1133_v31  ;;  %1055 = vmatprep.subr.bf16.mxu0 %v1173_v34 }
  0x28   : > { %659 = vmatmul.mubr.bf16.vlgmr.msra.gmra.mrb[0].mxu0 %v1134_v32 }
  0x29   : > { %700 = vmatmul.mubr.bf16.vlgmr.msra.gmra.mrb[0].mxu1 %v1137_v35  ;;  %1056 = vmatpush3.bf16.msra.mxu0 %v1140_v37 }
  0x2a   : > { %1057 = vmatprep.subr.bf16.mxu0 %v1173_v34  ;;  %1071 = vmatprep.mubr.msk.bf16.mxu0 %vm1174_vm0, %v1173_v34 }
  0x2d   : > { %1058 = vmatpush3.bf16.msra.mxu0 %v1141_v38 }
  0x2e   : > { %1059 = vmatprep.subr.bf16.mxu0 %v1173_v34 }
  0x31   : > { %1060 = vmatpush3.bf16.msra.mxu0 %v1142_v39 }
  0x32   : > { %1061 = vmatprep.subr.bf16.mxu0 %v1173_v34 }
  0x35   : > { %1062 = vmatpush3.bf16.msra.mxu0 %v1143_v40 }
  0x36   : > { %1063 = vmatprep.subr.bf16.mxu0 %v1173_v34 }
  0x39   : > { %1064 = vmatpush3.bf16.msra.mxu0 %v1144_v41 }
  0x3a   : > { %1065 = vmatprep.subr.bf16.mxu0 %v1173_v34 }
  0x3d   : > { %1066 = vmatpush3.bf16.msra.mxu0 %v1145_v42 }
  0x3e   : > { %1067 = vmatprep.subr.bf16.mxu0 %v1173_v34 }
  0x41   : > { %1068 = vmatpush3.bf16.msra.mxu0 %v1146_v43 }
  0x42   : > { %1069 = vmatprep.subr.bf16.mxu0 %v1173_v34 }
  0x45   : > { %1070 = vmatpush3.bf16.msra.mxu0 %v1147_v44 }
  0x48   : > { %1072 = vmatmul.mubr.bf16.vlgmr.msra.gmra.mrb[4].mxu0 %v1148_v45 }
  0xfb   : > { %v1018_v46 = vpop.f32.mrb[0].mxu0 }
  0xfc   : > { %v1040_v47 = vpop.f32.mrb[0].mxu1  ;;  %v1019_v48 = vpop.f32.mrb[1].mxu0 }
  0xfd   : > { %v1020_v49 = vadd.f32 %v1019_v48, %v1018_v46  ;;  %v1041_v50 = vpop.f32.mrb[1].mxu1  ;;  %v1021_v51 = vpop.f32.mrb[2].mxu0 }
  0xfe   : > { %v1042_v52 = vadd.f32 %v1041_v50, %v1040_v47  ;;  %v1043_v53 = vpop.f32.mrb[2].mxu1  ;;  %v1022_v54 = vpop.f32.mrb[3].mxu0 }
  0xff   : > { %v1023_v55 = vadd.f32 %v1022_v54, %v1021_v51  ;;  %v1044_v56 = vpop.f32.mrb[3].mxu1 }
 0x100   : > { %v1045_v57 = vadd.f32 %v1044_v56, %v1043_v53  ;;  %v702_v58 = vadd.f32 %v1042_v52, %v1020_v49 }
 0x102   : > { %v705_v59 = vadd.f32 %v1045_v57, %v1023_v55 }
 0x11b   : > { %v742_v60 = vpop.f32.mrb[4].mxu0 }
 0x11c   : > { %v743_v61 = vadd.f32 %v742_v60, %v702_v58  ;;  %v1073_v62 = vpop.f32.mrb[5].mxu0 }
 0x11d   : > { %v745_v63 = vpop.f32.mrb[6].mxu0 }
 0x11e   : > { %v746_v0 = vadd.f32 %v745_v63, %v705_v59  ;;  %v1074_v1 = vpop.f32.mrb[7].mxu0  ;;  %v767_v2 = vmul.f32 %v743_v61, %v743_v61 }
 0x120   : > { %v1000_v3 = vpack.c.bf16 %v746_v0, %v743_v61  ;;  %v759_v4 = vadd.f32 %v746_v0, %v743_v61  ;;  %v768_v5 = vmul.f32 %v746_v0, %v746_v0 }
 0x122   : > { %1001 = vst [vmem:[%s259_s14] sm:$0xff] %v1000_v3   ;;  %v760_v6 = vrot.slane %v759_v4, 4  ;;  %v769_v7 = vadd.f32 %v768_v5, %v767_v2 }
 0x124   : > { %v761_v8 = vadd.f32 %v760_v6, %v759_v4  ;;  %v770_v9 = vrot.slane %v769_v7, 4 }
 0x126   : > { %v762_v10 = vrot.slane %v761_v8, 2  ;;  %v771_v11 = vadd.f32 %v770_v9, %v769_v7 }
 0x128   : > { %v763_v12 = vadd.f32 %v762_v10, %v761_v8  ;;  %v772_v13 = vrot.slane %v771_v11, 2 }
 0x12a   : > { %v764_v14 = vrot.slane %v763_v12, 1  ;;  %v773_v15 = vadd.f32 %v772_v13, %v771_v11 }
 0x12c   : > { %v765_v16 = vadd.f32 %v764_v14, %v763_v12  ;;  %v774_v17 = vrot.slane %v773_v15, 1 }
 0x12e   : > { %766 = vst [vmem:[%s266_s21] sm:$0x1] %v765_v16  ;;  %v775_v18 = vadd.f32 %v774_v17, %v773_v15 }
 0x130   : > { %776 = vst [vmem:[%s272_s24] sm:$0x1] %v775_v18 }
 0x131 PF: > { %s15_s17 = sadd.s32 1, %s1171_s17   ;;  %s1381_s15 = smov %s1167_s16 }
 0x132   : > { %p12_p5 = scmp.ge.s32.totalorder %s15_s17, 4   ;;  %s1382_s16 = smov %s1384_s18 }
 0x134   :  { %14 = sbr.rel (!%p12_p5) target bundleno = 2 (0x2), region = 82 }

// kernel: tile.53
= control target key start
LH: loop header
LB: loop body
LE: loop exit
PB: predicated region body
PF: predicated region fallthrough
CT: control target
= control target key end

     0   :  { %s22_s0 = inlined_call_operand.vmem [shape: f32[32], index: 0, kind: input, shape index: {}]   ;;  %s23_s1 = inlined_call_operand.vmem [shape: f32[4,32], index: 1, kind: output, shape index: {}]  }
   0x1   :  { %v4_v0 = vld [vmem:[%s22_s0] ss:$0 sm:$0xff] }
   0x2   :  { %5 = vst [vmem:[%s23_s1] sm:$0xf] %v4_v0 }

// kernel: tile.54
= control target key start
LH: loop header
LB: loop body
LE: loop exit
PB: predicated region body
PF: predicated region fallthrough
CT: control target
= control target key end

     0   :  { %vm7_vm0 = vcmask 261120   ;;  %s37_s8 = smov 32   ;;  %s38_s9 = smov 64   ;;  %vm13_vm1 = vcmask 1048320   ;;  %vm19_vm2 = vcmask 785920   ;;  %vm25_vm3 = vcmask 523520   ;;  %s55_s0 = inlined_call_operand.vmem [shape: f32[4,32], index: 0, kind: input, shape index: {}]   ;;  %s56_s1 = inlined_call_operand.vmem [shape: f32[1,128], index: 1, kind: output, shape index: {}]  }
   0x1   :  { %v4_v0 = vld [vmem:[%s55_s0] sm:$0xf]  ;;  %s36_s0 = smov 96  }
   0x2   :  { %5 = vst [vmem:[#allocation1] sm:$0xf] %v4_v0 }
   0x9   :  { %v10_v1 = vld [vmem:[#allocation1 + $0x3] sm:$0x1]   ;;  %v22_v2 = vld [vmem:[#allocation1 + $0x1] sm:$0x1]   ;;  %v6_v3 = vld [vmem:[#allocation1] sm:$0x1]  }
   0xa   :  { %11 = vrot.lane.b32.xlu0 %v10_v1, %s36_s0  ;;  %23 = vrot.lane.b32.xlu1 %v22_v2, %s37_s8  ;;  %v16_v4 = vld [vmem:[#allocation1 + $0x2] sm:$0x1]   ;;  %8 = vst.msk [vmem:[#allocation0] sm:$0x1] %vm7_vm0, %v6_v3  }
   0xe   :  { %17 = vrot.lane.b32.xlu0 %v16_v4, %s38_s9 }
  0x7c   :  { %v12_v5 = vpop.permute.xlu0 %11   ;;  %v24_v6 = vpop.permute.xlu1 %23  }
  0x7d   :  { %14 = vst.msk [vmem:[#allocation0] sm:$0x1] %vm13_vm1, %v12_v5  }
  0x80   :  { %v18_v7 = vpop.permute.xlu0 %17  }
  0x81   :  { %20 = vst.msk [vmem:[#allocation0] sm:$0x1] %vm19_vm2, %v18_v7  }
  0x82   :  { %26 = vst.msk [vmem:[#allocation0] sm:$0x1] %vm25_vm3, %v24_v6  }
  0x89   :  { %v30_v8 = vld [vmem:[#allocation0] sm:$0x1] }
  0x8a   :  { %32 = vst [vmem:[%s56_s1] sm:$0x1] %v30_v8 }

// kernel: generator_forward.34
= control target key start
LH: loop header
LB: loop body
LE: loop exit
PB: predicated region body
PF: predicated region fallthrough
CT: control target
= control target key end

     0   :  { %s564_s18 = smov 0   ;;  %s566_s19 = smov 0   ;;  %s614_s0 = inlined_call_operand.vmem [shape: bf16[2,16,128], index: 0, kind: input, shape index: {}]   ;;  %s615_s1 = inlined_call_operand.vmem [shape: f32[2,1,128], index: 1, kind: input, shape index: {}]   ;;  %s616_s2 = inlined_call_operand.vmem [shape: f32[2,1,128], index: 2, kind: input, shape index: {}]   ;;  %s617_s3 = inlined_call_operand.vmem [shape: f32[1,128], index: 3, kind: input, shape index: {}]   ;;  %s618_s4 = inlined_call_operand.vmem [shape: f32[1,128], index: 4, kind: input, shape index: {}]   ;;  %s619_s5 = inlined_call_operand.vmem [shape: bf16[2,16,128], index: 5, kind: output, shape index: {}]  }
   0x1   :  { %s568_s20 = smov 0  }
   0x2 LB: > { %s27_s21 = sadd.s32 1, %s528_s19  ;;  %p460_p0 = scmp.ge.s32.totalorder %s532_s20, 1  ;;  %s532_s20 = sphi %s568_s20, %s15_s20   ;;  %s528_s19 = sphi %s566_s19, %s621_s19   ;;  %s524_s18 = sphi %s564_s18, %s620_s18  }
   0x3   : > { %p29_p1 = scmp.ge.s32.totalorder %s27_s21, 2  ;;  %p224_p2 = scmp.lt.s32.totalorder %s532_s20, 3 }
   0x5   : > { %s623_s21 = smov (%p29_p1, %s27_s21), 0  ;;  %p225_p3 = pnand %p460_p0, %p224_p2 }
   0x6   : > { %p267_p4 = scmp.lt.s32.totalorder (!%p225_p3), %s524_s18, 1  ;;  %v304_v5 = vlaneseq (!%p225_p3)  ;;  %v465_v19 = vld [vmem:[%s617_s3] ss:$0 sm:$0xff] (!%p225_p3) }
   0x7   : > { %228 = sbr.rel (%p225_p3) target bundleno = 51 (0x33), region = 40  ;;  %v466_v22 = vld [vmem:[%s618_s4] ss:$0 sm:$0xff] (!%p225_p3) }
   0x8   : > { %v305_v8 = vshrl.u32 (!%p225_p3), %v304_v5, 7 }
   0xa   : > { %v306_v10 = vsub.s32 (!%p225_p3), 0, %v305_v8 }
   0xe   : > { %s625_s18 = smov (!%p267_p4, %s524_s18), 1 }
   0xf   : > { %s278_s24 = scalar_lea.vmem %s615_s1, %s625_s18  ;;  %s281_s27 = scalar_lea.vmem %s616_s2, %s625_s18 }
  0x10   : > { %v296_v0 = vld [vmem:[%s278_s24] sm:$0x1]  ;;  %s471_s28 = sshll.u32 %s625_s18, 3 }
  0x11   : > { %v297_v1 = vmul.f32 0.015625, %v296_v0  ;;  %v298_v2 = vld [vmem:[%s281_s27] sm:$0x1]  ;;  %s274_s6 = scalar_lea.vmem %s614_s0, %s471_s28  ;;  %s290_s13 = scalar_lea.vmem %s619_s5, %s471_s28 }
  0x12   : > { %v299_v3 = vmul.f32 0.015625, %v298_v2  ;;  %v476_v11 = vld [vmem:[%s274_s6] sm:$0xff]  }
  0x13   : > { %v300_v4 = vmul.f32 %v297_v1, %v297_v1  ;;  %v477_v12 = vunpack.c.l.bf16 %v476_v11  ;;  %v478_v13 = vunpack.c.h.bf16 %v476_v11  ;;  %v307_v14 = vrot.slane %v297_v1, %v306_v10 }
  0x15   : > { %v301_v6 = vsub.f32 %v299_v3, %v300_v4  ;;  %v309_v15 = vsub.f32 %v477_v12, %v307_v14  ;;  %v310_v16 = vsub.f32 %v478_v13, %v307_v14 }
  0x17   : > { %v302_v7 = vmax.f32 %v301_v6, 0.0 }
  0x19   : > { %v311_v9 = vadd.f32 1e-05, %v302_v7 }
  0x1b   : > { %508 = vrsqrt.f32 %v311_v9 }
  0x25   : > { %v509_v17 = vpop.eup %508 }
  0x26   : > { %v317_v18 = vrot.slane %v509_v17, %v306_v10 }
  0x28   : > { %v319_v20 = vmul.f32 %v317_v18, %v309_v15  ;;  %v320_v21 = vmul.f32 %v317_v18, %v310_v16 }
  0x2a   : > { %v328_v23 = vmul.f32 %v465_v19, %v319_v20  ;;  %v329_v24 = vmul.f32 %v465_v19, %v320_v21 }
  0x2c   : > { %v337_v25 = vadd.f32 %v466_v22, %v328_v23  ;;  %v338_v26 = vadd.f32 %v466_v22, %v329_v24 }
  0x2e   : > { %v339_v27 = vmax.f32 %v337_v25, 0.0  ;;  %v340_v28 = vmax.f32 %v338_v26, 0.0 }
  0x30   : > { %v482_v29 = vpack.c.bf16 %v340_v28, %v339_v27 }
  0x32   : > { %483 = vst [vmem:[%s290_s13] sm:$0xff] %v482_v29  }
  0x33 PF: > { %s15_s20 = sadd.s32 1, %s532_s20   ;;  %s620_s18 = smov %s528_s19 }
  0x34   : > { %p12_p5 = scmp.ge.s32.totalorder %s15_s20, 4   ;;  %s621_s19 = smov %s623_s21 }
  0x36   :  { %14 = sbr.rel (!%p12_p5) target bundleno = 2 (0x2), region = 76 }

// kernel: tile.64
= control target key start
LH: loop header
LB: loop body
LE: loop exit
PB: predicated region body
PF: predicated region fallthrough
CT: control target
= control target key end

     0   :  { %s29_s10 = smov 3  ;;  %s10_s11 = smov 3  ;;  %vm12_vm0 = vcmask 130048   ;;  %vm19_vm1 = vcmask 523648   ;;  %vm26_vm2 = vcmask 392448   ;;  %vm33_vm3 = vcmask 261248   ;;  %s67_s0 = inlined_call_operand.vmem [shape: f32[2,4,16], index: 0, kind: input, shape index: {}]   ;;  %s68_s1 = inlined_call_operand.vmem [shape: f32[2,64], index: 1, kind: output, shape index: {}]  }
   0x1   :  { %v41_v0 = vld [vmem:[%s67_s0 + $0x4] sm:$0xf]  ;;  %v8_v1 = vld [vmem:[%s67_s0] sm:$0xf]  ;;  %s15_s0 = smov 3  ;;  %s22_s12 = smov 3 }
   0x2   :  { %7 = vst [vmem:[#allocation1 + $0x8] sm:$0xf] %v41_v0  ;;  %9 = vst [vmem:[#allocation1] sm:$0xf] %v8_v1  ;;  %s45_s13 = smov 48   ;;  %s46_s14 = smov 16  }
   0x3   :  { %s47_s15 = smov 32  }
   0x9   :  { %v16_v2 = vld [vmem:[#allocation1 + $0x3] ss:$8 sm:%s15_s0]   ;;  %v30_v3 = vld [vmem:[#allocation1 + $0x1] ss:$8 sm:%s29_s10]   ;;  %v11_v4 = vld [vmem:[#allocation1] ss:$8 sm:%s10_s11]  }
   0xa   :  { %17 = vrot.lane.b32.xlu0 %v16_v2, %s45_s13  ;;  %31 = vrot.lane.b32.xlu1 %v30_v3, %s46_s14  ;;  %v23_v5 = vld [vmem:[#allocation1 + $0x2] ss:$8 sm:%s22_s12]   ;;  %13 = vst.msk [vmem:[#allocation0] sm:$0x3] %vm12_vm0, %v11_v4  }
   0xe   :  { %24 = vrot.lane.b32.xlu0 %v23_v5, %s47_s15 }
  0x7c   :  { %v18_v6 = vpop.permute.xlu0 %17   ;;  %v32_v7 = vpop.permute.xlu1 %31  }
  0x7d   :  { %20 = vst.msk [vmem:[#allocation0] sm:$0x3] %vm19_vm1, %v18_v6  }
  0x80   :  { %v25_v8 = vpop.permute.xlu0 %24  }
  0x81   :  { %27 = vst.msk [vmem:[#allocation0] sm:$0x3] %vm26_vm2, %v25_v8  }
  0x82   :  { %34 = vst.msk [vmem:[#allocation0] sm:$0x3] %vm33_vm3, %v32_v7  }
  0x89   :  { %v38_v9 = vld [vmem:[#allocation0] sm:$0x3] }
  0x8a   :  { %40 = vst [vmem:[%s68_s1] sm:$0x3] %v38_v9 }

// kernel: tile.73
= control target key start
LH: loop header
LB: loop body
LE: loop exit
PB: predicated region body
PF: predicated region fallthrough
CT: control target
= control target key end

     0   :  { %s22_s0 = inlined_call_operand.vmem [shape: f32[16], index: 0, kind: input, shape index: {}]   ;;  %s23_s1 = inlined_call_operand.vmem [shape: f32[4,16], index: 1, kind: output, shape index: {}]  }
   0x1   :  { %v4_v0 = vld [vmem:[%s22_s0] ss:$0 sm:$0xff] }
   0x2   :  { %5 = vst [vmem:[%s23_s1] sm:$0xf] %v4_v0 }

// kernel: tile.74
= control target key start
LH: loop header
LB: loop body
LE: loop exit
PB: predicated region body
PF: predicated region fallthrough
CT: control target
= control target key end

     0   :  { %vm7_vm0 = vcmask 130048   ;;  %s37_s8 = smov 16   ;;  %s38_s9 = smov 32   ;;  %vm13_vm1 = vcmask 523648   ;;  %vm19_vm2 = vcmask 392448   ;;  %vm25_vm3 = vcmask 261248   ;;  %s55_s0 = inlined_call_operand.vmem [shape: f32[4,16], index: 0, kind: input, shape index: {}]   ;;  %s56_s1 = inlined_call_operand.vmem [shape: f32[1,64], index: 1, kind: output, shape index: {}]  }
   0x1   :  { %v4_v0 = vld [vmem:[%s55_s0] sm:$0xf]  ;;  %s36_s0 = smov 48  }
   0x2   :  { %5 = vst [vmem:[#allocation1] sm:$0xf] %v4_v0 }
   0x9   :  { %v10_v1 = vld [vmem:[#allocation1 + $0x3] sm:$0x1]   ;;  %v22_v2 = vld [vmem:[#allocation1 + $0x1] sm:$0x1]   ;;  %v6_v3 = vld [vmem:[#allocation1] sm:$0x1]  }
   0xa   :  { %11 = vrot.lane.b32.xlu0 %v10_v1, %s36_s0  ;;  %23 = vrot.lane.b32.xlu1 %v22_v2, %s37_s8  ;;  %v16_v4 = vld [vmem:[#allocation1 + $0x2] sm:$0x1]   ;;  %8 = vst.msk [vmem:[#allocation0] sm:$0x1] %vm7_vm0, %v6_v3  }
   0xe   :  { %17 = vrot.lane.b32.xlu0 %v16_v4, %s38_s9 }
  0x7c   :  { %v12_v5 = vpop.permute.xlu0 %11   ;;  %v24_v6 = vpop.permute.xlu1 %23  }
  0x7d   :  { %14 = vst.msk [vmem:[#allocation0] sm:$0x1] %vm13_vm1, %v12_v5  }
  0x80   :  { %v18_v7 = vpop.permute.xlu0 %17  }
  0x81   :  { %20 = vst.msk [vmem:[#allocation0] sm:$0x1] %vm19_vm2, %v18_v7  }
  0x82   :  { %26 = vst.msk [vmem:[#allocation0] sm:$0x1] %vm25_vm3, %v24_v6  }
  0x89   :  { %v30_v8 = vld [vmem:[#allocation0] sm:$0x1] }
  0x8a   :  { %32 = vst [vmem:[%s56_s1] sm:$0x1] %v30_v8 }

// kernel: generator_forward.35
= control target key start
LH: loop header
LB: loop body
LE: loop exit
PB: predicated region body
PF: predicated region fallthrough
CT: control target
= control target key end

     0   :  { %s1188_s15 = smov 0   ;;  %s1190_s16 = smov 0   ;;  %s1329_s0 = inlined_call_operand.vmem [shape: bf16[2,64,384], index: 0, kind: input, shape index: {}]   ;;  %s1330_s1 = inlined_call_operand.vmem [shape: bf16[384,128], index: 1, kind: input, shape index: {}]   ;;  %s1331_s2 = inlined_call_operand.vmem [shape: bf16[2,64,128], index: 2, kind: output, shape index: {0}]   ;;  %s1332_s3 = inlined_call_operand.vmem [shape: f32[2,1,128], index: 3, kind: output, shape index: {1}]   ;;  %s1333_s4 = inlined_call_operand.vmem [shape: f32[2,1,128], index: 4, kind: output, shape index: {2}]  }
   0x1   :  { %s1192_s17 = smov 0  }
   0x2 LB: > { %s27_s18 = sadd.s32 1, %s1157_s16  ;;  %p916_p0 = scmp.ge.s32.totalorder %s1161_s17, 1  ;;  %s1161_s17 = sphi %s1192_s17, %s15_s17   ;;  %s1157_s16 = sphi %s1190_s16, %s1335_s16   ;;  %s1153_s15 = sphi %s1188_s15, %s1334_s15  }
   0x3   : > { %p29_p1 = scmp.ge.s32.totalorder %s27_s18, 2  ;;  %p193_p2 = scmp.lt.s32.totalorder %s1161_s17, 3 }
   0x5   : > { %s1337_s18 = smov (%p29_p1, %s27_s18), 0  ;;  %p194_p3 = pnand %p916_p0, %p193_p2 }
   0x6   : > { %v1099_v0 = vld [vmem:[%s1330_s1 + $0x40] sm:$0xff] (!%p194_p3)   ;;  %v1102_v3 = vld [vmem:[%s1330_s1 + $0x48] sm:$0xff] (!%p194_p3)   ;;  %v1105_v6 = vld [vmem:[%s1330_s1 + $0x50] sm:$0xff] (!%p194_p3)   ;;  %p241_p4 = scmp.lt.s32.totalorder (!%p194_p3), %s1153_s15, 1 }
   0x7   : > { %197 = sbr.rel (%p194_p3) target bundleno = 299 (0x12b), region = 28  ;;  %v1100_v1 = vld [vmem:[%s1330_s1] sm:$0xff] (!%p194_p3)   ;;  %998 = vmatprep.subr.bf16.mxu0 (!%p194_p3), %v1099_v0  ;;  %v1103_v4 = vld [vmem:[%s1330_s1 + $0x8] sm:$0xff] (!%p194_p3)   ;;  %v1106_v7 = vld [vmem:[%s1330_s1 + $0x10] sm:$0xff] (!%p194_p3)  }
   0x8   : > { %v1101_v2 = vld [vmem:[%s1330_s1 + $0x80] sm:$0xff] (!%p194_p3)   ;;  %999 = vmatpush3.bf16.msra.mxu0 (!%p194_p3), %v1100_v1  ;;  %v1104_v5 = vld [vmem:[%s1330_s1 + $0x88] sm:$0xff] (!%p194_p3)   ;;  %v1107_v8 = vld [vmem:[%s1330_s1 + $0x90] sm:$0xff] (!%p194_p3)  }
   0x9   : > { %1050 = vmatprep.subr.bf16.mxu1 (!%p194_p3), %v1101_v2  ;;  %1000 = vmatprep.subr.bf16.mxu0 (!%p194_p3), %v1102_v3  ;;  %v1108_v9 = vld [vmem:[%s1330_s1 + $0x58] sm:$0xff] (!%p194_p3)   ;;  %v1111_v12 = vld [vmem:[%s1330_s1 + $0x60] sm:$0xff] (!%p194_p3)   ;;  %v1114_v15 = vld [vmem:[%s1330_s1 + $0x68] sm:$0xff] (!%p194_p3)  }
   0xa   : > { %1051 = vmatpush3.bf16.msra.mxu1 (!%p194_p3), %v1101_v2  ;;  %v1109_v10 = vld [vmem:[%s1330_s1 + $0x18] sm:$0xff] (!%p194_p3)   ;;  %v1113_v13 = vld [vmem:[%s1330_s1 + $0xa0] sm:$0xff] (!%p194_p3)   ;;  %v1116_v16 = vld [vmem:[%s1330_s1 + $0xa8] sm:$0xff] (!%p194_p3)  }
   0xb   : > { %1052 = vmatprep.subr.bf16.mxu1 (!%p194_p3), %v1104_v5  ;;  %v1110_v11 = vld [vmem:[%s1330_s1 + $0x98] sm:$0xff] (!%p194_p3)   ;;  %v1112_v14 = vld [vmem:[%s1330_s1 + $0x20] sm:$0xff] (!%p194_p3)   ;;  %v1115_v17 = vld [vmem:[%s1330_s1 + $0x28] sm:$0xff] (!%p194_p3)  }
   0xc   : > { %1001 = vmatpush3.bf16.msra.mxu0 (!%p194_p3), %v1103_v4  ;;  %v1117_v18 = vld [vmem:[%s1330_s1 + $0x70] sm:$0xff] (!%p194_p3)   ;;  %v1120_v21 = vld [vmem:[%s1330_s1 + $0x78] sm:$0xff] (!%p194_p3)  }
   0xd   : > { %1002 = vmatprep.subr.bf16.mxu0 (!%p194_p3), %v1105_v6  ;;  %v1118_v19 = vld [vmem:[%s1330_s1 + $0x30] sm:$0xff] (!%p194_p3)   ;;  %v1122_v22 = vld [vmem:[%s1330_s1 + $0xb8] sm:$0xff] (!%p194_p3)  }
   0xe   : > { %1053 = vmatpush3.bf16.msra.mxu1 %v1104_v5  ;;  %s1339_s15 = smov (!%p241_p4, %s1153_s15), 1  ;;  %v1119_v20 = vld [vmem:[%s1330_s1 + $0xb0] sm:$0xff]   ;;  %v1121_v25 = vld [vmem:[%s1330_s1 + $0x38] sm:$0xff]  }
   0xf   : > { %1054 = vmatprep.subr.bf16.mxu1 %v1107_v8  ;;  %s1074_s5 = smul.u32 96, %s1339_s15  ;;  %s966_s27 = sshll.u32 %s1339_s15, 5 }
  0x10   : > { %1003 = vmatpush3.bf16.msra.mxu0 %v1106_v7  ;;  %s1306_s30 = scalar_lea.vmem %s1331_s2, %s966_s27  ;;  %s266_s7 = scalar_lea.vmem %s1332_s3, %s1339_s15 }
  0x11   : > { %1004 = vmatprep.subr.bf16.mxu0 %v1108_v9  ;;  %s1279_s20 = scalar_lea.vmem %s1329_s0, %s1074_s5  ;;  %s272_s10 = scalar_lea.vmem %s1333_s4, %s1339_s15 }
  0x12   : > { %1055 = vmatpush3.bf16.msra.mxu1 %v1107_v8  ;;  %v1125_v23 = vld [vmem:[%s1279_s20 + $0x4] ss:$12 sps:$4 sm:$0xff]   ;;  %v1126_v24 = vld [vmem:[%s1279_s20 + $0x8] ss:$12 sps:$4 sm:$0xff]   ;;  %v1123_v26 = vld [vmem:[%s1279_s20] ss:$12 sps:$4 sm:$0xff]  }
  0x13   : > { %1056 = vmatprep.subr.bf16.mxu1 %v1110_v11  ;;  %578 = vmatprep.mubr.bf16.mxu0 %v1125_v23  ;;  %v1128_v27 = vld [vmem:[%s1279_s20 + $0x1c] ss:$12 sps:$4 sm:$0xff]   ;;  %v1127_v28 = vld [vmem:[%s1279_s20 + $0x20] ss:$12 sps:$4 sm:$0xff]   ;;  %v1134_v29 = vld [vmem:[%s1279_s20 + $0x38] ss:$12 sps:$4 sm:$0xff]  }
  0x14   : > { %1005 = vmatpush3.bf16.msra.mxu0 %v1109_v10  ;;  %1066 = vmatprep.mubr.bf16.mxu1 %v1126_v24  ;;  %v1130_v30 = vld [vmem:[%s1279_s20 + $0x18] ss:$12 sps:$4 sm:$0xff]   ;;  %v1131_v31 = vld [vmem:[%s1279_s20 + $0x34] ss:$12 sps:$4 sm:$0xff]   ;;  %v1135_v32 = vld [vmem:[%s1279_s20 + $0x50] ss:$12 sps:$4 sm:$0xff]  }
  0x15   : > { %1006 = vmatprep.subr.bf16.mxu0 %v1111_v12  ;;  %v1133_v33 = vld [vmem:[%s1279_s20 + $0x30] ss:$12 sps:$4 sm:$0xff]   ;;  %v1136_v34 = vld [vmem:[%s1279_s20 + $0x4c] ss:$12 sps:$4 sm:$0xff]   ;;  %v1138_v35 = vld [vmem:[%s1279_s20 + $0x48] ss:$12 sps:$4 sm:$0xff]  }
  0x16   : > { %1057 = vmatpush3.bf16.msra.mxu1 %v1110_v11 }
  0x17   : > { %1058 = vmatprep.subr.bf16.mxu1 %v1113_v13 }
  0x18   : > { %1007 = vmatpush3.bf16.msra.mxu0 %v1112_v14 }
  0x19   : > { %1008 = vmatprep.subr.bf16.mxu0 %v1114_v15 }
  0x1a   : > { %1059 = vmatpush3.bf16.msra.mxu1 %v1113_v13 }
  0x1b   : > { %1060 = vmatprep.subr.bf16.mxu1 %v1116_v16 }
  0x1c   : > { %1009 = vmatpush3.bf16.msra.mxu0 %v1115_v17 }
  0x1d   : > { %1010 = vmatprep.subr.bf16.mxu0 %v1117_v18 }
  0x1e   : > { %1061 = vmatpush3.bf16.msra.mxu1 %v1116_v16 }
  0x1f   : > { %1062 = vmatprep.subr.bf16.mxu1 %v1119_v20 }
  0x20   : > { %1011 = vmatpush3.bf16.msra.mxu0 %v1118_v19 }
  0x21   : > { %1012 = vmatprep.subr.bf16.mxu0 %v1120_v21 }
  0x22   : > { %1063 = vmatpush3.bf16.msra.mxu1 %v1119_v20 }
  0x23   : > { %1064 = vmatprep.subr.bf16.mxu1 %v1122_v22 }
  0x24   : > { %1013 = vmatpush3.bf16.msra.mxu0 %v1121_v25 }
  0x26   : > { %1065 = vmatpush3.bf16.msra.mxu1 %v1122_v22 }
  0x27   : > { %579 = vmatmul.mubr.bf16.vlgmr.msra.gmra.mrb[0].mxu0 %v1123_v26 }
  0x28   : > { %586 = vmatprep.mubr.bf16.mxu0 %v1128_v27 }
  0x29   : > { %1067 = vmatmul.mubr.bf16.vlgmr.msra.gmra.mrb[0].mxu1 %v1127_v28 }
  0x2a   : > { %1070 = vmatprep.mubr.bf16.mxu1 %v1134_v29 }
  0x2f   : > { %587 = vmatmul.mubr.bf16.gmra.mrb[4].mxu0 %v1130_v30 }
  0x30   : > { %594 = vmatprep.mubr.bf16.mxu0 %v1131_v31 }
  0x31   : > { %1071 = vmatmul.mubr.bf16.gmra.mrb[4].mxu1 %v1135_v32 }
  0x37   : > { %595 = vmatmul.mubr.bf16.gmra.mrb[8].mxu0 %v1133_v33 }
  0x38   : > { %602 = vmatprep.mubr.bf16.mxu0 %v1136_v34 }
  0x3f   : > { %603 = vmatmul.mubr.bf16.gmra.mrb[12].mxu0 %v1138_v35 }
  0xfa   : > { %v1014_v36 = vpop.f32.mrb[0].mxu0 }
  0xfb   : > { %v1015_v37 = vpop.f32.mrb[1].mxu0 }
  0xfc   : > { %v1016_v38 = vadd.f32 %v1015_v37, %v1014_v36  ;;  %v1017_v39 = vpop.f32.mrb[2].mxu0  ;;  %v1068_v40 = vpop.f32.mrb[0].mxu1 }
  0xfd   : > { %v1018_v41 = vpop.f32.mrb[3].mxu0  ;;  %v645_v42 = vpop.f32.mrb[1].mxu1 }
  0xfe   : > { %v1019_v43 = vadd.f32 %v1018_v41, %v1017_v39  ;;  %v646_v44 = vadd.f32 %v1016_v38, %v645_v42  ;;  %v1069_v45 = vpop.f32.mrb[2].mxu1 }
  0xff   : > { %v648_v46 = vpop.f32.mrb[3].mxu1 }
 0x100   : > { %v649_v47 = vadd.f32 %v1019_v43, %v648_v46  ;;  %v730_v48 = vmul.f32 %v646_v44, %v646_v44 }
 0x102   : > { %v978_v49 = vpack.c.bf16 %v649_v47, %v646_v44  ;;  %v716_v50 = vadd.f32 %v649_v47, %v646_v44  ;;  %v731_v51 = vmul.f32 %v649_v47, %v649_v47  ;;  %v1020_v52 = vpop.f32.mrb[4].mxu0 }
 0x103   : > { %v1021_v53 = vpop.f32.mrb[5].mxu0 }
 0x104   : > { %979 = vst [vmem:[%s1306_s30] sm:$0xff] %v978_v49   ;;  %v738_v54 = vadd.f32 %v731_v51, %v730_v48  ;;  %v1022_v55 = vadd.f32 %v1021_v53, %v1020_v52  ;;  %v1023_v56 = vpop.f32.mrb[6].mxu0  ;;  %v1072_v57 = vpop.f32.mrb[4].mxu1 }
 0x105   : > { %v1024_v58 = vpop.f32.mrb[7].mxu0  ;;  %v661_v59 = vpop.f32.mrb[5].mxu1 }
 0x106   : > { %v654_v60 = vadd.f32 %v1068_v40, %v1022_v55  ;;  %v1025_v61 = vadd.f32 %v1024_v58, %v1023_v56  ;;  %v1073_v62 = vpop.f32.mrb[6].mxu1 }
 0x107   : > { %v664_v63 = vpop.f32.mrb[7].mxu1 }
 0x108   : > { %v717_v0 = vadd.f32 %v716_v50, %v654_v60  ;;  %v732_v1 = vmul.f32 %v654_v60, %v654_v60  ;;  %v657_v2 = vadd.f32 %v1069_v45, %v1025_v61 }
 0x10a   : > { %v739_v3 = vadd.f32 %v738_v54, %v732_v1  ;;  %v983_v4 = vpack.c.bf16 %v657_v2, %v654_v60  ;;  %v733_v5 = vmul.f32 %v657_v2, %v657_v2  ;;  %v1026_v6 = vpop.f32.mrb[8].mxu0  ;;  %v718_v7 = vadd.f32 %v717_v0, %v657_v2 }
 0x10b   : > { %v1027_v8 = vpop.f32.mrb[9].mxu0 }
 0x10c   : > { %995 = vst [vmem:[%s1306_s30 + $0x8] sm:$0xff] %v983_v4   ;;  %v1028_v9 = vadd.f32 %v1027_v8, %v1026_v6  ;;  %v1029_v10 = vpop.f32.mrb[10].mxu0  ;;  %v740_v11 = vadd.f32 %v739_v3, %v733_v5 }
 0x10d   : > { %v1030_v12 = vpop.f32.mrb[11].mxu0 }
 0x10e   : > { %v1031_v13 = vadd.f32 %v1030_v12, %v1029_v10  ;;  %v662_v14 = vadd.f32 %v1028_v9, %v661_v59 }
 0x110   : > { %v719_v15 = vadd.f32 %v718_v7, %v662_v14  ;;  %v734_v16 = vmul.f32 %v662_v14, %v662_v14  ;;  %v665_v17 = vadd.f32 %v1031_v13, %v664_v63 }
 0x112   : > { %v741_v18 = vadd.f32 %v740_v11, %v734_v16  ;;  %v988_v19 = vpack.c.bf16 %v665_v17, %v662_v14  ;;  %v720_v20 = vadd.f32 %v719_v15, %v665_v17  ;;  %v735_v21 = vmul.f32 %v665_v17, %v665_v17  ;;  %v1032_v22 = vpop.f32.mrb[12].mxu0 }
 0x113   : > { %v1033_v23 = vpop.f32.mrb[13].mxu0 }
 0x114   : > { %996 = vst [vmem:[%s1306_s30 + $0x10] sm:$0xff] %v988_v19   ;;  %v742_v24 = vadd.f32 %v741_v18, %v735_v21  ;;  %v1034_v25 = vadd.f32 %v1033_v23, %v1032_v22  ;;  %v1035_v26 = vpop.f32.mrb[14].mxu0 }
 0x115   : > { %v1036_v27 = vpop.f32.mrb[15].mxu0 }
 0x116   : > { %v670_v28 = vadd.f32 %v1072_v57, %v1034_v25  ;;  %v1037_v29 = vadd.f32 %v1036_v27, %v1035_v26 }
 0x118   : > { %v721_v30 = vadd.f32 %v720_v20, %v670_v28  ;;  %v736_v31 = vmul.f32 %v670_v28, %v670_v28  ;;  %v673_v32 = vadd.f32 %v1073_v62, %v1037_v29 }
 0x11a   : > { %v743_v33 = vadd.f32 %v742_v24, %v736_v31  ;;  %v993_v34 = vpack.c.bf16 %v673_v32, %v670_v28  ;;  %v722_v35 = vadd.f32 %v721_v30, %v673_v32  ;;  %v737_v36 = vmul.f32 %v673_v32, %v673_v32 }
 0x11c   : > { %997 = vst [vmem:[%s1306_s30 + $0x18] sm:$0xff] %v993_v34   ;;  %v723_v37 = vrot.slane %v722_v35, 4  ;;  %v744_v38 = vadd.f32 %v743_v33, %v737_v36 }
 0x11e   : > { %v724_v39 = vadd.f32 %v723_v37, %v722_v35  ;;  %v745_v40 = vrot.slane %v744_v38, 4 }
 0x120   : > { %v725_v41 = vrot.slane %v724_v39, 2  ;;  %v746_v42 = vadd.f32 %v745_v40, %v744_v38 }
 0x122   : > { %v726_v43 = vadd.f32 %v725_v41, %v724_v39  ;;  %v747_v44 = vrot.slane %v746_v42, 2 }
 0x124   : > { %v727_v45 = vrot.slane %v726_v43, 1  ;;  %v748_v46 = vadd.f32 %v747_v44, %v746_v42 }
 0x126   : > { %v728_v47 = vadd.f32 %v727_v45, %v726_v43  ;;  %v749_v48 = vrot.slane %v748_v46, 1 }
 0x128   : > { %729 = vst [vmem:[%s266_s7] sm:$0x1] %v728_v47  ;;  %v750_v49 = vadd.f32 %v749_v48, %v748_v46 }
 0x12a   : > { %751 = vst [vmem:[%s272_s10] sm:$0x1] %v750_v49 }
 0x12b PF: > { %s15_s17 = sadd.s32 1, %s1161_s17   ;;  %s1334_s15 = smov %s1157_s16 }
 0x12c   : > { %p12_p5 = scmp.ge.s32.totalorder %s15_s17, 4   ;;  %s1335_s16 = smov %s1337_s18 }
 0x12e   :  { %14 = sbr.rel (!%p12_p5) target bundleno = 2 (0x2), region = 82 }

// kernel: generator_forward.36
= control target key start
LH: loop header
LB: loop body
LE: loop exit
PB: predicated region body
PF: predicated region fallthrough
CT: control target
= control target key end

     0   :  { %s681_s18 = smov 0   ;;  %s683_s19 = smov 0   ;;  %s735_s0 = inlined_call_operand.vmem [shape: bf16[2,64,128], index: 0, kind: input, shape index: {}]   ;;  %s736_s1 = inlined_call_operand.vmem [shape: f32[2,1,128], index: 1, kind: input, shape index: {}]   ;;  %s737_s2 = inlined_call_operand.vmem [shape: f32[2,1,128], index: 2, kind: input, shape index: {}]   ;;  %s738_s3 = inlined_call_operand.vmem [shape: f32[1,128], index: 3, kind: input, shape index: {}]   ;;  %s739_s4 = inlined_call_operand.vmem [shape: f32[1,128], index: 4, kind: input, shape index: {}]   ;;  %s740_s5 = inlined_call_operand.vmem [shape: bf16[2,64,128], index: 5, kind: output, shape index: {}]  }
   0x1   :  { %s685_s20 = smov 0  }
   0x2 LB: > { %s27_s21 = sadd.s32 1, %s645_s19  ;;  %p532_p0 = scmp.ge.s32.totalorder %s649_s20, 1  ;;  %s649_s20 = sphi %s685_s20, %s15_s20   ;;  %s645_s19 = sphi %s683_s19, %s742_s19   ;;  %s641_s18 = sphi %s681_s18, %s741_s18  }
   0x3   : > { %p29_p1 = scmp.ge.s32.totalorder %s27_s21, 2  ;;  %p224_p2 = scmp.lt.s32.totalorder %s649_s20, 3 }
   0x5   : > { %s744_s21 = smov (%p29_p1, %s27_s21), 0  ;;  %p225_p3 = pnand %p532_p0, %p224_p2 }
   0x6   : > { %p267_p4 = scmp.lt.s32.totalorder (!%p225_p3), %s641_s18, 1  ;;  %v316_v5 = vlaneseq (!%p225_p3)  ;;  %v537_v34 = vld [vmem:[%s738_s3] ss:$0 sm:$0xff] (!%p225_p3) }
   0x7   : > { %228 = sbr.rel (%p225_p3) target bundleno = 52 (0x34), region = 40  ;;  %v538_v39 = vld [vmem:[%s739_s4] ss:$0 sm:$0xff] (!%p225_p3) }
   0x8   : > { %v317_v8 = vshrl.u32 (!%p225_p3), %v316_v5, 7 }
   0xa   : > { %v318_v11 = vsub.s32 (!%p225_p3), 0, %v317_v8 }
   0xe   : > { %s746_s18 = smov (!%p267_p4, %s641_s18), 1 }
   0xf   : > { %s278_s24 = scalar_lea.vmem %s736_s1, %s746_s18  ;;  %s281_s27 = scalar_lea.vmem %s737_s2, %s746_s18 }
  0x10   : > { %v308_v0 = vld [vmem:[%s278_s24] sm:$0x1]  ;;  %s549_s28 = sshll.u32 %s746_s18, 5 }
  0x11   : > { %v309_v1 = vmul.f32 0.00390625, %v308_v0  ;;  %v310_v2 = vld [vmem:[%s281_s27] sm:$0x1]  ;;  %s274_s6 = scalar_lea.vmem %s735_s0, %s549_s28  ;;  %s290_s13 = scalar_lea.vmem %s740_s5, %s549_s28 }
  0x12   : > { %v311_v3 = vmul.f32 0.00390625, %v310_v2  ;;  %v560_v10 = vld [vmem:[%s274_s6] sm:$0xff]   ;;  %v595_v12 = vld [vmem:[%s274_s6 + $0x8] sm:$0xff]   ;;  %v596_v13 = vld [vmem:[%s274_s6 + $0x10] sm:$0xff]  }
  0x13   : > { %v312_v4 = vmul.f32 %v309_v1, %v309_v1  ;;  %v597_v14 = vld [vmem:[%s274_s6 + $0x18] sm:$0xff]   ;;  %v561_v15 = vunpack.c.l.bf16 %v560_v10  ;;  %v562_v16 = vunpack.c.h.bf16 %v560_v10  ;;  %v565_v17 = vunpack.c.l.bf16 %v595_v12 }
  0x14   : > { %v566_v18 = vunpack.c.h.bf16 %v595_v12  ;;  %v319_v19 = vrot.slane %v309_v1, %v318_v11  ;;  %v569_v20 = vunpack.c.l.bf16 %v596_v13  ;;  %v570_v21 = vunpack.c.h.bf16 %v596_v13 }
  0x15   : > { %v313_v6 = vsub.f32 %v311_v3, %v312_v4  ;;  %v573_v22 = vunpack.c.l.bf16 %v597_v14  ;;  %v574_v23 = vunpack.c.h.bf16 %v597_v14 }
  0x16   : > { %v321_v24 = vsub.f32 %v561_v15, %v319_v19  ;;  %v322_v25 = vsub.f32 %v562_v16, %v319_v19  ;;  %v323_v26 = vsub.f32 %v565_v17, %v319_v19  ;;  %v324_v27 = vsub.f32 %v566_v18, %v319_v19 }
  0x17   : > { %v314_v7 = vmax.f32 %v313_v6, 0.0  ;;  %v325_v29 = vsub.f32 %v569_v20, %v319_v19  ;;  %v326_v30 = vsub.f32 %v570_v21, %v319_v19  ;;  %v327_v31 = vsub.f32 %v573_v22, %v319_v19 }
  0x18   : > { %v328_v32 = vsub.f32 %v574_v23, %v319_v19 }
  0x19   : > { %v329_v9 = vadd.f32 1e-05, %v314_v7 }
  0x1b   : > { %625 = vrsqrt.f32 %v329_v9 }
  0x25   : > { %v626_v28 = vpop.eup %625 }
  0x26   : > { %v335_v33 = vrot.slane %v626_v28, %v318_v11 }
  0x28   : > { %v337_v35 = vmul.f32 %v335_v33, %v321_v24  ;;  %v338_v36 = vmul.f32 %v335_v33, %v322_v25  ;;  %v339_v37 = vmul.f32 %v335_v33, %v323_v26  ;;  %v340_v38 = vmul.f32 %v335_v33, %v324_v27 }
  0x29   : > { %v341_v40 = vmul.f32 %v335_v33, %v325_v29  ;;  %v342_v41 = vmul.f32 %v335_v33, %v326_v30  ;;  %v343_v42 = vmul.f32 %v335_v33, %v327_v31  ;;  %v344_v43 = vmul.f32 %v335_v33, %v328_v32 }
  0x2a   : > { %v352_v44 = vmul.f32 %v537_v34, %v337_v35  ;;  %v353_v45 = vmul.f32 %v537_v34, %v338_v36  ;;  %v354_v46 = vmul.f32 %v537_v34, %v339_v37  ;;  %v355_v47 = vmul.f32 %v537_v34, %v340_v38 }
  0x2b   : > { %v356_v48 = vmul.f32 %v537_v34, %v341_v40  ;;  %v357_v49 = vmul.f32 %v537_v34, %v342_v41  ;;  %v358_v50 = vmul.f32 %v537_v34, %v343_v42  ;;  %v359_v51 = vmul.f32 %v537_v34, %v344_v43 }
  0x2c   : > { %v367_v52 = vadd.f32 %v538_v39, %v352_v44  ;;  %v368_v53 = vadd.f32 %v538_v39, %v353_v45  ;;  %v369_v54 = vadd.f32 %v538_v39, %v354_v46  ;;  %v370_v55 = vadd.f32 %v538_v39, %v355_v47 }
  0x2d   : > { %v371_v56 = vadd.f32 %v538_v39, %v356_v48  ;;  %v372_v57 = vadd.f32 %v538_v39, %v357_v49  ;;  %v373_v58 = vadd.f32 %v538_v39, %v358_v50  ;;  %v374_v59 = vadd.f32 %v538_v39, %v359_v51 }
  0x2e   : > { %v375_v60 = vmax.f32 %v367_v52, 0.0  ;;  %v376_v61 = vmax.f32 %v368_v53, 0.0  ;;  %v377_v62 = vmax.f32 %v369_v54, 0.0  ;;  %v378_v63 = vmax.f32 %v370_v55, 0.0 }
  0x2f   : > { %v379_v0 = vmax.f32 %v371_v56, 0.0  ;;  %v380_v1 = vmax.f32 %v372_v57, 0.0  ;;  %v381_v2 = vmax.f32 %v373_v58, 0.0  ;;  %v382_v3 = vmax.f32 %v374_v59, 0.0 }
  0x30   : > { %v578_v4 = vpack.c.bf16 %v376_v61, %v375_v60  ;;  %v583_v5 = vpack.c.bf16 %v378_v63, %v377_v62 }
  0x31   : > { %v588_v6 = vpack.c.bf16 %v380_v1, %v379_v0  ;;  %v593_v7 = vpack.c.bf16 %v382_v3, %v381_v2 }
  0x32   : > { %579 = vst [vmem:[%s290_s13] sm:$0xff] %v578_v4   ;;  %598 = vst [vmem:[%s290_s13 + $0x8] sm:$0xff] %v583_v5  }
  0x33   : > { %599 = vst [vmem:[%s290_s13 + $0x10] sm:$0xff] %v588_v6   ;;  %600 = vst [vmem:[%s290_s13 + $0x18] sm:$0xff] %v593_v7  }
  0x34 PF: > { %s15_s20 = sadd.s32 1, %s649_s20   ;;  %s741_s18 = smov %s645_s19 }
  0x35   : > { %p12_p5 = scmp.ge.s32.totalorder %s15_s20, 4   ;;  %s742_s19 = smov %s744_s21 }
  0x37   :  { %14 = sbr.rel (!%p12_p5) target bundleno = 2 (0x2), region = 76 }

// kernel: generator_forward.37
= control target key start
LH: loop header
LB: loop body
LE: loop exit
PB: predicated region body
PF: predicated region fallthrough
CT: control target
= control target key end

     0   :  { %s3084_s9 = smov 0   ;;  %s3086_s10 = smov 0   ;;  %s3638_s0 = inlined_call_operand.vmem [shape: bf16[2,256,896], index: 0, kind: input, shape index: {}]   ;;  %s3639_s1 = inlined_call_operand.vmem [shape: bf16[896,128], index: 1, kind: input, shape index: {}]   ;;  %s3640_s2 = inlined_call_operand.vmem [shape: f32[2,256,128], index: 2, kind: output, shape index: {}]  }
   0x1   :  { %s3088_s11 = smov 0  }
   0x2 LB: > { %s24_s12 = sadd.s32 1, %s3063_s10  ;;  %p2141_p0 = scmp.ge.s32.totalorder %s3067_s11, 1  ;;  %s3067_s11 = sphi %s3088_s11, %s12_s11   ;;  %s3063_s10 = sphi %s3086_s10, %s3642_s10   ;;  %s3059_s9 = sphi %s3084_s9, %s3641_s9  }
   0x3   : > { %p26_p1 = scmp.ge.s32.totalorder %s24_s12, 2  ;;  %p134_p2 = scmp.lt.s32.totalorder %s3067_s11, 3 }
   0x5   : > { %s3644_s12 = smov (%p26_p1, %s24_s12), 0  ;;  %p135_p3 = pnand %p2141_p0, %p134_p2 }
   0x6   : > { %v2765_v0 = vld [vmem:[%s3639_s1 + $0x40] sm:$0xff] (!%p135_p3)   ;;  %v2767_v2 = vld [vmem:[%s3639_s1 + $0x48] sm:$0xff] (!%p135_p3)   ;;  %p166_p4 = scmp.lt.s32.totalorder (!%p135_p3), %s3059_s9, 1  ;;  %v2769_v4 = vld [vmem:[%s3639_s1 + $0x50] sm:$0xff] (!%p135_p3)  }
   0x7   : > { %138 = sbr.rel (%p135_p3) target bundleno = 489 (0x1e9), region = 28  ;;  %v2766_v1 = vld [vmem:[%s3639_s1] sm:$0xff] (!%p135_p3)   ;;  %2316 = vmatprep.subr.bf16.mxu0 (!%p135_p3), %v2765_v0  ;;  %2724 = vmatprep.subr.bf16.mxu1 (!%p135_p3), %v2765_v0  ;;  %v2768_v3 = vld [vmem:[%s3639_s1 + $0x8] sm:$0xff] (!%p135_p3)   ;;  %v2770_v5 = vld [vmem:[%s3639_s1 + $0x10] sm:$0xff] (!%p135_p3)  }
   0x8   : > { %2317 = vmatpush3.bf16.msra.mxu0 (!%p135_p3), %v2766_v1  ;;  %2732 = vmatpush3.bf16.msra.mxu1 (!%p135_p3), %v2766_v1  ;;  %v2771_v6 = vld [vmem:[%s3639_s1 + $0x58] sm:$0xff] (!%p135_p3)   ;;  %v2773_v8 = vld [vmem:[%s3639_s1 + $0x60] sm:$0xff] (!%p135_p3)   ;;  %v2775_v10 = vld [vmem:[%s3639_s1 + $0x68] sm:$0xff] (!%p135_p3)  }
   0x9   : > { %2318 = vmatprep.subr.bf16.mxu0 (!%p135_p3), %v2767_v2  ;;  %2725 = vmatprep.subr.bf16.mxu1 (!%p135_p3), %v2767_v2  ;;  %v2772_v7 = vld [vmem:[%s3639_s1 + $0x18] sm:$0xff] (!%p135_p3)   ;;  %v2774_v9 = vld [vmem:[%s3639_s1 + $0x20] sm:$0xff] (!%p135_p3)   ;;  %v2776_v13 = vld [vmem:[%s3639_s1 + $0x28] sm:$0xff] (!%p135_p3)  }
   0xa   : > { %v2777_v14 = vld [vmem:[%s3639_s1 + $0x70] sm:$0xff] (!%p135_p3)   ;;  %v2779_v16 = vld [vmem:[%s3639_s1 + $0x78] sm:$0xff] (!%p135_p3)   ;;  %v2787_v18 = vld [vmem:[%s3639_s1 + $0xc0] sm:$0xff] (!%p135_p3)  }
   0xb   : > { %v2778_v15 = vld [vmem:[%s3639_s1 + $0x30] sm:$0xff] (!%p135_p3)   ;;  %v2780_v17 = vld [vmem:[%s3639_s1 + $0x38] sm:$0xff] (!%p135_p3)   ;;  %v2788_v21 = vld [vmem:[%s3639_s1 + $0x140] sm:$0xff] (!%p135_p3)  }
   0xc   : > { %2319 = vmatpush3.bf16.msra.mxu0 (!%p135_p3), %v2768_v3  ;;  %2733 = vmatpush3.bf16.msra.mxu1 (!%p135_p3), %v2768_v3  ;;  %v2789_v22 = vld [vmem:[%s3639_s1 + $0x80] sm:$0xff] (!%p135_p3)   ;;  %v2791_v24 = vld [vmem:[%s3639_s1 + $0xc8] sm:$0xff] (!%p135_p3)   ;;  %v2799_v32 = vld [vmem:[%s3639_s1 + $0xd0] sm:$0xff] (!%p135_p3)  }
   0xd   : > { %2320 = vmatprep.subr.bf16.mxu0 (!%p135_p3), %v2769_v4  ;;  %2726 = vmatprep.subr.bf16.mxu1 (!%p135_p3), %v2769_v4  ;;  %v2790_v23 = vld [vmem:[%s3639_s1 + $0x100] sm:$0xff] (!%p135_p3)   ;;  %v2802_v27 = vld [vmem:[%s3639_s1 + $0x148] sm:$0xff] (!%p135_p3)   ;;  %v2800_v33 = vld [vmem:[%s3639_s1 + $0x90] sm:$0xff] (!%p135_p3)  }
   0xe   : > { %s3646_s9 = smov (!%p166_p4, %s3059_s9), 1  ;;  %v2792_v28 = vld [vmem:[%s3639_s1 + $0x88] sm:$0xff]   ;;  %v2801_v34 = vld [vmem:[%s3639_s1 + $0xd8] sm:$0xff]   ;;  %v2811_v38 = vld [vmem:[%s3639_s1 + $0xe0] sm:$0xff]  }
   0xf   : > { %s2740_s27 = smul.u32 896, %s3646_s9  ;;  %v2804_v29 = vld [vmem:[%s3639_s1 + $0x108] sm:$0xff]   ;;  %v2803_v37 = vld [vmem:[%s3639_s1 + $0x98] sm:$0xff]   ;;  %v2822_v41 = vld [vmem:[%s3639_s1 + $0x150] sm:$0xff]  }
  0x10   : > { %2321 = vmatpush3.bf16.msra.mxu0 %v2770_v5  ;;  %2734 = vmatpush3.bf16.msra.mxu1 %v2770_v5  ;;  %v2812_v42 = vld [vmem:[%s3639_s1 + $0xa0] sm:$0xff]   ;;  %v2813_v43 = vld [vmem:[%s3639_s1 + $0xe8] sm:$0xff]   ;;  %v2824_v44 = vld [vmem:[%s3639_s1 + $0x110] sm:$0xff]  }
  0x11   : > { %2322 = vmatprep.subr.bf16.mxu0 %v2771_v6  ;;  %2727 = vmatprep.subr.bf16.mxu1 %v2771_v6  ;;  %s3135_s6 = scalar_lea.vmem %s3638_s0, %s2740_s27  ;;  %v2814_v47 = vld [vmem:[%s3639_s1 + $0xa8] sm:$0xff]   ;;  %v2821_v48 = vld [vmem:[%s3639_s1 + $0xf0] sm:$0xff]   ;;  %v2833_v51 = vld [vmem:[%s3639_s1 + $0x158] sm:$0xff]  }
  0x12   : > { %v2783_v11 = vld [vmem:[%s3135_s6 + $0x4] ss:$28 sps:$4 sm:$0xff]   ;;  %v2793_v25 = vld [vmem:[%s3135_s6 + $0x3c] ss:$28 sps:$4 sm:$0xff]   ;;  %v2805_v35 = vld [vmem:[%s3135_s6 + $0x74] ss:$28 sps:$4 sm:$0xff]  }
  0x13   : > { %v2786_v12 = vld [vmem:[%s3135_s6 + $0x2a4] ss:$28 sps:$4 sm:$0xff]   ;;  %1371 = vmatprep.mubr.bf16.mxu0 %v2783_v11  ;;  %v2795_v26 = vld [vmem:[%s3135_s6 + $0x2dc] ss:$28 sps:$4 sm:$0xff]   ;;  %v2807_v36 = vld [vmem:[%s3135_s6 + $0x314] ss:$28 sps:$4 sm:$0xff]  }
  0x14   : > { %2323 = vmatpush3.bf16.msra.mxu0 %v2772_v7  ;;  %2735 = vmatpush3.bf16.msra.mxu1 %v2772_v7  ;;  %v2781_v19 = vld [vmem:[%s3135_s6] ss:$28 sps:$4 sm:$0xff]   ;;  %v2797_v30 = vld [vmem:[%s3135_s6 + $0x38] ss:$28 sps:$4 sm:$0xff]   ;;  %v2809_v39 = vld [vmem:[%s3135_s6 + $0x70] ss:$28 sps:$4 sm:$0xff]  }
  0x15   : > { %2324 = vmatprep.subr.bf16.mxu0 %v2773_v8  ;;  %2728 = vmatprep.subr.bf16.mxu1 %v2773_v8  ;;  %v2784_v20 = vld [vmem:[%s3135_s6 + $0x2a0] ss:$28 sps:$4 sm:$0xff]   ;;  %v2798_v31 = vld [vmem:[%s3135_s6 + $0x2d8] ss:$28 sps:$4 sm:$0xff]   ;;  %v2810_v40 = vld [vmem:[%s3135_s6 + $0x310] ss:$28 sps:$4 sm:$0xff]  }
  0x16   : > { %1467 = vmatprep.mubr.bf16.mxu1 %v2786_v12  ;;  %v2815_v45 = vld [vmem:[%s3135_s6 + $0xac] ss:$28 sps:$4 sm:$0xff]   ;;  %v2823_v52 = vld [vmem:[%s3639_s1 + $0xb0] sm:$0xff]   ;;  %v2835_v53 = vld [vmem:[%s3639_s1 + $0x118] sm:$0xff]  }
  0x17   : > { %v2817_v46 = vld [vmem:[%s3135_s6 + $0x34c] ss:$28 sps:$4 sm:$0xff]   ;;  %v2827_v54 = vld [vmem:[%s3135_s6 + $0xe4] ss:$28 sps:$4 sm:$0xff]   ;;  %v2825_v55 = vld [vmem:[%s3639_s1 + $0xf8] sm:$0xff]  }
  0x18   : > { %2325 = vmatpush3.bf16.msra.mxu0 %v2774_v9  ;;  %2736 = vmatpush3.bf16.msra.mxu1 %v2774_v9  ;;  %v2819_v49 = vld [vmem:[%s3135_s6 + $0xa8] ss:$28 sps:$4 sm:$0xff]   ;;  %v2826_v57 = vld [vmem:[%s3639_s1 + $0xb8] sm:$0xff]   ;;  %v2842_v6 = vld [vmem:[%s3135_s6 + $0x154] ss:$28 sps:$4 sm:$0xff]  }
  0x19   : > { %2326 = vmatprep.subr.bf16.mxu0 %v2775_v10  ;;  %2729 = vmatprep.subr.bf16.mxu1 %v2775_v10  ;;  %v2820_v50 = vld [vmem:[%s3135_s6 + $0x348] ss:$28 sps:$4 sm:$0xff]   ;;  %v2832_v62 = vld [vmem:[%s3135_s6 + $0xe0] ss:$28 sps:$4 sm:$0xff]   ;;  %v2840_v4 = vld [vmem:[%s3135_s6 + $0x118] ss:$28 sps:$4 sm:$0xff]  }
  0x1a   : > { %v2831_v56 = vld [vmem:[%s3135_s6 + $0xc] ss:$28 sps:$4 sm:$0xff]   ;;  %v2834_v58 = vld [vmem:[%s3639_s1 + $0x180] sm:$0xff]   ;;  %v2836_v63 = vld [vmem:[%s3135_s6 + $0x11c] ss:$28 sps:$4 sm:$0xff]  }
  0x1b   : > { %v2829_v59 = vld [vmem:[%s3135_s6 + $0x8] ss:$28 sps:$4 sm:$0xff]   ;;  %v2841_v5 = vld [vmem:[%s3135_s6 + $0x40] ss:$28 sps:$4 sm:$0xff]   ;;  %v2865_v7 = vld [vmem:[%s3639_s1 + $0x190] sm:$0xff]  }
  0x1c   : > { %2327 = vmatpush3.bf16.msra.mxu0 %v2776_v13  ;;  %2737 = vmatpush3.bf16.msra.mxu1 %v2776_v13  ;;  %v2848_v60 = vld [vmem:[%s3639_s1 + $0x160] sm:$0xff]   ;;  %v2850_v1 = vld [vmem:[%s3639_s1 + $0x188] sm:$0xff]   ;;  %v2844_v8 = vld [vmem:[%s3135_s6 + $0x7c] ss:$28 sps:$4 sm:$0xff]  }
  0x1d   : > { %2328 = vmatprep.subr.bf16.mxu0 %v2777_v14  ;;  %2730 = vmatprep.subr.bf16.mxu1 %v2777_v14  ;;  %v2849_v61 = vld [vmem:[%s3639_s1 + $0x120] sm:$0xff]   ;;  %v2857_v2 = vld [vmem:[%s3639_s1 + $0x168] sm:$0xff]   ;;  %v2872_v9 = vld [vmem:[%s3639_s1 + $0x170] sm:$0xff]  }
  0x1e   : > { %v2838_v0 = vld [vmem:[%s3135_s6 + $0x44] ss:$28 sps:$4 sm:$0xff]   ;;  %v2858_v3 = vld [vmem:[%s3639_s1 + $0x128] sm:$0xff]   ;;  %v2873_v10 = vld [vmem:[%s3639_s1 + $0x130] sm:$0xff]  }
  0x1f   : > { %v2846_v11 = vld [vmem:[%s3135_s6 + $0x150] ss:$28 sps:$4 sm:$0xff]   ;;  %v2847_v12 = vld [vmem:[%s3135_s6 + $0x78] ss:$28 sps:$4 sm:$0xff]  }
  0x20   : > { %2329 = vmatpush3.bf16.msra.mxu0 %v2778_v15  ;;  %2738 = vmatpush3.bf16.msra.mxu1 %v2778_v15  ;;  %v2851_v13 = vld [vmem:[%s3135_s6 + $0x18c] ss:$28 sps:$4 sm:$0xff]   ;;  %v2853_v14 = vld [vmem:[%s3135_s6 + $0xb4] ss:$28 sps:$4 sm:$0xff]   ;;  %v2880_v15 = vld [vmem:[%s3639_s1 + $0x178] sm:$0xff]  }
  0x21   : > { %2330 = vmatprep.subr.bf16.mxu0 %v2779_v16  ;;  %2731 = vmatprep.subr.bf16.mxu1 %v2779_v16  ;;  %v2881_v16 = vld [vmem:[%s3639_s1 + $0x198] sm:$0xff]  }
  0x24   : > { %2331 = vmatpush3.bf16.msra.mxu0 %v2780_v17  ;;  %2739 = vmatpush3.bf16.msra.mxu1 %v2780_v17  ;;  %v2882_v17 = vld [vmem:[%s3639_s1 + $0x138] sm:$0xff]  }
  0x25   : > { %2428 = vmatprep.subr.bf16.mxu1 %v2787_v18  ;;  %2540 = vmatprep.subr.bf16.mxu0 %v2788_v21  ;;  %v2855_v18 = vld [vmem:[%s3135_s6 + $0x188] ss:$28 sps:$4 sm:$0xff]  }
  0x26   : > { %v2861_v21 = vld [vmem:[%s3135_s6 + $0xec] ss:$28 sps:$4 sm:$0xff]  }
  0x27   : > { %1372 = vmatmul.mubr.bf16.vlgmr.msra.gmra.mrb[0].mxu0 %v2781_v19  ;;  %1468 = vmatmul.mubr.bf16.vlgmr.msra.gmra.mrb[0].mxu1 %v2784_v20  ;;  %v2856_v19 = vld [vmem:[%s3135_s6 + $0xb0] ss:$28 sps:$4 sm:$0xff]   ;;  %v2859_v20 = vld [vmem:[%s3135_s6 + $0x1c4] ss:$28 sps:$4 sm:$0xff]  }
  0x28   : > { %2429 = vmatpush3.bf16.msra.mxu1 %v2789_v22  ;;  %2541 = vmatpush3.bf16.msra.mxu0 %v2790_v23  ;;  %v2895_v22 = vld [vmem:[%s3639_s1 + $0x1a0] sm:$0xff]  }
  0x29   : > { %2430 = vmatprep.subr.bf16.mxu1 %v2791_v24  ;;  %1379 = vmatprep.mubr.bf16.mxu0 %v2793_v25  ;;  %v2863_v23 = vld [vmem:[%s3135_s6 + $0x1c0] ss:$28 sps:$4 sm:$0xff]   ;;  %v2864_v24 = vld [vmem:[%s3135_s6 + $0xe8] ss:$28 sps:$4 sm:$0xff]  }
  0x2a   : > { %1475 = vmatprep.mubr.bf16.mxu1 %v2795_v26  ;;  %2542 = vmatprep.subr.bf16.mxu0 %v2802_v27  ;;  %v2908_v25 = vld [vmem:[%s3639_s1 + $0x1a8] sm:$0xff]   ;;  %v2866_v26 = vld [vmem:[%s3135_s6 + $0x1fc] ss:$28 sps:$4 sm:$0xff]   ;;  %v2868_v27 = vld [vmem:[%s3135_s6 + $0x124] ss:$28 sps:$4 sm:$0xff]  }
  0x2c   : > { %2431 = vmatpush3.bf16.msra.mxu1 %v2792_v28  ;;  %2543 = vmatpush3.bf16.msra.mxu0 %v2804_v29  ;;  %v2921_v28 = vld [vmem:[%s3639_s1 + $0x1b0] sm:$0xff]  }
  0x2d   : > { %2432 = vmatprep.subr.bf16.mxu1 %v2799_v32  ;;  %2544 = vmatprep.subr.bf16.mxu0 %v2822_v41  ;;  %v2870_v29 = vld [vmem:[%s3135_s6 + $0x1f8] ss:$28 sps:$4 sm:$0xff]  }
  0x2e   : > { %v2876_v32 = vld [vmem:[%s3135_s6 + $0x15c] ss:$28 sps:$4 sm:$0xff]   ;;  %v2893_v41 = vld [vmem:[%s3135_s6 + $0x14] ss:$28 sps:$4 sm:$0xff]  }
  0x2f   : > { %1380 = vmatmul.mubr.bf16.gmra.mrb[4].mxu0 %v2797_v30  ;;  %1476 = vmatmul.mubr.bf16.gmra.mrb[4].mxu1 %v2798_v31  ;;  %v2871_v30 = vld [vmem:[%s3135_s6 + $0x120] ss:$28 sps:$4 sm:$0xff]   ;;  %v2874_v31 = vld [vmem:[%s3135_s6 + $0x234] ss:$28 sps:$4 sm:$0xff]  }
  0x30   : > { %2433 = vmatpush3.bf16.msra.mxu1 %v2800_v33  ;;  %1387 = vmatprep.mubr.bf16.mxu0 %v2805_v35  ;;  %v2934_v33 = vld [vmem:[%s3639_s1 + $0x1b8] sm:$0xff]  }
  0x31   : > { %2434 = vmatprep.subr.bf16.mxu1 %v2801_v34  ;;  %1483 = vmatprep.mubr.bf16.mxu1 %v2807_v36  ;;  %v2878_v34 = vld [vmem:[%s3135_s6 + $0x230] ss:$28 sps:$4 sm:$0xff]   ;;  %v2879_v35 = vld [vmem:[%s3135_s6 + $0x158] ss:$28 sps:$4 sm:$0xff]  }
  0x32   : > { %2545 = vmatpush3.bf16.msra.mxu0 %v2824_v44  ;;  %v2883_v36 = vld [vmem:[%s3135_s6 + $0x26c] ss:$28 sps:$4 sm:$0xff]   ;;  %v2896_v44 = vld [vmem:[%s3135_s6 + $0x204] ss:$28 sps:$4 sm:$0xff]  }
  0x33   : > { %2546 = vmatprep.subr.bf16.mxu0 %v2833_v51  ;;  %v2907_v51 = vld [vmem:[%s3135_s6 + $0x80] ss:$28 sps:$4 sm:$0xff]  }
  0x34   : > { %2435 = vmatpush3.bf16.msra.mxu1 %v2803_v37  ;;  %v2885_v37 = vld [vmem:[%s3135_s6 + $0x194] ss:$28 sps:$4 sm:$0xff]  }
  0x35   : > { %2436 = vmatprep.subr.bf16.mxu1 %v2811_v38  ;;  %v2887_v38 = vld [vmem:[%s3135_s6 + $0x268] ss:$28 sps:$4 sm:$0xff]  }
  0x36   : > { %2547 = vmatpush3.bf16.msra.mxu0 %v2835_v53  ;;  %v2911_v53 = vld [vmem:[%s3135_s6 + $0xbc] ss:$28 sps:$4 sm:$0xff]  }
  0x37   : > { %1388 = vmatmul.mubr.bf16.gmra.mrb[8].mxu0 %v2809_v39  ;;  %1484 = vmatmul.mubr.bf16.gmra.mrb[8].mxu1 %v2810_v40  ;;  %v2888_v39 = vld [vmem:[%s3135_s6 + $0x190] ss:$28 sps:$4 sm:$0xff]  }
  0x38   : > { %2437 = vmatpush3.bf16.msra.mxu1 %v2812_v42  ;;  %1395 = vmatprep.mubr.bf16.mxu0 %v2815_v45  ;;  %v2889_v40 = vld [vmem:[%s3135_s6 + $0x1cc] ss:$28 sps:$4 sm:$0xff]  }
  0x39   : > { %2438 = vmatprep.subr.bf16.mxu1 %v2813_v43  ;;  %1491 = vmatprep.mubr.bf16.mxu1 %v2817_v46  ;;  %v2891_v42 = vld [vmem:[%s3135_s6 + $0x10] ss:$28 sps:$4 sm:$0xff]   ;;  %v2894_v43 = vld [vmem:[%s3135_s6 + $0x1c8] ss:$28 sps:$4 sm:$0xff]   ;;  %v2900_v46 = vld [vmem:[%s3135_s6 + $0x200] ss:$28 sps:$4 sm:$0xff]  }
  0x3a   : > { %2548 = vmatprep.subr.bf16.mxu0 %v2848_v60  ;;  %v2898_v45 = vld [vmem:[%s3135_s6 + $0x4c] ss:$28 sps:$4 sm:$0xff]   ;;  %v2922_v60 = vld [vmem:[%s3135_s6 + $0x2e4] ss:$28 sps:$4 sm:$0xff]  }
  0x3b   : > { %2549 = vmatpush3.bf16.msra.mxu0 %v2849_v61  ;;  %v2924_v61 = vld [vmem:[%s3135_s6 + $0x12c] ss:$28 sps:$4 sm:$0xff]  }
  0x3c   : > { %2439 = vmatpush3.bf16.msra.mxu1 %v2814_v47  ;;  %2550 = vmatprep.subr.bf16.mxu0 %v2857_v2  ;;  %v2901_v47 = vld [vmem:[%s3135_s6 + $0x48] ss:$28 sps:$4 sm:$0xff]   ;;  %v2932_v2 = vld [vmem:[%s3135_s6 + $0x318] ss:$28 sps:$4 sm:$0xff]  }
  0x3d   : > { %2440 = vmatprep.subr.bf16.mxu1 %v2821_v48  ;;  %v2902_v48 = vld [vmem:[%s3135_s6 + $0x23c] ss:$28 sps:$4 sm:$0xff]  }
  0x3f   : > { %1396 = vmatmul.mubr.bf16.gmra.mrb[12].mxu0 %v2819_v49  ;;  %1492 = vmatmul.mubr.bf16.gmra.mrb[12].mxu1 %v2820_v50  ;;  %v2904_v49 = vld [vmem:[%s3135_s6 + $0x84] ss:$28 sps:$4 sm:$0xff]   ;;  %v2906_v50 = vld [vmem:[%s3135_s6 + $0x238] ss:$28 sps:$4 sm:$0xff]  }
  0x40   : > { %2441 = vmatpush3.bf16.msra.mxu1 %v2823_v52  ;;  %1403 = vmatprep.mubr.bf16.mxu0 %v2827_v54  ;;  %v2909_v52 = vld [vmem:[%s3135_s6 + $0x274] ss:$28 sps:$4 sm:$0xff]  }
  0x41   : > { %2442 = vmatprep.subr.bf16.mxu1 %v2825_v55  ;;  %1532 = vmatprep.mubr.bf16.mxu1 %v2831_v56  ;;  %v2913_v54 = vld [vmem:[%s3135_s6 + $0x270] ss:$28 sps:$4 sm:$0xff]   ;;  %v2914_v55 = vld [vmem:[%s3135_s6 + $0xb8] ss:$28 sps:$4 sm:$0xff]  }
  0x42   : > { %2551 = vmatpush3.bf16.msra.mxu0 %v2858_v3  ;;  %v2915_v56 = vld [vmem:[%s3135_s6 + $0x2ac] ss:$28 sps:$4 sm:$0xff]   ;;  %v2933_v3 = vld [vmem:[%s3135_s6 + $0x160] ss:$28 sps:$4 sm:$0xff]  }
  0x43   : > { %2552 = vmatprep.subr.bf16.mxu0 %v2872_v9  ;;  %v2943_v9 = vld [vmem:[%s3135_s6 + $0x18] ss:$28 sps:$4 sm:$0xff]  }
  0x44   : > { %2443 = vmatpush3.bf16.msra.mxu1 %v2826_v57  ;;  %v2917_v57 = vld [vmem:[%s3135_s6 + $0xf4] ss:$28 sps:$4 sm:$0xff]  }
  0x45   : > { %2676 = vmatprep.subr.bf16.mxu1 %v2834_v58 }
  0x46   : > { %2553 = vmatpush3.bf16.msra.mxu0 %v2873_v10  ;;  %v2944_v10 = vld [vmem:[%s3135_s6 + $0x1d0] ss:$28 sps:$4 sm:$0xff]  }
  0x47   : > { %1404 = vmatmul.mubr.bf16.gmra.mrb[16].mxu0 %v2832_v62  ;;  %1533 = vmatmul.mubr.bf16.vlgmr.msra.gmra.mrb[16].mxu1 %v2829_v59  ;;  %v2920_v59 = vld [vmem:[%s3135_s6 + $0xf0] ss:$28 sps:$4 sm:$0xff]   ;;  %v2926_v62 = vld [vmem:[%s3135_s6 + $0x2e0] ss:$28 sps:$4 sm:$0xff]  }
  0x48   : > { %2677 = vmatpush3.bf16.msra.mxu1 %v2834_v58  ;;  %1411 = vmatprep.mubr.bf16.mxu0 %v2836_v63  ;;  %v2919_v58 = vld [vmem:[%s3135_s6 + $0x2a8] ss:$28 sps:$4 sm:$0xff]  }
  0x49   : > { %1540 = vmatprep.mubr.bf16.mxu1 %v2838_v0  ;;  %2678 = vmatprep.subr.bf16.mxu1 %v2850_v1  ;;  %v2927_v63 = vld [vmem:[%s3135_s6 + $0x128] ss:$28 sps:$4 sm:$0xff]   ;;  %v2928_v0 = vld [vmem:[%s3135_s6 + $0x31c] ss:$28 sps:$4 sm:$0xff]  }
  0x4a   : > { %2554 = vmatprep.subr.bf16.mxu0 %v2880_v15  ;;  %v2950_v15 = vld [vmem:[%s3135_s6 + $0xc0] ss:$28 sps:$4 sm:$0xff]  }
  0x4b   : > { %2555 = vmatpush3.bf16.msra.mxu0 %v2882_v17  ;;  %v2953_v17 = vld [vmem:[%s3135_s6 + $0xf8] ss:$28 sps:$4 sm:$0xff]  }
  0x4c   : > { %2679 = vmatpush3.bf16.msra.mxu1 %v2850_v1  ;;  %v2930_v1 = vld [vmem:[%s3135_s6 + $0x164] ss:$28 sps:$4 sm:$0xff]  }
  0x4d   : > { %2680 = vmatprep.subr.bf16.mxu1 %v2865_v7 }
  0x4f   : > { %1412 = vmatmul.mubr.bf16.gmra.mrb[20].mxu0 %v2840_v4  ;;  %1541 = vmatmul.mubr.bf16.gmra.mrb[20].mxu1 %v2841_v5  ;;  %v2935_v4 = vld [vmem:[%s3135_s6 + $0x354] ss:$28 sps:$4 sm:$0xff]   ;;  %v2937_v5 = vld [vmem:[%s3135_s6 + $0x19c] ss:$28 sps:$4 sm:$0xff]  }
  0x50   : > { %1419 = vmatprep.mubr.bf16.mxu0 %v2842_v6  ;;  %1548 = vmatprep.mubr.bf16.mxu1 %v2844_v8  ;;  %v2939_v6 = vld [vmem:[%s3135_s6 + $0x350] ss:$28 sps:$4 sm:$0xff]  }
  0x51   : > { %2681 = vmatpush3.bf16.msra.mxu1 %v2865_v7  ;;  %v2940_v7 = vld [vmem:[%s3135_s6 + $0x198] ss:$28 sps:$4 sm:$0xff]  }
  0x52   : > { %2682 = vmatprep.subr.bf16.mxu1 %v2881_v16  ;;  %v2941_v8 = vld [vmem:[%s3135_s6 + $0x1d4] ss:$28 sps:$4 sm:$0xff]  }
  0x55   : > { %2683 = vmatpush3.bf16.msra.mxu1 %v2881_v16  ;;  %v2951_v16 = vld [vmem:[%s3135_s6 + $0x244] ss:$28 sps:$4 sm:$0xff]  }
  0x56   : > { %2684 = vmatprep.subr.bf16.mxu1 %v2895_v22 }
  0x57   : > { %1420 = vmatmul.mubr.bf16.gmra.mrb[24].mxu0 %v2846_v11  ;;  %1549 = vmatmul.mubr.bf16.gmra.mrb[24].mxu1 %v2847_v12  ;;  %v2945_v11 = vld [vmem:[%s3135_s6 + $0x50] ss:$28 sps:$4 sm:$0xff]  }
  0x58   : > { %1427 = vmatprep.mubr.bf16.mxu0 %v2851_v13  ;;  %1556 = vmatprep.mubr.bf16.mxu1 %v2853_v14  ;;  %v2946_v12 = vld [vmem:[%s3135_s6 + $0x20c] ss:$28 sps:$4 sm:$0xff]  }
  0x59   : > { %2685 = vmatpush3.bf16.msra.mxu1 %v2895_v22  ;;  %v2948_v13 = vld [vmem:[%s3135_s6 + $0x88] ss:$28 sps:$4 sm:$0xff]   ;;  %v2959_v22 = vld [vmem:[%s3135_s6 + $0x278] ss:$28 sps:$4 sm:$0xff]  }
  0x5a   : > { %2686 = vmatprep.subr.bf16.mxu1 %v2908_v25  ;;  %v2949_v14 = vld [vmem:[%s3135_s6 + $0x208] ss:$28 sps:$4 sm:$0xff]  }
  0x5d   : > { %2687 = vmatpush3.bf16.msra.mxu1 %v2908_v25  ;;  %v2963_v25 = vld [vmem:[%s3135_s6 + $0x1d8] ss:$28 sps:$4 sm:$0xff]  }
  0x5e   : > { %2688 = vmatprep.subr.bf16.mxu1 %v2921_v28 }
  0x5f   : > { %1428 = vmatmul.mubr.bf16.gmra.mrb[28].mxu0 %v2855_v18  ;;  %1557 = vmatmul.mubr.bf16.gmra.mrb[28].mxu1 %v2856_v19  ;;  %v2954_v18 = vld [vmem:[%s3135_s6 + $0x240] ss:$28 sps:$4 sm:$0xff]   ;;  %v2955_v19 = vld [vmem:[%s3135_s6 + $0x130] ss:$28 sps:$4 sm:$0xff]  }
  0x60   : > { %1435 = vmatprep.mubr.bf16.mxu0 %v2859_v20  ;;  %1564 = vmatprep.mubr.bf16.mxu1 %v2861_v21  ;;  %v2956_v20 = vld [vmem:[%s3135_s6 + $0x27c] ss:$28 sps:$4 sm:$0xff]   ;;  %v2958_v21 = vld [vmem:[%s3135_s6 + $0x168] ss:$28 sps:$4 sm:$0xff]  }
  0x61   : > { %2689 = vmatpush3.bf16.msra.mxu1 %v2921_v28  ;;  %v2966_v28 = vld [vmem:[%s3135_s6 + $0x2ec] ss:$28 sps:$4 sm:$0xff]  }
  0x62   : > { %2690 = vmatprep.subr.bf16.mxu1 %v2934_v33 }
  0x65   : > { %2691 = vmatpush3.bf16.msra.mxu1 %v2934_v33  ;;  %v2973_v33 = vld [vmem:[%s3135_s6 + $0x2b8] ss:$28 sps:$4 sm:$0xff]  }
  0x67   : > { %1436 = vmatmul.mubr.bf16.gmra.mrb[32].mxu0 %v2863_v23  ;;  %1565 = vmatmul.mubr.bf16.gmra.mrb[32].mxu1 %v2864_v24  ;;  %v2960_v23 = vld [vmem:[%s3135_s6 + $0x1a0] ss:$28 sps:$4 sm:$0xff]   ;;  %v2961_v24 = vld [vmem:[%s3135_s6 + $0x2b4] ss:$28 sps:$4 sm:$0xff]  }
  0x68   : > { %1443 = vmatprep.mubr.bf16.mxu0 %v2866_v26  ;;  %1572 = vmatprep.mubr.bf16.mxu1 %v2868_v27  ;;  %v2964_v26 = vld [vmem:[%s3135_s6 + $0x2b0] ss:$28 sps:$4 sm:$0xff]  }
  0x69   : > { %v2965_v27 = vld [vmem:[%s3135_s6 + $0x210] ss:$28 sps:$4 sm:$0xff]  }
  0x6f   : > { %1444 = vmatmul.mubr.bf16.gmra.mrb[36].mxu0 %v2870_v29  ;;  %1573 = vmatmul.mubr.bf16.gmra.mrb[36].mxu1 %v2871_v30  ;;  %v2968_v29 = vld [vmem:[%s3135_s6 + $0x248] ss:$28 sps:$4 sm:$0xff]  }
  0x70   : > { %1451 = vmatprep.mubr.bf16.mxu0 %v2874_v31  ;;  %1580 = vmatprep.mubr.bf16.mxu1 %v2876_v32  ;;  %v2969_v30 = vld [vmem:[%s3135_s6 + $0x2e8] ss:$28 sps:$4 sm:$0xff]   ;;  %v2970_v31 = vld [vmem:[%s3135_s6 + $0x280] ss:$28 sps:$4 sm:$0xff]  }
  0x71   : > { %v2971_v32 = vld [vmem:[%s3135_s6 + $0x324] ss:$28 sps:$4 sm:$0xff]  }
  0x77   : > { %1452 = vmatmul.mubr.bf16.gmra.mrb[40].mxu0 %v2878_v34  ;;  %1581 = vmatmul.mubr.bf16.gmra.mrb[40].mxu1 %v2879_v35  ;;  %v2974_v34 = vld [vmem:[%s3135_s6 + $0x320] ss:$28 sps:$4 sm:$0xff]   ;;  %v2975_v35 = vld [vmem:[%s3135_s6 + $0x2f0] ss:$28 sps:$4 sm:$0xff]  }
  0x78   : > { %1459 = vmatprep.mubr.bf16.mxu0 %v2883_v36  ;;  %1588 = vmatprep.mubr.bf16.mxu1 %v2885_v37  ;;  %v2976_v36 = vld [vmem:[%s3135_s6 + $0x35c] ss:$28 sps:$4 sm:$0xff]   ;;  %v2978_v37 = vld [vmem:[%s3135_s6 + $0x328] ss:$28 sps:$4 sm:$0xff]  }
  0x7f   : > { %1460 = vmatmul.mubr.bf16.gmra.mrb[44].mxu0 %v2887_v38  ;;  %1589 = vmatmul.mubr.bf16.gmra.mrb[44].mxu1 %v2888_v39 }
  0x80   : > { %1596 = vmatprep.mubr.bf16.mxu1 %v2889_v40  ;;  %1693 = vmatprep.mubr.bf16.mxu0 %v2893_v41 }
  0x87   : > { %1597 = vmatmul.mubr.bf16.gmra.mrb[48].mxu1 %v2894_v43  ;;  %1694 = vmatmul.mubr.bf16.vlgmr.msra.gmra.mrb[48].mxu0 %v2891_v42  ;;  %v2979_v42 = vld [vmem:[%s3135_s6 + $0x358] ss:$28 sps:$4 sm:$0xff]   ;;  %v2980_v43 = vld [vmem:[%s3135_s6 + $0x360] ss:$28 sps:$4 sm:$0xff]   ;;  %s2315_s6 = sshll.u32 %s3646_s9, 8 }
  0x88   : > { %1604 = vmatprep.mubr.bf16.mxu1 %v2896_v44  ;;  %1701 = vmatprep.mubr.bf16.mxu0 %v2898_v45  ;;  %s3557_s15 = scalar_lea.vmem %s3640_s2, %s2315_s6 }
  0x8f   : > { %1605 = vmatmul.mubr.bf16.gmra.mrb[52].mxu1 %v2900_v46  ;;  %1702 = vmatmul.mubr.bf16.gmra.mrb[52].mxu0 %v2901_v47 }
  0x90   : > { %1612 = vmatprep.mubr.bf16.mxu1 %v2902_v48  ;;  %1709 = vmatprep.mubr.bf16.mxu0 %v2904_v49 }
  0x97   : > { %1613 = vmatmul.mubr.bf16.gmra.mrb[56].mxu1 %v2906_v50  ;;  %1710 = vmatmul.mubr.bf16.gmra.mrb[56].mxu0 %v2907_v51 }
  0x98   : > { %1620 = vmatprep.mubr.bf16.mxu1 %v2909_v52  ;;  %1717 = vmatprep.mubr.bf16.mxu0 %v2911_v53 }
  0x9f   : > { %1621 = vmatmul.mubr.bf16.gmra.mrb[60].mxu1 %v2913_v54  ;;  %1718 = vmatmul.mubr.bf16.gmra.mrb[60].mxu0 %v2914_v55 }
  0xa0   : > { %1628 = vmatprep.mubr.bf16.mxu1 %v2915_v56  ;;  %1725 = vmatprep.mubr.bf16.mxu0 %v2917_v57 }
  0xa7   : > { %1629 = vmatmul.mubr.bf16.gmra.mrb[64].mxu1 %v2919_v58  ;;  %1726 = vmatmul.mubr.bf16.gmra.mrb[64].mxu0 %v2920_v59 }
  0xa8   : > { %1636 = vmatprep.mubr.bf16.mxu1 %v2922_v60  ;;  %1733 = vmatprep.mubr.bf16.mxu0 %v2924_v61 }
  0xaf   : > { %1637 = vmatmul.mubr.bf16.gmra.mrb[68].mxu1 %v2926_v62  ;;  %1734 = vmatmul.mubr.bf16.gmra.mrb[68].mxu0 %v2927_v63 }
  0xb0   : > { %1644 = vmatprep.mubr.bf16.mxu1 %v2928_v0  ;;  %1741 = vmatprep.mubr.bf16.mxu0 %v2930_v1 }
  0xb7   : > { %1645 = vmatmul.mubr.bf16.gmra.mrb[72].mxu1 %v2932_v2  ;;  %1742 = vmatmul.mubr.bf16.gmra.mrb[72].mxu0 %v2933_v3 }
  0xb8   : > { %1652 = vmatprep.mubr.bf16.mxu1 %v2935_v4  ;;  %1749 = vmatprep.mubr.bf16.mxu0 %v2937_v5 }
  0xbf   : > { %1653 = vmatmul.mubr.bf16.gmra.mrb[76].mxu1 %v2939_v6  ;;  %1750 = vmatmul.mubr.bf16.gmra.mrb[76].mxu0 %v2940_v7 }
  0xc0   : > { %1757 = vmatprep.mubr.bf16.mxu0 %v2941_v8  ;;  %2692 = vmatprep.mubr.bf16.mxu1 %v2943_v9 }
  0xc7   : > { %1758 = vmatmul.mubr.bf16.gmra.mrb[80].mxu0 %v2944_v10  ;;  %2693 = vmatmul.mubr.bf16.vlgmr.msra.gmra.mrb[80].mxu1 %v2945_v11 }
  0xc8   : > { %1765 = vmatprep.mubr.bf16.mxu0 %v2946_v12  ;;  %2696 = vmatprep.mubr.bf16.mxu1 %v2948_v13 }
  0xcf   : > { %1766 = vmatmul.mubr.bf16.gmra.mrb[84].mxu0 %v2949_v14  ;;  %2697 = vmatmul.mubr.bf16.gmra.mrb[84].mxu1 %v2950_v15 }
  0xd0   : > { %1773 = vmatprep.mubr.bf16.mxu0 %v2951_v16  ;;  %2700 = vmatprep.mubr.bf16.mxu1 %v2953_v17 }
  0xd7   : > { %1774 = vmatmul.mubr.bf16.gmra.mrb[88].mxu0 %v2954_v18  ;;  %2701 = vmatmul.mubr.bf16.gmra.mrb[88].mxu1 %v2955_v19 }
  0xd8   : > { %1781 = vmatprep.mubr.bf16.mxu0 %v2956_v20  ;;  %2704 = vmatprep.mubr.bf16.mxu1 %v2958_v21 }
  0xdf   : > { %1782 = vmatmul.mubr.bf16.gmra.mrb[92].mxu0 %v2959_v22  ;;  %2705 = vmatmul.mubr.bf16.gmra.mrb[92].mxu1 %v2960_v23 }
  0xe0   : > { %1789 = vmatprep.mubr.bf16.mxu0 %v2961_v24  ;;  %2708 = vmatprep.mubr.bf16.mxu1 %v2963_v25 }
  0xe7   : > { %1790 = vmatmul.mubr.bf16.gmra.mrb[96].mxu0 %v2964_v26  ;;  %2709 = vmatmul.mubr.bf16.gmra.mrb[96].mxu1 %v2965_v27 }
  0xe8   : > { %1797 = vmatprep.mubr.bf16.mxu0 %v2966_v28  ;;  %2712 = vmatprep.mubr.bf16.mxu1 %v2968_v29 }
  0xef   : > { %1798 = vmatmul.mubr.bf16.gmra.mrb[100].mxu0 %v2969_v30  ;;  %2713 = vmatmul.mubr.bf16.gmra.mrb[100].mxu1 %v2970_v31 }
  0xf0   : > { %1805 = vmatprep.mubr.bf16.mxu0 %v2971_v32  ;;  %2716 = vmatprep.mubr.bf16.mxu1 %v2973_v33 }
  0xf7   : > { %1806 = vmatmul.mubr.bf16.gmra.mrb[104].mxu0 %v2974_v34  ;;  %2717 = vmatmul.mubr.bf16.gmra.mrb[104].mxu1 %v2975_v35 }
  0xf8   : > { %1813 = vmatprep.mubr.bf16.mxu0 %v2976_v36  ;;  %2720 = vmatprep.mubr.bf16.mxu1 %v2978_v37 }
  0xfa   : > { %v2332_v38 = vpop.f32.mrb[0].mxu0  ;;  %v2404_v39 = vpop.f32.mrb[0].mxu1 }
  0xfb   : > { %v2333_v40 = vpop.f32.mrb[1].mxu0  ;;  %v2405_v41 = vpop.f32.mrb[1].mxu1 }
  0xfc   : > { %v2334_v44 = vadd.f32 %v2333_v40, %v2332_v38  ;;  %v2335_v45 = vpop.f32.mrb[2].mxu0  ;;  %v3390_v46 = vadd.f32 %v2405_v41, %v2404_v39  ;;  %v2407_v47 = vpop.f32.mrb[2].mxu1 }
  0xfd   : > { %v2336_v48 = vpop.f32.mrb[3].mxu0  ;;  %v2408_v49 = vpop.f32.mrb[3].mxu1 }
  0xfe   : > { %v2337_v50 = vadd.f32 %v2336_v48, %v2335_v45  ;;  %v3392_v51 = vadd.f32 %v2408_v49, %v2407_v47 }
  0xff   : > { %1814 = vmatmul.mubr.bf16.gmra.mrb[108].mxu0 %v2979_v42  ;;  %2721 = vmatmul.mubr.bf16.gmra.mrb[108].mxu1 %v2980_v43 }
 0x102   : > { %v2338_v52 = vpop.f32.mrb[4].mxu0  ;;  %v2410_v53 = vpop.f32.mrb[4].mxu1 }
 0x103   : > { %v2339_v54 = vpop.f32.mrb[5].mxu0  ;;  %v2411_v55 = vpop.f32.mrb[5].mxu1 }
 0x104   : > { %v2340_v56 = vadd.f32 %v2339_v54, %v2338_v52  ;;  %v2341_v57 = vpop.f32.mrb[6].mxu0  ;;  %v3394_v58 = vadd.f32 %v2411_v55, %v2410_v53  ;;  %v2413_v59 = vpop.f32.mrb[6].mxu1 }
 0x105   : > { %v2342_v60 = vpop.f32.mrb[7].mxu0  ;;  %v2414_v61 = vpop.f32.mrb[7].mxu1 }
 0x106   : > { %v2343_v62 = vadd.f32 %v2342_v60, %v2341_v57  ;;  %v3396_v63 = vadd.f32 %v2414_v61, %v2413_v59 }
 0x10a   : > { %v2344_v0 = vpop.f32.mrb[8].mxu0  ;;  %v2416_v1 = vpop.f32.mrb[8].mxu1 }
 0x10b   : > { %v2345_v2 = vpop.f32.mrb[9].mxu0  ;;  %v2417_v3 = vpop.f32.mrb[9].mxu1 }
 0x10c   : > { %v2346_v4 = vadd.f32 %v2345_v2, %v2344_v0  ;;  %v2347_v5 = vpop.f32.mrb[10].mxu0  ;;  %v3398_v6 = vadd.f32 %v2417_v3, %v2416_v1  ;;  %v2419_v7 = vpop.f32.mrb[10].mxu1 }
 0x10d   : > { %v2348_v8 = vpop.f32.mrb[11].mxu0  ;;  %v2420_v9 = vpop.f32.mrb[11].mxu1 }
 0x10e   : > { %v2349_v10 = vadd.f32 %v2348_v8, %v2347_v5  ;;  %v3400_v11 = vadd.f32 %v2420_v9, %v2419_v7 }
 0x112   : > { %v2350_v12 = vpop.f32.mrb[12].mxu0  ;;  %v2422_v13 = vpop.f32.mrb[12].mxu1 }
 0x113   : > { %v2351_v14 = vpop.f32.mrb[13].mxu0  ;;  %v2423_v15 = vpop.f32.mrb[13].mxu1 }
 0x114   : > { %v2352_v16 = vadd.f32 %v2351_v14, %v2350_v12  ;;  %v2353_v17 = vpop.f32.mrb[14].mxu0  ;;  %v3402_v18 = vadd.f32 %v2423_v15, %v2422_v13  ;;  %v2425_v19 = vpop.f32.mrb[14].mxu1 }
 0x115   : > { %v2354_v20 = vpop.f32.mrb[15].mxu0  ;;  %v2426_v21 = vpop.f32.mrb[15].mxu1 }
 0x116   : > { %v2355_v22 = vadd.f32 %v2354_v20, %v2353_v17  ;;  %v3404_v23 = vadd.f32 %v2426_v21, %v2425_v19 }
 0x11a   : > { %v2356_v24 = vpop.f32.mrb[16].mxu0  ;;  %v2444_v25 = vpop.f32.mrb[16].mxu1 }
 0x11b   : > { %v2357_v26 = vpop.f32.mrb[17].mxu0  ;;  %v2445_v27 = vpop.f32.mrb[17].mxu1 }
 0x11c   : > { %v2358_v28 = vadd.f32 %v2357_v26, %v2356_v24  ;;  %v2446_v29 = vadd.f32 %v2445_v27, %v2444_v25  ;;  %v2359_v30 = vpop.f32.mrb[18].mxu0  ;;  %v2447_v31 = vpop.f32.mrb[18].mxu1 }
 0x11d   : > { %v2360_v32 = vpop.f32.mrb[19].mxu0  ;;  %v2448_v33 = vpop.f32.mrb[19].mxu1 }
 0x11e   : > { %v3406_v34 = vadd.f32 %v2446_v29, %v2334_v44  ;;  %v2361_v35 = vadd.f32 %v2360_v32, %v2359_v30  ;;  %v2449_v36 = vadd.f32 %v2448_v33, %v2447_v31 }
 0x120   : > { %v3408_v37 = vadd.f32 %v2449_v36, %v2337_v50 }
 0x122   : > { %v2362_v38 = vpop.f32.mrb[20].mxu0  ;;  %v2450_v39 = vpop.f32.mrb[20].mxu1 }
 0x123   : > { %v2363_v40 = vpop.f32.mrb[21].mxu0  ;;  %v2451_v41 = vpop.f32.mrb[21].mxu1 }
 0x124   : > { %v2364_v42 = vadd.f32 %v2363_v40, %v2362_v38  ;;  %v2452_v43 = vadd.f32 %v2451_v41, %v2450_v39  ;;  %v2365_v45 = vpop.f32.mrb[22].mxu0  ;;  %v2453_v47 = vpop.f32.mrb[22].mxu1 }
 0x125   : > { %v2366_v48 = vpop.f32.mrb[23].mxu0  ;;  %v2454_v49 = vpop.f32.mrb[23].mxu1 }
 0x126   : > { %v3410_v52 = vadd.f32 %v2452_v43, %v2340_v56  ;;  %v2367_v53 = vadd.f32 %v2366_v48, %v2365_v45  ;;  %v2455_v54 = vadd.f32 %v2454_v49, %v2453_v47 }
 0x128   : > { %v3412_v44 = vadd.f32 %v2455_v54, %v2343_v62 }
 0x12a   : > { %v2368_v55 = vpop.f32.mrb[24].mxu0  ;;  %v2456_v57 = vpop.f32.mrb[24].mxu1 }
 0x12b   : > { %v2369_v50 = vpop.f32.mrb[25].mxu0  ;;  %v2457_v59 = vpop.f32.mrb[25].mxu1 }
 0x12c   : > { %v2370_v60 = vadd.f32 %v2369_v50, %v2368_v55  ;;  %v2458_v61 = vadd.f32 %v2457_v59, %v2456_v57  ;;  %v2371_v0 = vpop.f32.mrb[26].mxu0  ;;  %v2459_v1 = vpop.f32.mrb[26].mxu1 }
 0x12d   : > { %v2372_v2 = vpop.f32.mrb[27].mxu0  ;;  %v2460_v3 = vpop.f32.mrb[27].mxu1 }
 0x12e   : > { %v3414_v5 = vadd.f32 %v2458_v61, %v2346_v4  ;;  %v2373_v7 = vadd.f32 %v2372_v2, %v2371_v0  ;;  %v2461_v8 = vadd.f32 %v2460_v3, %v2459_v1 }
 0x130   : > { %v3416_v56 = vadd.f32 %v2461_v8, %v2349_v10 }
 0x132   : > { %v2374_v9 = vpop.f32.mrb[28].mxu0  ;;  %v2462_v12 = vpop.f32.mrb[28].mxu1 }
 0x133   : > { %v2375_v62 = vpop.f32.mrb[29].mxu0  ;;  %v2463_v13 = vpop.f32.mrb[29].mxu1 }
 0x134   : > { %v2376_v14 = vadd.f32 %v2375_v62, %v2374_v9  ;;  %v2464_v15 = vadd.f32 %v2463_v13, %v2462_v12  ;;  %v2377_v17 = vpop.f32.mrb[30].mxu0  ;;  %v2465_v19 = vpop.f32.mrb[30].mxu1 }
 0x135   : > { %v2378_v20 = vpop.f32.mrb[31].mxu0  ;;  %v2466_v21 = vpop.f32.mrb[31].mxu1 }
 0x136   : > { %v3418_v24 = vadd.f32 %v2464_v15, %v2352_v16  ;;  %v2379_v25 = vadd.f32 %v2378_v20, %v2377_v17  ;;  %v2467_v26 = vadd.f32 %v2466_v21, %v2465_v19 }
 0x138   : > { %v3420_v4 = vadd.f32 %v2467_v26, %v2355_v22 }
 0x13a   : > { %v2380_v27 = vpop.f32.mrb[32].mxu0  ;;  %v2468_v29 = vpop.f32.mrb[32].mxu1 }
 0x13b   : > { %v2381_v10 = vpop.f32.mrb[33].mxu0  ;;  %v2469_v30 = vpop.f32.mrb[33].mxu1 }
 0x13c   : > { %v2382_v31 = vadd.f32 %v2381_v10, %v2380_v27  ;;  %v2470_v32 = vadd.f32 %v2469_v30, %v2468_v29  ;;  %v2383_v33 = vpop.f32.mrb[34].mxu0  ;;  %v2471_v36 = vpop.f32.mrb[34].mxu1 }
 0x13d   : > { %v2384_v38 = vpop.f32.mrb[35].mxu0  ;;  %v2472_v39 = vpop.f32.mrb[35].mxu1 }
 0x13e   : > { %v3422_v40 = vadd.f32 %v2470_v32, %v2358_v28  ;;  %v2385_v41 = vadd.f32 %v2384_v38, %v2383_v33  ;;  %v2473_v43 = vadd.f32 %v2472_v39, %v2471_v36 }
 0x140   : > { %v3424_v16 = vadd.f32 %v2473_v43, %v2361_v35 }
 0x142   : > { %v2386_v45 = vpop.f32.mrb[36].mxu0  ;;  %v2474_v47 = vpop.f32.mrb[36].mxu1 }
 0x143   : > { %v2387_v22 = vpop.f32.mrb[37].mxu0  ;;  %v2475_v48 = vpop.f32.mrb[37].mxu1 }
 0x144   : > { %v3426_v49 = vadd.f32 %v2387_v22, %v2386_v45  ;;  %v2476_v54 = vadd.f32 %v2475_v48, %v2474_v47  ;;  %v2389_v55 = vpop.f32.mrb[38].mxu0  ;;  %v2477_v57 = vpop.f32.mrb[38].mxu1 }
 0x145   : > { %v2390_v50 = vpop.f32.mrb[39].mxu0  ;;  %v2478_v59 = vpop.f32.mrb[39].mxu1 }
 0x146   : > { %v3428_v61 = vadd.f32 %v2476_v54, %v2364_v42  ;;  %v2391_v0 = vadd.f32 %v2390_v50, %v2389_v55  ;;  %v2479_v28 = vadd.f32 %v2478_v59, %v2477_v57 }
 0x148   : > { %v3430_v1 = vadd.f32 %v2479_v28, %v2367_v53 }
 0x14a   : > { %v2392_v2 = vpop.f32.mrb[40].mxu0  ;;  %v2480_v35 = vpop.f32.mrb[40].mxu1 }
 0x14b   : > { %v2393_v3 = vpop.f32.mrb[41].mxu0  ;;  %v2481_v8 = vpop.f32.mrb[41].mxu1 }
 0x14c   : > { %v3432_v9 = vadd.f32 %v2393_v3, %v2392_v2  ;;  %v2482_v12 = vadd.f32 %v2481_v8, %v2480_v35  ;;  %v2395_v62 = vpop.f32.mrb[42].mxu0  ;;  %v2483_v13 = vpop.f32.mrb[42].mxu1 }
 0x14d   : > { %v2396_v15 = vpop.f32.mrb[43].mxu0  ;;  %v2484_v17 = vpop.f32.mrb[43].mxu1 }
 0x14e   : > { %v3434_v19 = vadd.f32 %v2482_v12, %v2370_v60  ;;  %v3436_v20 = vadd.f32 %v2396_v15, %v2395_v62  ;;  %v2485_v42 = vadd.f32 %v2484_v17, %v2483_v13 }
 0x150   : > { %v3438_v21 = vadd.f32 %v2485_v42, %v2373_v7 }
 0x152   : > { %v2398_v53 = vpop.f32.mrb[44].mxu0  ;;  %v2486_v26 = vpop.f32.mrb[44].mxu1 }
 0x153   : > { %v2399_v27 = vpop.f32.mrb[45].mxu0  ;;  %v2487_v29 = vpop.f32.mrb[45].mxu1 }
 0x154   : > { %v3440_v10 = vadd.f32 %v2399_v27, %v2398_v53  ;;  %v2488_v30 = vadd.f32 %v2487_v29, %v2486_v26  ;;  %v2401_v32 = vpop.f32.mrb[46].mxu0  ;;  %v2489_v33 = vpop.f32.mrb[46].mxu1 }
 0x155   : > { %v2402_v36 = vpop.f32.mrb[47].mxu0  ;;  %v2490_v38 = vpop.f32.mrb[47].mxu1 }
 0x156   : > { %v3442_v39 = vadd.f32 %v2488_v30, %v2376_v14  ;;  %v3444_v60 = vadd.f32 %v2402_v36, %v2401_v32  ;;  %v2491_v43 = vadd.f32 %v2490_v38, %v2489_v33 }
 0x158   : > { %v3446_v45 = vadd.f32 %v2491_v43, %v2379_v25 }
 0x15a   : > { %v2492_v7 = vpop.f32.mrb[48].mxu1  ;;  %v2556_v47 = vpop.f32.mrb[48].mxu0 }
 0x15b   : > { %v2493_v22 = vpop.f32.mrb[49].mxu1  ;;  %v2557_v48 = vpop.f32.mrb[49].mxu0 }
 0x15c   : > { %v2494_v54 = vadd.f32 %v2493_v22, %v2492_v7  ;;  %v2558_v55 = vadd.f32 %v2557_v48, %v2556_v47  ;;  %v2495_v57 = vpop.f32.mrb[50].mxu1  ;;  %v2559_v50 = vpop.f32.mrb[50].mxu0 }
 0x15d   : > { %v2496_v59 = vpop.f32.mrb[51].mxu1  ;;  %v2560_v28 = vpop.f32.mrb[51].mxu0 }
 0x15e   : > { %v3448_v2 = vadd.f32 %v2494_v54, %v2382_v31  ;;  %v2497_v35 = vadd.f32 %v2496_v59, %v2495_v57  ;;  %v2561_v14 = vadd.f32 %v2560_v28, %v2559_v50  ;;  %v3451_v3 = vadd.f32 %v2558_v55, %v3406_v34 }
 0x160   : > { %v3453_v8 = vadd.f32 %v2497_v35, %v2385_v41  ;;  %v3456_v25 = vadd.f32 %v2561_v14, %v3408_v37 }
 0x162   : > { %v2498_v12 = vpop.f32.mrb[52].mxu1  ;;  %v2562_v62 = vpop.f32.mrb[52].mxu0 }
 0x163   : > { %v2499_v13 = vpop.f32.mrb[53].mxu1  ;;  %v2563_v15 = vpop.f32.mrb[53].mxu0 }
 0x164   : > { %v2500_v17 = vadd.f32 %v2499_v13, %v2498_v12  ;;  %v2564_v42 = vadd.f32 %v2563_v15, %v2562_v62  ;;  %v2501_v53 = vpop.f32.mrb[54].mxu1  ;;  %v2565_v26 = vpop.f32.mrb[54].mxu0 }
 0x165   : > { %v2502_v31 = vpop.f32.mrb[55].mxu1  ;;  %v2566_v27 = vpop.f32.mrb[55].mxu0 }
 0x166   : > { %v3459_v29 = vadd.f32 %v2500_v17, %v3426_v49  ;;  %v2503_v34 = vadd.f32 %v2502_v31, %v2501_v53  ;;  %v2567_v30 = vadd.f32 %v2566_v27, %v2565_v26  ;;  %v3462_v41 = vadd.f32 %v2564_v42, %v3410_v52 }
 0x168   : > { %v3464_v37 = vadd.f32 %v2503_v34, %v2391_v0  ;;  %v3467_v32 = vadd.f32 %v2567_v30, %v3412_v44 }
 0x16a   : > { %v2504_v33 = vpop.f32.mrb[56].mxu1  ;;  %v2568_v36 = vpop.f32.mrb[56].mxu0 }
 0x16b   : > { %v2505_v38 = vpop.f32.mrb[57].mxu1  ;;  %v2569_v43 = vpop.f32.mrb[57].mxu0 }
 0x16c   : > { %v2506_v7 = vadd.f32 %v2505_v38, %v2504_v33  ;;  %v2570_v47 = vadd.f32 %v2569_v43, %v2568_v36  ;;  %v2507_v22 = vpop.f32.mrb[58].mxu1  ;;  %v2571_v48 = vpop.f32.mrb[58].mxu0 }
 0x16d   : > { %v2508_v49 = vpop.f32.mrb[59].mxu1  ;;  %v2572_v54 = vpop.f32.mrb[59].mxu0 }
 0x16e   : > { %v3470_v55 = vadd.f32 %v2506_v7, %v3432_v9  ;;  %v2509_v52 = vadd.f32 %v2508_v49, %v2507_v22  ;;  %v2573_v57 = vadd.f32 %v2572_v54, %v2571_v48  ;;  %v3473_v0 = vadd.f32 %v2570_v47, %v3414_v5 }
 0x170   : > { %v3476_v44 = vadd.f32 %v2509_v52, %v3436_v20  ;;  %v3479_v50 = vadd.f32 %v2573_v57, %v3416_v56 }
 0x172   : > { %v2510_v59 = vpop.f32.mrb[60].mxu1  ;;  %v2574_v28 = vpop.f32.mrb[60].mxu0 }
 0x173   : > { %v2511_v35 = vpop.f32.mrb[61].mxu1  ;;  %v2575_v14 = vpop.f32.mrb[61].mxu0 }
 0x174   : > { %v2512_v12 = vadd.f32 %v2511_v35, %v2510_v59  ;;  %v2576_v62 = vadd.f32 %v2575_v14, %v2574_v28  ;;  %v2513_v13 = vpop.f32.mrb[62].mxu1  ;;  %v2577_v9 = vpop.f32.mrb[62].mxu0 }
 0x175   : > { %v2514_v15 = vpop.f32.mrb[63].mxu1  ;;  %v2578_v17 = vpop.f32.mrb[63].mxu0 }
 0x176   : > { %v3482_v42 = vadd.f32 %v2512_v12, %v3440_v10  ;;  %v2515_v5 = vadd.f32 %v2514_v15, %v2513_v13  ;;  %v2579_v53 = vadd.f32 %v2578_v17, %v2577_v9  ;;  %v3485_v20 = vadd.f32 %v2576_v62, %v3418_v24 }
 0x178   : > { %v3488_v56 = vadd.f32 %v2515_v5, %v3444_v60  ;;  %v3491_v26 = vadd.f32 %v2579_v53, %v3420_v4 }
 0x17a   : > { %v2516_v31 = vpop.f32.mrb[64].mxu1  ;;  %v2580_v27 = vpop.f32.mrb[64].mxu0 }
 0x17b   : > { %v2517_v34 = vpop.f32.mrb[65].mxu1  ;;  %v2581_v30 = vpop.f32.mrb[65].mxu0 }
 0x17c   : > { %v2518_v33 = vadd.f32 %v2517_v34, %v2516_v31  ;;  %v2582_v36 = vadd.f32 %v2581_v30, %v2580_v27  ;;  %v2519_v38 = vpop.f32.mrb[66].mxu1  ;;  %v2583_v10 = vpop.f32.mrb[66].mxu0 }
 0x17d   : > { %v2520_v43 = vpop.f32.mrb[67].mxu1  ;;  %v2584_v7 = vpop.f32.mrb[67].mxu0 }
 0x17e   : > { %v3494_v47 = vadd.f32 %v2518_v33, %v3390_v46  ;;  %v2521_v24 = vadd.f32 %v2520_v43, %v2519_v38  ;;  %v2585_v22 = vadd.f32 %v2584_v7, %v2583_v10  ;;  %v3497_v60 = vadd.f32 %v2582_v36, %v3422_v40 }
 0x180   : > { %v3500_v4 = vadd.f32 %v2521_v24, %v3392_v51  ;;  %v3503_v48 = vadd.f32 %v2585_v22, %v3424_v16 }
 0x182   : > { %v2522_v49 = vpop.f32.mrb[68].mxu1  ;;  %v2586_v54 = vpop.f32.mrb[68].mxu0 }
 0x183   : > { %v2523_v52 = vpop.f32.mrb[69].mxu1  ;;  %v2587_v57 = vpop.f32.mrb[69].mxu0 }
 0x184   : > { %v2524_v59 = vadd.f32 %v2523_v52, %v2522_v49  ;;  %v2588_v28 = vadd.f32 %v2587_v57, %v2586_v54  ;;  %v2525_v35 = vpop.f32.mrb[70].mxu1  ;;  %v2589_v46 = vpop.f32.mrb[70].mxu0 }
 0x185   : > { %v2526_v14 = vpop.f32.mrb[71].mxu1  ;;  %v2590_v12 = vpop.f32.mrb[71].mxu0 }
 0x186   : > { %v3506_v62 = vadd.f32 %v2524_v59, %v3394_v58  ;;  %v2527_v40 = vadd.f32 %v2526_v14, %v2525_v35  ;;  %v2591_v13 = vadd.f32 %v2590_v12, %v2589_v46  ;;  %v3509_v51 = vadd.f32 %v2588_v28, %v3428_v61 }
 0x188   : > { %v3512_v16 = vadd.f32 %v2527_v40, %v3396_v63  ;;  %v3515_v9 = vadd.f32 %v2591_v13, %v3430_v1 }
 0x18a   : > { %v2528_v15 = vpop.f32.mrb[72].mxu1  ;;  %v2592_v17 = vpop.f32.mrb[72].mxu0 }
 0x18b   : > { %v2529_v5 = vpop.f32.mrb[73].mxu1  ;;  %v2593_v53 = vpop.f32.mrb[73].mxu0 }
 0x18c   : > { %v2530_v31 = vadd.f32 %v2529_v5, %v2528_v15  ;;  %v2594_v27 = vadd.f32 %v2593_v53, %v2592_v17  ;;  %v2531_v34 = vpop.f32.mrb[74].mxu1  ;;  %v2595_v58 = vpop.f32.mrb[74].mxu0 }
 0x18d   : > { %v2532_v30 = vpop.f32.mrb[75].mxu1  ;;  %v2596_v33 = vpop.f32.mrb[75].mxu0 }
 0x18e   : > { %v3518_v36 = vadd.f32 %v2530_v31, %v3398_v6  ;;  %v2533_v61 = vadd.f32 %v2532_v30, %v2531_v34  ;;  %v2597_v38 = vadd.f32 %v2596_v33, %v2595_v58  ;;  %v3521_v63 = vadd.f32 %v2594_v27, %v3434_v19 }
 0x190   : > { %v3524_v1 = vadd.f32 %v2533_v61, %v3400_v11  ;;  %v3527_v10 = vadd.f32 %v2597_v38, %v3438_v21 }
 0x192   : > { %v2534_v43 = vpop.f32.mrb[76].mxu1  ;;  %v2598_v7 = vpop.f32.mrb[76].mxu0 }
 0x193   : > { %v2535_v24 = vpop.f32.mrb[77].mxu1  ;;  %v2599_v22 = vpop.f32.mrb[77].mxu0 }
 0x194   : > { %v2536_v49 = vadd.f32 %v2535_v24, %v2534_v43  ;;  %v2600_v54 = vadd.f32 %v2599_v22, %v2598_v7  ;;  %v2537_v52 = vpop.f32.mrb[78].mxu1  ;;  %v2601_v6 = vpop.f32.mrb[78].mxu0 }
 0x195   : > { %v2538_v57 = vpop.f32.mrb[79].mxu1  ;;  %v2602_v59 = vpop.f32.mrb[79].mxu0 }
 0x196   : > { %v3530_v28 = vadd.f32 %v2536_v49, %v3402_v18  ;;  %v2539_v19 = vadd.f32 %v2538_v57, %v2537_v52  ;;  %v2603_v35 = vadd.f32 %v2602_v59, %v2601_v6  ;;  %v3533_v11 = vadd.f32 %v2600_v54, %v3442_v39 }
 0x198   : > { %v3536_v21 = vadd.f32 %v2539_v19, %v3404_v23  ;;  %v3539_v46 = vadd.f32 %v2603_v35, %v3446_v45 }
 0x19a   : > { %v2604_v14 = vpop.f32.mrb[80].mxu0  ;;  %v2694_v12 = vpop.f32.mrb[80].mxu1 }
 0x19b   : > { %v1865_v40 = vadd.f32 %v2694_v12, %v3462_v41  ;;  %v2605_v13 = vpop.f32.mrb[81].mxu0  ;;  %v1856_v15 = vpop.f32.mrb[81].mxu1 }
 0x19c   : > { %v2606_v18 = vadd.f32 %v2605_v13, %v2604_v14  ;;  %v1857_v17 = vadd.f32 %v1856_v15, %v3451_v3  ;;  %v2607_v5 = vpop.f32.mrb[82].mxu0  ;;  %v2695_v53 = vpop.f32.mrb[82].mxu1 }
 0x19d   : > { %2981 = vtanh.f32 %v1865_v40  ;;  %v1868_v39 = vadd.f32 %v2695_v53, %v3467_v32  ;;  %v2608_v23 = vpop.f32.mrb[83].mxu0  ;;  %v1859_v31 = vpop.f32.mrb[83].mxu1 }
 0x19e   : > { %2983 = vtanh.f32 %v1857_v17  ;;  %v2609_v45 = vadd.f32 %v2608_v23, %v2607_v5  ;;  %v1860_v27 = vadd.f32 %v1859_v31, %v3456_v25  ;;  %v3546_v34 = vadd.f32 %v2606_v18, %v3448_v2 }
 0x19f   : > { %2985 = vtanh.f32 %v1868_v39 }
 0x1a0   : > { %2987 = vtanh.f32 %v1860_v27  ;;  %v3549_v41 = vadd.f32 %v2609_v45, %v3453_v8 }
 0x1a2   : > { %v2610_v3 = vpop.f32.mrb[84].mxu0  ;;  %v2698_v58 = vpop.f32.mrb[84].mxu1 }
 0x1a3   : > { %v1881_v30 = vadd.f32 %v2698_v58, %v3485_v20  ;;  %v2611_v32 = vpop.f32.mrb[85].mxu0  ;;  %v1872_v33 = vpop.f32.mrb[85].mxu1 }
 0x1a4   : > { %v2612_v61 = vadd.f32 %v2611_v32, %v2610_v3  ;;  %v1873_v38 = vadd.f32 %v1872_v33, %v3473_v0  ;;  %v2613_v43 = vpop.f32.mrb[86].mxu0  ;;  %v2699_v25 = vpop.f32.mrb[86].mxu1 }
 0x1a5   : > { %2989 = vtanh.f32 %v1881_v30  ;;  %v1884_v2 = vadd.f32 %v2699_v25, %v3491_v26  ;;  %v2614_v8 = vpop.f32.mrb[87].mxu0  ;;  %v1875_v20 = vpop.f32.mrb[87].mxu1 }
 0x1a6   : > { %2991 = vtanh.f32 %v1873_v38  ;;  %v2615_v7 = vadd.f32 %v2614_v8, %v2613_v43  ;;  %v1876_v0 = vadd.f32 %v1875_v20, %v3479_v50  ;;  %v3562_v24 = vadd.f32 %v2612_v61, %v3459_v29 }
 0x1a7   : > { %v2982_v22 = vpop.eup %2981  ;;  %2993 = vtanh.f32 %v1884_v2 }
 0x1a8   : > { %v2984_v49 = vpop.eup %2983  ;;  %2017 = vst [vmem:[%s3557_s15 + $0x10] sm:$0xff] %v2982_v22  ;;  %2995 = vtanh.f32 %v1876_v0  ;;  %v3566_v54 = vadd.f32 %v2615_v7, %v3464_v37 }
 0x1a9   : > { %v2986_v26 = vpop.eup %2985  ;;  %2015 = vst [vmem:[%s3557_s15] sm:$0xff] %v2984_v49 }
 0x1aa   : > { %v2988_v52 = vpop.eup %2987  ;;  %2018 = vst [vmem:[%s3557_s15 + $0x18] sm:$0xff] %v2986_v26  ;;  %v2616_v6 = vpop.f32.mrb[88].mxu0 }
 0x1ab   : > { %v2702_v57 = vpop.f32.mrb[88].mxu1  ;;  %2016 = vst [vmem:[%s3557_s15 + $0x8] sm:$0xff] %v2988_v52  ;;  %v2617_v59 = vpop.f32.mrb[89].mxu0 }
 0x1ac   : > { %v1897_v50 = vadd.f32 %v2702_v57, %v3509_v51  ;;  %v1888_v29 = vpop.f32.mrb[89].mxu1  ;;  %v2618_v19 = vadd.f32 %v2617_v59, %v2616_v6  ;;  %v2619_v14 = vpop.f32.mrb[90].mxu0 }
 0x1ad   : > { %v1889_v35 = vadd.f32 %v1888_v29, %v3497_v60  ;;  %v2703_v12 = vpop.f32.mrb[90].mxu1  ;;  %v2620_v40 = vpop.f32.mrb[91].mxu0 }
 0x1ae   : > { %2997 = vtanh.f32 %v1897_v50  ;;  %v1900_v37 = vadd.f32 %v2703_v12, %v3515_v9  ;;  %v1891_v13 = vpop.f32.mrb[91].mxu1  ;;  %v2621_v15 = vadd.f32 %v2620_v40, %v2619_v14  ;;  %v3576_v18 = vadd.f32 %v2618_v19, %v3470_v55 }
 0x1af   : > { %2999 = vtanh.f32 %v1889_v35  ;;  %v1892_v51 = vadd.f32 %v1891_v13, %v3503_v48  ;;  %v2990_v17 = vpop.eup %2989 }
 0x1b0   : > { %3001 = vtanh.f32 %v1900_v37  ;;  %v2992_v60 = vpop.eup %2991  ;;  %2021 = vst [vmem:[%s3557_s15 + $0x30] sm:$0xff] %v2990_v17  ;;  %v3580_v5 = vadd.f32 %v2621_v15, %v3476_v44 }
 0x1b1   : > { %3003 = vtanh.f32 %v1892_v51  ;;  %v2994_v9 = vpop.eup %2993  ;;  %2019 = vst [vmem:[%s3557_s15 + $0x20] sm:$0xff] %v2992_v60 }
 0x1b2   : > { %v2996_v53 = vpop.eup %2995  ;;  %2022 = vst [vmem:[%s3557_s15 + $0x38] sm:$0xff] %v2994_v9  ;;  %v2622_v39 = vpop.f32.mrb[92].mxu0 }
 0x1b3   : > { %v2706_v23 = vpop.f32.mrb[92].mxu1  ;;  %2020 = vst [vmem:[%s3557_s15 + $0x28] sm:$0xff] %v2996_v53  ;;  %v2623_v31 = vpop.f32.mrb[93].mxu0 }
 0x1b4   : > { %v1913_v48 = vadd.f32 %v2706_v23, %v3533_v11  ;;  %v1904_v55 = vpop.f32.mrb[93].mxu1  ;;  %v2624_v45 = vadd.f32 %v2623_v31, %v2622_v39  ;;  %v2625_v3 = vpop.f32.mrb[94].mxu0 }
 0x1b5   : > { %v1905_v27 = vadd.f32 %v1904_v55, %v3521_v63  ;;  %v2707_v58 = vpop.f32.mrb[94].mxu1  ;;  %v2626_v30 = vpop.f32.mrb[95].mxu0 }
 0x1b6   : > { %3005 = vtanh.f32 %v1913_v48  ;;  %v1916_v44 = vadd.f32 %v2707_v58, %v3539_v46  ;;  %v1907_v32 = vpop.f32.mrb[95].mxu1  ;;  %v2627_v33 = vadd.f32 %v2626_v30, %v2625_v3  ;;  %v1784_v61 = vadd.f32 %v2624_v45, %v3482_v42 }
 0x1b7   : > { %3007 = vtanh.f32 %v1905_v27  ;;  %v1908_v11 = vadd.f32 %v1907_v32, %v3527_v10 }
 0x1b8   : > { %v2998_v38 = vpop.eup %2997  ;;  %3009 = vtanh.f32 %v1916_v44  ;;  %v1787_v63 = vadd.f32 %v2627_v33, %v3488_v56 }
 0x1b9   : > { %v3000_v43 = vpop.eup %2999  ;;  %2025 = vst [vmem:[%s3557_s15 + $0x50] sm:$0xff] %v2998_v38  ;;  %3011 = vtanh.f32 %v1908_v11 }
 0x1ba   : > { %v3002_v25 = vpop.eup %3001  ;;  %2023 = vst [vmem:[%s3557_s15 + $0x40] sm:$0xff] %v3000_v43  ;;  %v2628_v2 = vpop.f32.mrb[96].mxu0 }
 0x1bb   : > { %v3004_v46 = vpop.eup %3003  ;;  %2026 = vst [vmem:[%s3557_s15 + $0x58] sm:$0xff] %v3002_v25  ;;  %v2710_v8 = vpop.f32.mrb[96].mxu1 }
 0x1bc   : > { %2024 = vst [vmem:[%s3557_s15 + $0x48] sm:$0xff] %v3004_v46  ;;  %v1929_v20 = vadd.f32 %v2710_v8, %v3562_v24  ;;  %v2629_v7 = vpop.f32.mrb[97].mxu0  ;;  %v1920_v10 = vpop.f32.mrb[97].mxu1 }
 0x1bd   : > { %v2630_v42 = vadd.f32 %v2629_v7, %v2628_v2  ;;  %v1921_v0 = vadd.f32 %v1920_v10, %v3546_v34  ;;  %v2631_v22 = vpop.f32.mrb[98].mxu0  ;;  %v2711_v49 = vpop.f32.mrb[98].mxu1 }
 0x1be   : > { %3013 = vtanh.f32 %v1929_v20  ;;  %v1932_v56 = vadd.f32 %v2711_v49, %v3566_v54  ;;  %v2632_v26 = vpop.f32.mrb[99].mxu0  ;;  %v1923_v52 = vpop.f32.mrb[99].mxu1 }
 0x1bf   : > { %3015 = vtanh.f32 %v1921_v0  ;;  %v2633_v6 = vadd.f32 %v2632_v26, %v2631_v22  ;;  %v1924_v24 = vadd.f32 %v1923_v52, %v3549_v41  ;;  %v1792_v57 = vadd.f32 %v2630_v42, %v3494_v47 }
 0x1c0   : > { %v3006_v50 = vpop.eup %3005  ;;  %3017 = vtanh.f32 %v1932_v56 }
 0x1c1   : > { %v3008_v59 = vpop.eup %3007  ;;  %2029 = vst [vmem:[%s3557_s15 + $0x70] sm:$0xff] %v3006_v50  ;;  %3019 = vtanh.f32 %v1924_v24  ;;  %v1795_v34 = vadd.f32 %v2633_v6, %v3500_v4 }
 0x1c2   : > { %v3010_v29 = vpop.eup %3009  ;;  %2027 = vst [vmem:[%s3557_s15 + $0x60] sm:$0xff] %v3008_v59  ;;  %v2634_v19 = vpop.f32.mrb[100].mxu0 }
 0x1c3   : > { %v3012_v54 = vpop.eup %3011  ;;  %2030 = vst [vmem:[%s3557_s15 + $0x78] sm:$0xff] %v3010_v29  ;;  %v2714_v35 = vpop.f32.mrb[100].mxu1 }
 0x1c4   : > { %2028 = vst [vmem:[%s3557_s15 + $0x68] sm:$0xff] %v3012_v54  ;;  %v1945_v14 = vadd.f32 %v2714_v35, %v1784_v61  ;;  %v2635_v12 = vpop.f32.mrb[101].mxu0  ;;  %v1936_v37 = vpop.f32.mrb[101].mxu1 }
 0x1c5   : > { %v2636_v41 = vadd.f32 %v2635_v12, %v2634_v19  ;;  %v1937_v47 = vadd.f32 %v1936_v37, %v3576_v18  ;;  %v2637_v40 = vpop.f32.mrb[102].mxu0  ;;  %v2715_v13 = vpop.f32.mrb[102].mxu1 }
 0x1c6   : > { %3021 = vtanh.f32 %v1945_v14  ;;  %v1948_v15 = vadd.f32 %v2715_v13, %v1787_v63  ;;  %v2638_v4 = vpop.f32.mrb[103].mxu0  ;;  %v1939_v51 = vpop.f32.mrb[103].mxu1 }
 0x1c7   : > { %3023 = vtanh.f32 %v1937_v47  ;;  %v2639_v17 = vadd.f32 %v2638_v4, %v2637_v40  ;;  %v1940_v60 = vadd.f32 %v1939_v51, %v3580_v5  ;;  %v1800_v9 = vadd.f32 %v2636_v41, %v3506_v62 }
 0x1c8   : > { %v3014_v53 = vpop.eup %3013  ;;  %3025 = vtanh.f32 %v1948_v15 }
 0x1c9   : > { %v3016_v39 = vpop.eup %3015  ;;  %2033 = vst [vmem:[%s3557_s15 + $0x90] sm:$0xff] %v3014_v53  ;;  %3027 = vtanh.f32 %v1940_v60  ;;  %v1803_v18 = vadd.f32 %v2639_v17, %v3512_v16 }
 0x1ca   : > { %v3018_v23 = vpop.eup %3017  ;;  %2031 = vst [vmem:[%s3557_s15 + $0x80] sm:$0xff] %v3016_v39  ;;  %v2640_v31 = vpop.f32.mrb[104].mxu0 }
 0x1cb   : > { %v3020_v48 = vpop.eup %3019  ;;  %2034 = vst [vmem:[%s3557_s15 + $0x98] sm:$0xff] %v3018_v23  ;;  %v2718_v55 = vpop.f32.mrb[104].mxu1 }
 0x1cc   : > { %2032 = vst [vmem:[%s3557_s15 + $0x88] sm:$0xff] %v3020_v48  ;;  %v1961_v45 = vadd.f32 %v2718_v55, %v1800_v9  ;;  %v2641_v27 = vpop.f32.mrb[105].mxu0  ;;  %v1952_v3 = vpop.f32.mrb[105].mxu1 }
 0x1cd   : > { %v2642_v5 = vadd.f32 %v2641_v27, %v2640_v31  ;;  %v1953_v62 = vadd.f32 %v1952_v3, %v1792_v57  ;;  %v2643_v58 = vpop.f32.mrb[106].mxu0  ;;  %v2719_v44 = vpop.f32.mrb[106].mxu1 }
 0x1ce   : > { %3029 = vtanh.f32 %v1961_v45  ;;  %v1964_v30 = vadd.f32 %v2719_v44, %v1803_v18  ;;  %v2644_v16 = vpop.f32.mrb[107].mxu0  ;;  %v1955_v32 = vpop.f32.mrb[107].mxu1 }
 0x1cf   : > { %3031 = vtanh.f32 %v1953_v62  ;;  %v2645_v33 = vadd.f32 %v2644_v16, %v2643_v58  ;;  %v1956_v11 = vadd.f32 %v1955_v32, %v1795_v34  ;;  %v1808_v61 = vadd.f32 %v2642_v5, %v3518_v36 }
 0x1d0   : > { %v3022_v38 = vpop.eup %3021  ;;  %3033 = vtanh.f32 %v1964_v30 }
 0x1d1   : > { %v3024_v43 = vpop.eup %3023  ;;  %2037 = vst [vmem:[%s3557_s15 + $0xb0] sm:$0xff] %v3022_v38  ;;  %3035 = vtanh.f32 %v1956_v11  ;;  %v1811_v63 = vadd.f32 %v2645_v33, %v3524_v1 }
 0x1d2   : > { %v3026_v25 = vpop.eup %3025  ;;  %2035 = vst [vmem:[%s3557_s15 + $0xa0] sm:$0xff] %v3024_v43  ;;  %v2646_v2 = vpop.f32.mrb[108].mxu0 }
 0x1d3   : > { %v3028_v46 = vpop.eup %3027  ;;  %2038 = vst [vmem:[%s3557_s15 + $0xb8] sm:$0xff] %v3026_v25  ;;  %v2722_v8 = vpop.f32.mrb[108].mxu1 }
 0x1d4   : > { %2036 = vst [vmem:[%s3557_s15 + $0xa8] sm:$0xff] %v3028_v46  ;;  %v2647_v20 = vpop.f32.mrb[109].mxu0  ;;  %v1968_v7 = vpop.f32.mrb[109].mxu1 }
 0x1d5   : > { %v2648_v10 = vadd.f32 %v2647_v20, %v2646_v2  ;;  %v1969_v42 = vadd.f32 %v1968_v7, %v1808_v61  ;;  %v2649_v36 = vpop.f32.mrb[110].mxu0  ;;  %v2723_v0 = vpop.f32.mrb[110].mxu1 }
 0x1d6   : > { %v2650_v22 = vpop.f32.mrb[111].mxu0  ;;  %v1971_v49 = vpop.f32.mrb[111].mxu1 }
 0x1d7   : > { %v1816_v1 = vadd.f32 %v2648_v10, %v3530_v28  ;;  %3037 = vtanh.f32 %v1969_v42  ;;  %v2651_v56 = vadd.f32 %v2650_v22, %v2649_v36  ;;  %v1972_v26 = vadd.f32 %v1971_v49, %v1811_v63 }
 0x1d8   : > { %v3030_v52 = vpop.eup %3029 }
 0x1d9   : > { %v3032_v6 = vpop.eup %3031  ;;  %2041 = vst [vmem:[%s3557_s15 + $0xd0] sm:$0xff] %v3030_v52  ;;  %v1977_v24 = vadd.f32 %v2722_v8, %v1816_v1  ;;  %v1819_v57 = vadd.f32 %v2651_v56, %v3536_v21  ;;  %3039 = vtanh.f32 %v1972_v26 }
 0x1da   : > { %v3034_v50 = vpop.eup %3033  ;;  %2039 = vst [vmem:[%s3557_s15 + $0xc0] sm:$0xff] %v3032_v6 }
 0x1db   : > { %v3036_v59 = vpop.eup %3035  ;;  %2042 = vst [vmem:[%s3557_s15 + $0xd8] sm:$0xff] %v3034_v50  ;;  %3041 = vtanh.f32 %v1977_v24  ;;  %v1980_v28 = vadd.f32 %v2723_v0, %v1819_v57 }
 0x1dc   : > { %2040 = vst [vmem:[%s3557_s15 + $0xc8] sm:$0xff] %v3036_v59 }
 0x1dd   : > { %3043 = vtanh.f32 %v1980_v28 }
 0x1e1   : > { %v3038_v34 = vpop.eup %3037 }
 0x1e2   : > { %2043 = vst [vmem:[%s3557_s15 + $0xe0] sm:$0xff] %v3038_v34 }
 0x1e3   : > { %v3040_v29 = vpop.eup %3039 }
 0x1e4   : > { %2044 = vst [vmem:[%s3557_s15 + $0xe8] sm:$0xff] %v3040_v29 }
 0x1e5   : > { %v3042_v54 = vpop.eup %3041 }
 0x1e6   : > { %2045 = vst [vmem:[%s3557_s15 + $0xf0] sm:$0xff] %v3042_v54 }
 0x1e7   : > { %v3044_v19 = vpop.eup %3043 }
 0x1e8   : > { %2046 = vst [vmem:[%s3557_s15 + $0xf8] sm:$0xff] %v3044_v19 }
 0x1e9 PF: > { %s12_s11 = sadd.s32 1, %s3067_s11   ;;  %s3641_s9 = smov %s3063_s10 }
 0x1ea   : > { %p9_p5 = scmp.ge.s32.totalorder %s12_s11, 4   ;;  %s3642_s10 = smov %s3644_s12 }
 0x1ec   :  { %11 = sbr.rel (!%p9_p5) target bundleno = 2 (0x2), region = 58 }

</bundles_post_ra>
